<compile_context>
chip_gen: v7x
topology: tpu7x:2x2x1
jax: 0.10.0
libtpu: 0.0.40
codegen_flags: <defaults>
</compile_context>

<pallas_src>
import math
from functools import partial

import jax
import jax.numpy as jnp
from jax.experimental import pallas as pl
from jax.experimental.pallas import tpu as pltpu


ACT_DTYPE = jnp.bfloat16   # inter-sublayer residual-stream dtype (HBM traffic)


# ----------------------------------------------------------------------------
# Small helpers (all f32 math)
# ----------------------------------------------------------------------------
def _layer_norm_f32(x, g, b, eps=1e-5):
    """x: (S, E) f32, g/b: (1, E) f32."""
    mean = jnp.mean(x, axis=-1, keepdims=True)
    var = jnp.mean(jnp.square(x - mean), axis=-1, keepdims=True)
    return (x - mean) * jax.lax.rsqrt(var + eps) * g + b


def _gelu_erf_f32(x):
    # exact (erf) GELU, matching torch.nn.GELU default
    return 0.5 * x * (1.0 + jax.lax.erf(x * (1.0 / math.sqrt(2.0))))


def _attend_accumulate(q, k, v, wo_ref, y0, num_heads):
    """q: (T,E) f32 (scale already folded in), k/v: (M,E) f32,
    wo_ref: (E,E) bf16 Ref, y0: (T,E) f32 (residual + output bias).
    Returns y0 + sum_h (softmax(q_h k_h^T) v_h) @ Wo[h*hs:(h+1)*hs, :].
    No concatenate; output stays a lane-dense (T,E) f32 accumulator and each
    head's intermediates die before the next head starts."""
    E = q.shape[-1]
    hs = E // num_heads
    y = y0
    for h in range(num_heads):
        lo = h * hs
        qh = q[:, lo:lo + hs].astype(jnp.bfloat16)
        kh = k[:, lo:lo + hs].astype(jnp.bfloat16)
        vh = v[:, lo:lo + hs].astype(jnp.bfloat16)
        w = jnp.dot(qh, kh.T, preferred_element_type=jnp.float32)       # (T, M)
        w = w - jnp.max(w, axis=-1, keepdims=True)
        e = jnp.exp(w)
        p = e * pl.reciprocal(jnp.sum(e, axis=-1, keepdims=True), approx=True)
        ah = jnp.dot(p.astype(jnp.bfloat16), vh,
                     preferred_element_type=jnp.float32)                # (T, hs)
        y = y + jnp.dot(ah.astype(jnp.bfloat16), wo_ref[lo:lo + hs, :],
                        preferred_element_type=jnp.float32)             # (T, E)
    return y


def _row_tile(n, target=512):
    """Largest row tile (multiple of 8) dividing n, <= target; n itself if small."""
    if n <= target:
        return n
    for t in range(target, 7, -8):
        if t % 8 == 0 and n % t == 0:
            return t
    return n


def _col_tile(n, target=512):
    """Largest lane tile (multiple of 128) dividing n, <= target; n itself if small."""
    if n <= target:
        return n
    for t in range(target, 127, -128):
        if n % t == 0:
            return t
    return n


def _nbytes(*arrs):
    return sum(int(a.size) * a.dtype.itemsize for a in arrs)


def _compiler_params(semantics, block_bytes):
    # double-buffered per-step blocks + headroom for in-kernel f32 intermediates;
    # clamp to [32 MiB, 64 MiB] so the request is valid on v5e/v6e/v7x.
    limit = int(min(max(2 * block_bytes + (8 << 20), 32 << 20), 64 << 20))
    return pltpu.CompilerParams(dimension_semantics=semantics,
                                vmem_limit_bytes=limit)


# ----------------------------------------------------------------------------
# Fused Pallas kernels
# ----------------------------------------------------------------------------
def _self_attn_kernel(x_ref, g_ref, b_ref, wqkv_ref, bqkv_ref, wo_ref, bo_ref,
                      o_ref, *, num_heads, scale):
    """out = x + Wo @ MHA(LN(x)) ; one batch element per grid step."""
    x = x_ref[...].astype(jnp.float32)                       # (S, E)
    E = x.shape[-1]
    xn = _layer_norm_f32(x, g_ref[...], b_ref[...])
    qkv = jnp.dot(xn.astype(jnp.bfloat16), wqkv_ref[...],
                  preferred_element_type=jnp.float32) + bqkv_ref[...]   # (S, 3E)
    q = qkv[:, :E] * scale            # fold 1/sqrt(hs) into the small q tile
    k = qkv[:, E:2 * E]
    v = qkv[:, 2 * E:]
    y = _attend_accumulate(q, k, v, wo_ref, x + bo_ref[...], num_heads)
    o_ref[...] = y.astype(o_ref.dtype)


def _cross_attn_kernel(q_ref, k_ref, v_ref, g_ref, b_ref,
                       wq_ref, bq_ref, wk_ref, bk_ref, wv_ref, bv_ref,
                       wo_ref, bo_ref, o_ref, *, num_heads, scale):
    """out = q + Wo @ MHA(LN(q), LN(k), LN(v))  (shared LN params, as in spec)."""
    xq = q_ref[...].astype(jnp.float32)                      # (T, E)
    xk = k_ref[...].astype(jnp.float32)                      # (M, E)
    xv = v_ref[...].astype(jnp.float32)                      # (M, E)
    g, b = g_ref[...], b_ref[...]
    qn = _layer_norm_f32(xq, g, b)
    kn = _layer_norm_f32(xk, g, b)
    vn = _layer_norm_f32(xv, g, b)
    q = (jnp.dot(qn.astype(jnp.bfloat16), wq_ref[...],
                 preferred_element_type=jnp.float32) + bq_ref[...]) * scale
    k = jnp.dot(kn.astype(jnp.bfloat16), wk_ref[...],
                preferred_element_type=jnp.float32) + bk_ref[...]
    v = jnp.dot(vn.astype(jnp.bfloat16), wv_ref[...],
                preferred_element_type=jnp.float32) + bv_ref[...]
    y = _attend_accumulate(q, k, v, wo_ref, xq + bo_ref[...], num_heads)
    o_ref[...] = y.astype(o_ref.dtype)


def _ffn_kernel(x_ref, g_ref, b_ref, w1_ref, b1_ref, w2_ref, b2_ref, o_ref,
                xn_ref, acc_ref):
    """out = x + FC2(GELU(FC1(LN(x)))) on a (tm, E) row tile, with the 4E
    hidden dim streamed in tk-wide chunks along grid axis 1 (accumulator)."""
    kk = pl.program_id(1)

    @pl.when(kk == 0)
    def _():
        x = x_ref[...].astype(jnp.float32)
        xn_ref[...] = _layer_norm_f32(x, g_ref[...], b_ref[...])
        acc_ref[...] = jnp.zeros_like(acc_ref)

    h = jnp.dot(xn_ref[...].astype(jnp.bfloat16), w1_ref[...],
                preferred_element_type=jnp.float32) + b1_ref[...]       # (tm, tk)
    h = _gelu_erf_f32(h)
    acc_ref[...] += jnp.dot(h.astype(jnp.bfloat16), w2_ref[...],
                            preferred_element_type=jnp.float32)         # (tm, E)

    @pl.when(kk == pl.num_programs(1) - 1)
    def _():
        o_ref[...] = (acc_ref[...] + b2_ref[...]
                      + x_ref[...].astype(jnp.float32)).astype(o_ref.dtype)


# ----------------------------------------------------------------------------
# Wrappers around pallas_call
# ----------------------------------------------------------------------------
def fused_self_attention(x, ln, att, num_heads):
    """x: (B, S, E) -> x + MHA(LN(x)), bf16 output."""
    B, S, E = x.shape
    hs = E // num_heads
    wqkv, bqkv, wo, bo = att["wqkv"], att["bqkv"], att["wo"], att["bo"]
    kernel = partial(_self_attn_kernel, num_heads=num_heads,
                     scale=1.0 / math.sqrt(hs))
    block_bytes = (S * E * (x.dtype.itemsize + 2)              # x block + bf16 out
                   + _nbytes(ln["g"], ln["b"], wqkv, bqkv, wo, bo)
                   + S * 3 * E * 4 + S * S * 4)                # qkv + one head logits
    return pl.pallas_call(
        kernel,
        out_shape=jax.ShapeDtypeStruct((B, S, E), ACT_DTYPE),
        grid=(B,),
        in_specs=[
            pl.BlockSpec((None, S, E), lambda b: (b, 0, 0)),
            pl.BlockSpec((1, E), lambda b: (0, 0)),
            pl.BlockSpec((1, E), lambda b: (0, 0)),
            pl.BlockSpec((E, 3 * E), lambda b: (0, 0)),
            pl.BlockSpec((1, 3 * E), lambda b: (0, 0)),
            pl.BlockSpec((E, E), lambda b: (0, 0)),
            pl.BlockSpec((1, E), lambda b: (0, 0)),
        ],
        out_specs=pl.BlockSpec((None, S, E), lambda b: (b, 0, 0)),
        compiler_params=_compiler_params(("parallel",), block_bytes),
    )(x, ln["g"], ln["b"], wqkv, bqkv, wo, bo)


def fused_cross_attention(q, k, v, ln, att, num_heads):
    """q: (B, T, E), k/v: (B, M, E) -> q + MHA(LN(q), LN(k), LN(v)), bf16 out."""
    B, T, E = q.shape
    M = k.shape[1]
    hs = E // num_heads
    kernel = partial(_cross_attn_kernel, num_heads=num_heads,
                     scale=1.0 / math.sqrt(hs))
    wspec = pl.BlockSpec((E, E), lambda b: (0, 0))
    bspec = pl.BlockSpec((1, E), lambda b: (0, 0))
    block_bytes = ((T + 2 * M) * E * q.dtype.itemsize + T * E * 2
                   + _nbytes(ln["g"], ln["b"],
                             att["q"]["w"], att["q"]["b"],
                             att["k"]["w"], att["k"]["b"],
                             att["v"]["w"], att["v"]["b"],
                             att["o"]["w"], att["o"]["b"])
                   + (T + 2 * M) * E * 4 + T * M * 4)
    return pl.pallas_call(
        kernel,
        out_shape=jax.ShapeDtypeStruct((B, T, E), ACT_DTYPE),
        grid=(B,),
        in_specs=[
            pl.BlockSpec((None, T, E), lambda b: (b, 0, 0)),
            pl.BlockSpec((None, M, E), lambda b: (b, 0, 0)),
            pl.BlockSpec((None, M, E), lambda b: (b, 0, 0)),
            bspec, bspec,                       # ln gamma / beta
            wspec, bspec,                       # Wq / bq
            wspec, bspec,                       # Wk / bk
            wspec, bspec,                       # Wv / bv
            wspec, bspec,                       # Wo / bo
        ],
        out_specs=pl.BlockSpec((None, T, E), lambda b: (b, 0, 0)),
        compiler_params=_compiler_params(("parallel",), block_bytes),
    )(q, k, v,
      ln["g"], ln["b"],
      att["q"]["w"], att["q"]["b"],
      att["k"]["w"], att["k"]["b"],
      att["v"]["w"], att["v"]["b"],
      att["o"]["w"], att["o"]["b"])


def fused_feed_forward(x, ln, ff):
    """x: (B, S, E) -> x + FC2(GELU(FC1(LN(x)))), bf16 output."""
    B, S, E = x.shape
    N = B * S
    w1, b1 = ff["fc1"]["w"], ff["fc1"]["b"]
    w2, b2 = ff["fc2"]["w"], ff["fc2"]["b"]
    H4 = w1.shape[1]
    x2 = x.reshape(N, E)
    tm = _row_tile(N)
    tk = _col_tile(H4)
    block_bytes = (tm * E * (x.dtype.itemsize + 2)
                   + _nbytes(ln["g"], ln["b"], b2)
                   + (E * tk + tk * E) * 2 + tk * 4             # W1/W2 tiles + b1 tile
                   + 2 * tm * E * 4 + tm * tk * 4)              # scratch + hidden tile
    out = pl.pallas_call(
        _ffn_kernel,
        out_shape=jax.ShapeDtypeStruct((N, E), ACT_DTYPE),
        grid=(N // tm, H4 // tk),
        in_specs=[
            pl.BlockSpec((tm, E), lambda i, j: (i, 0)),
            pl.BlockSpec((1, E), lambda i, j: (0, 0)),
            pl.BlockSpec((1, E), lambda i, j: (0, 0)),
            pl.BlockSpec((E, tk), lambda i, j: (0, j)),
            pl.BlockSpec((1, tk), lambda i, j: (0, j)),
            pl.BlockSpec((tk, E), lambda i, j: (j, 0)),
            pl.BlockSpec((1, E), lambda i, j: (0, 0)),
        ],
        out_specs=pl.BlockSpec((tm, E), lambda i, j: (i, 0)),
        scratch_shapes=[pltpu.VMEM((tm, E), jnp.float32),       # LN(x) cache
                        pltpu.VMEM((tm, E), jnp.float32)],      # f32 accumulator
        compiler_params=_compiler_params(("parallel", "arbitrary"), block_bytes),
    )(x2, ln["g"], ln["b"], w1, b1, w2, b2)
    return out.reshape(B, S, E)


# ----------------------------------------------------------------------------
# Module glue
# ----------------------------------------------------------------------------
def encoder_block(p, num_heads, x):
    x = fused_self_attention(x, p["ln1"], p["att"], num_heads)
    x = fused_feed_forward(x, p["ln2"], p["ff"])
    return x


def decoder_block(p, num_heads, q, k, v):
    q = fused_self_attention(q, p["ln_self"], p["self_att"], num_heads)
    q = fused_cross_attention(q, k, v, p["ln_cross"], p["cross_att"], num_heads)
    q = fused_feed_forward(q, p["ln_ff"], p["ff"])
    return q


def transformer_encoder_decoder(prep, num_heads, embd_x):
    """embd_x: (B, M, E) f32 -> (B, T, E) f32."""
    B, M, E = embd_x.shape
    pos = prep["pos_embd"][:M]                                  # (M, E)
    x = (embd_x + pos[None, :, :]).astype(ACT_DTYPE)

    kv = x
    for blk in prep["encoder"]:
        kv = encoder_block(blk, num_heads, kv)

    k = (kv.astype(jnp.float32) + pos[None, :, :]).astype(ACT_DTYPE)
    v = kv

    T = prep["query_pos_embd"].shape[0]
    q = jnp.broadcast_to(prep["query_pos_embd"][None, :, :], (B, T, E)).astype(ACT_DTYPE)

    for blk in prep["decoder"]:
        q = decoder_block(blk, num_heads, q, k, v)
    return q.astype(jnp.float32)


# ----------------------------------------------------------------------------
# One-time parameter preparation (run OUTSIDE the jitted forward):
# bf16 weight pre-cast, Wqkv/bqkv pre-concat, (1,E) bias/LN reshape.
# ----------------------------------------------------------------------------
def prepare_params(params):
    def lin(p):
        return {"w": p["w"].astype(jnp.bfloat16),
                "b": p["b"].reshape(1, -1).astype(jnp.float32)}

    def ln(p):
        return {"g": p["g"].reshape(1, -1).astype(jnp.float32),
                "b": p["b"].reshape(1, -1).astype(jnp.float32)}

    def fused_qkv_att(att):
        return {
            "wqkv": jnp.concatenate([att["q"]["w"], att["k"]["w"], att["v"]["w"]],
                                    axis=1).astype(jnp.bfloat16),
            "bqkv": jnp.concatenate([att["q"]["b"], att["k"]["b"], att["v"]["b"]]
                                    ).reshape(1, -1).astype(jnp.float32),
            "wo": att["o"]["w"].astype(jnp.bfloat16),
            "bo": att["o"]["b"].reshape(1, -1).astype(jnp.float32),
        }

    def sep_att(att):
        return {k: lin(att[k]) for k in ("q", "k", "v", "o")}

    def ff(p):
        return {"fc1": lin(p["fc1"]), "fc2": lin(p["fc2"])}

    return {
        "pos_embd": params["pos_embd"].astype(jnp.float32),
        "query_pos_embd": params["query_pos_embd"].astype(jnp.float32),
        "encoder": [
            {"att": fused_qkv_att(b["att"]), "ff": ff(b["ff"]),
             "ln1": ln(b["ln1"]), "ln2": ln(b["ln2"])}
            for b in params["encoder"]
        ],
        "decoder": [
            {"self_att": fused_qkv_att(b["self_att"]),
             "cross_att": sep_att(b["cross_att"]),
             "ff": ff(b["ff"]),
             "ln_self": ln(b["ln_self"]),
             "ln_cross": ln(b["ln_cross"]),
             "ln_ff": ln(b["ln_ff"])}
            for b in params["decoder"]
        ],
    }


# ----------------------------------------------------------------------------
# Deterministic parameter init (synthetic; shapes match the PyTorch module)
# ----------------------------------------------------------------------------
def init_params(key, context_length, memory_length, embd_size, num_blocks):
    keys = iter(jax.random.split(key, 4096))

    def lin(din, dout):
        # stored as (in, out): y = x @ w + b  (equiv. to torch x @ W.T + b)
        return {
            "w": 0.02 * jax.random.normal(next(keys), (din, dout), jnp.float32),
            "b": 0.02 * jax.random.normal(next(keys), (dout,), jnp.float32),
        }

    def mha_p(E):
        return {"q": lin(E, E), "k": lin(E, E), "v": lin(E, E), "o": lin(E, E)}

    def ln_p(E):
        return {"g": jnp.ones((E,), jnp.float32), "b": jnp.zeros((E,), jnp.float32)}

    def ff_p(E):
        return {"fc1": lin(E, 4 * E), "fc2": lin(4 * E, E)}

    E = embd_size
    return {
        "pos_embd": 0.02 * jax.random.normal(next(keys), (memory_length, E), jnp.float32),
        "query_pos_embd": 0.02 * jax.random.normal(next(keys), (context_length, E), jnp.float32),
        "encoder": [
            {"att": mha_p(E), "ff": ff_p(E), "ln1": ln_p(E), "ln2": ln_p(E)}
            for _ in range(num_blocks)
        ],
        "decoder": [
            {
                "self_att": mha_p(E),
                "cross_att": mha_p(E),
                "ff": ff_p(E),
                "ln_self": ln_p(E),
                "ln_cross": ln_p(E),
                "ln_ff": ln_p(E),
            }
            for _ in range(num_blocks)
        ],
    }


# ----------------------------------------------------------------------------
if __name__ == "__main__":
    # small config: B=2, memory_length M=16, context_length T=8, E=32, 4 heads
    B = 2
    context_length = 8     # number of object queries (decoder T)
    memory_length = 16     # encoder sequence length M
    embd_size = 32
    num_blocks = 2
    num_heads = 4

    key = jax.random.PRNGKey(0)
    k_params, k_x = jax.random.split(key)
    params = init_params(k_params, context_length, memory_length, embd_size, num_blocks)
    # weight prep happens once, outside the jitted forward
    prep = jax.block_until_ready(prepare_params(params))

    embd_x = jax.random.normal(k_x, (B, memory_length, embd_size), jnp.float32)

    fwd = jax.jit(lambda p, x: transformer_encoder_decoder(p, num_heads, x))
    out = jax.block_until_ready(fwd(prep, embd_x))
    assert out.shape == (B, context_length, embd_size), out.shape
    assert bool(jnp.all(jnp.isfinite(out)))
    print("KERNEL_OK")
</pallas_src>

<mosaic_0001>
module attributes {stable_mosaic.version = 11 : i64} {
  func.func @_ffn_kernel(%arg0: i32, %arg1: i32, %arg2: memref<32x32xbf16, #tpu.memory_space<vmem>>, %arg3: memref<1x32xf32, #tpu.memory_space<vmem>>, %arg4: memref<1x32xf32, #tpu.memory_space<vmem>>, %arg5: memref<32x128xbf16, #tpu.memory_space<vmem>>, %arg6: memref<1x128xf32, #tpu.memory_space<vmem>>, %arg7: memref<128x32xbf16, #tpu.memory_space<vmem>>, %arg8: memref<1x32xf32, #tpu.memory_space<vmem>>, %arg9: memref<32x32xbf16, #tpu.memory_space<vmem>>, %arg10: memref<32x32xf32, #tpu.memory_space<vmem>>, %arg11: memref<32x32xf32, #tpu.memory_space<vmem>>) attributes {dimension_semantics = [#tpu.dimension_semantics<parallel>, #tpu.dimension_semantics<arbitrary>], iteration_bounds = array<i64: 1, 1>, scalar_prefetch = 0 : i64, scratch_operands = 2 : i64, tpu.core_type = #tpu.core_type<tc>, window_params = [{transform_indices = @transform_0, window_bounds = array<i64: 32, 32>}, {pipeline_mode = #tpu.pipeline_mode<synchronous>, transform_indices = @transform_1, window_bounds = array<i64: 1, 32>}, {pipeline_mode = #tpu.pipeline_mode<synchronous>, transform_indices = @transform_2, window_bounds = array<i64: 1, 32>}, {transform_indices = @transform_3, window_bounds = array<i64: 32, 128>}, {transform_indices = @transform_4, window_bounds = array<i64: 1, 128>}, {transform_indices = @transform_5, window_bounds = array<i64: 128, 32>}, {pipeline_mode = #tpu.pipeline_mode<synchronous>, transform_indices = @transform_6, window_bounds = array<i64: 1, 32>}, {transform_indices = @transform_7, window_bounds = array<i64: 32, 32>}]} {
    %c0_i32 = arith.constant 0 : i32
    %0 = arith.cmpi eq, %arg1, %c0_i32 : i32
    %1 = arith.extui %0 : i1 to i32
    %c0_i32_0 = arith.constant 0 : i32
    %2 = arith.cmpi ne, %1, %c0_i32_0 : i32
    scf.if %2 {
      %c0_18 = arith.constant 0 : index
      %c0_19 = arith.constant 0 : index
      %27 = vector.load %arg2[%c0_18, %c0_19] : memref<32x32xbf16, #tpu.memory_space<vmem>>, vector<32x32xbf16>
      %28 = arith.extf %27 : vector<32x32xbf16> to vector<32x32xf32>
      %c0_20 = arith.constant 0 : index
      %c0_21 = arith.constant 0 : index
      %29 = vector.load %arg3[%c0_20, %c0_21] : memref<1x32xf32, #tpu.memory_space<vmem>>, vector<1x32xf32>
      %c0_22 = arith.constant 0 : index
      %c0_23 = arith.constant 0 : index
      %30 = vector.load %arg4[%c0_22, %c0_23] : memref<1x32xf32, #tpu.memory_space<vmem>>, vector<1x32xf32>
      %cst_24 = arith.constant dense<0.000000e+00> : vector<32xf32>
      %31 = vector.multi_reduction <add>, %28, %cst_24 [1] : vector<32x32xf32> to vector<32xf32>
      %32 = vector.shape_cast %31 : vector<32xf32> to vector<32x1xf32>
      %cst_25 = arith.constant 3.200000e+01 : f32
      %33 = vector.broadcast %cst_25 : f32 to vector<32x1xf32>
      %34 = arith.divf %32, %33 : vector<32x1xf32>
      %35 = vector.broadcast %34 : vector<32x1xf32> to vector<32x32xf32>
      %36 = arith.subf %28, %35 : vector<32x32xf32>
      %37 = arith.mulf %36, %36 : vector<32x32xf32>
      %cst_26 = arith.constant dense<0.000000e+00> : vector<32xf32>
      %38 = vector.multi_reduction <add>, %37, %cst_26 [1] : vector<32x32xf32> to vector<32xf32>
      %39 = vector.shape_cast %38 : vector<32xf32> to vector<32x1xf32>
      %cst_27 = arith.constant 3.200000e+01 : f32
      %40 = vector.broadcast %cst_27 : f32 to vector<32x1xf32>
      %41 = arith.divf %39, %40 : vector<32x1xf32>
      %42 = vector.broadcast %34 : vector<32x1xf32> to vector<32x32xf32>
      %43 = arith.subf %28, %42 : vector<32x32xf32>
      %cst_28 = arith.constant 9.99999974E-6 : f32
      %44 = vector.broadcast %cst_28 : f32 to vector<32x1xf32>
      %45 = arith.addf %41, %44 : vector<32x1xf32>
      %46 = math.rsqrt %45 : vector<32x1xf32>
      %47 = vector.broadcast %46 : vector<32x1xf32> to vector<32x32xf32>
      %48 = arith.mulf %43, %47 : vector<32x32xf32>
      %49 = vector.broadcast %29 : vector<1x32xf32> to vector<32x32xf32>
      %50 = arith.mulf %48, %49 : vector<32x32xf32>
      %51 = vector.broadcast %30 : vector<1x32xf32> to vector<32x32xf32>
      %52 = arith.addf %50, %51 : vector<32x32xf32>
      %c0_29 = arith.constant 0 : index
      %c0_30 = arith.constant 0 : index
      %53 = vector.load %arg10[%c0_29, %c0_30] : memref<32x32xf32, #tpu.memory_space<vmem>>, vector<32x32xf32>
      tpu.vector_store %arg10[%c0_29, %c0_30], %52 {strides = array<i32>} : memref<32x32xf32, #tpu.memory_space<vmem>>, vector<32x32xf32>,
      %cst_31 = arith.constant 0.000000e+00 : f32
      %54 = vector.broadcast %cst_31 : f32 to vector<32x32xf32>
      %c0_32 = arith.constant 0 : index
      %c0_33 = arith.constant 0 : index
      %55 = vector.load %arg11[%c0_32, %c0_33] : memref<32x32xf32, #tpu.memory_space<vmem>>, vector<32x32xf32>
      tpu.vector_store %arg11[%c0_32, %c0_33], %54 {strides = array<i32>} : memref<32x32xf32, #tpu.memory_space<vmem>>, vector<32x32xf32>,
    } else {
    }
    %c0 = arith.constant 0 : index
    %c0_1 = arith.constant 0 : index
    %3 = vector.load %arg10[%c0, %c0_1] : memref<32x32xf32, #tpu.memory_space<vmem>>, vector<32x32xf32>
    %4 = arith.truncf %3 : vector<32x32xf32> to vector<32x32xbf16>
    %c0_2 = arith.constant 0 : index
    %c0_3 = arith.constant 0 : index
    %5 = vector.load %arg5[%c0_2, %c0_3] : memref<32x128xbf16, #tpu.memory_space<vmem>>, vector<32x128xbf16>
    %cst = arith.constant dense<0.000000e+00> : vector<32x128xf32>
    %6 = tpu.matmul %4, %5, %cst {dimension_numbers = #tpu.dot_dimension_numbers<[1], [0], [0], [1], [0, 0, 1, 1], [], []>} : vector<32x32xbf16>, vector<32x128xbf16>, vector<32x128xf32> -> vector<32x128xf32>
    %c0_4 = arith.constant 0 : index
    %c0_5 = arith.constant 0 : index
    %7 = vector.load %arg6[%c0_4, %c0_5] : memref<1x128xf32, #tpu.memory_space<vmem>>, vector<1x128xf32>
    %8 = vector.broadcast %7 : vector<1x128xf32> to vector<32x128xf32>
    %9 = arith.addf %6, %8 : vector<32x128xf32>
    %cst_6 = arith.constant 5.000000e-01 : f32
    %10 = vector.broadcast %cst_6 : f32 to vector<32x128xf32>
    %11 = arith.mulf %10, %9 : vector<32x128xf32>
    %cst_7 = arith.constant 0.707106769 : f32
    %12 = vector.broadcast %cst_7 : f32 to vector<32x128xf32>
    %13 = arith.mulf %9, %12 : vector<32x128xf32>
    %14 = math.erf %13 : vector<32x128xf32>
    %cst_8 = arith.constant 1.000000e+00 : f32
    %15 = vector.broadcast %cst_8 : f32 to vector<32x128xf32>
    %16 = arith.addf %15, %14 : vector<32x128xf32>
    %17 = arith.mulf %11, %16 : vector<32x128xf32>
    %c0_9 = arith.constant 0 : index
    %c0_10 = arith.constant 0 : index
    %18 = vector.load %arg11[%c0_9, %c0_10] : memref<32x32xf32, #tpu.memory_space<vmem>>, vector<32x32xf32>
    %19 = arith.truncf %17 : vector<32x128xf32> to vector<32x128xbf16>
    %c0_11 = arith.constant 0 : index
    %c0_12 = arith.constant 0 : index
    %20 = vector.load %arg7[%c0_11, %c0_12] : memref<128x32xbf16, #tpu.memory_space<vmem>>, vector<128x32xbf16>
    %cst_13 = arith.constant dense<0.000000e+00> : vector<32x32xf32>
    %21 = tpu.matmul %19, %20, %cst_13 {dimension_numbers = #tpu.dot_dimension_numbers<[1], [0], [0], [1], [0, 0, 1, 1], [], []>} : vector<32x128xbf16>, vector<128x32xbf16>, vector<32x32xf32> -> vector<32x32xf32>
    %22 = arith.addf %18, %21 : vector<32x32xf32>
    %c0_14 = arith.constant 0 : index
    %c0_15 = arith.constant 0 : index
    %23 = vector.load %arg11[%c0_14, %c0_15] : memref<32x32xf32, #tpu.memory_space<vmem>>, vector<32x32xf32>
    tpu.vector_store %arg11[%c0_14, %c0_15], %22 {strides = array<i32>} : memref<32x32xf32, #tpu.memory_space<vmem>>, vector<32x32xf32>,
    %c0_i32_16 = arith.constant 0 : i32
    %24 = arith.cmpi eq, %arg1, %c0_i32_16 : i32
    %25 = arith.extui %24 : i1 to i32
    %c0_i32_17 = arith.constant 0 : i32
    %26 = arith.cmpi ne, %25, %c0_i32_17 : i32
    scf.if %26 {
      %c0_18 = arith.constant 0 : index
      %c0_19 = arith.constant 0 : index
      %27 = vector.load %arg11[%c0_18, %c0_19] : memref<32x32xf32, #tpu.memory_space<vmem>>, vector<32x32xf32>
      %c0_20 = arith.constant 0 : index
      %c0_21 = arith.constant 0 : index
      %28 = vector.load %arg8[%c0_20, %c0_21] : memref<1x32xf32, #tpu.memory_space<vmem>>, vector<1x32xf32>
      %29 = vector.broadcast %28 : vector<1x32xf32> to vector<32x32xf32>
      %30 = arith.addf %27, %29 : vector<32x32xf32>
      %c0_22 = arith.constant 0 : index
      %c0_23 = arith.constant 0 : index
      %31 = vector.load %arg2[%c0_22, %c0_23] : memref<32x32xbf16, #tpu.memory_space<vmem>>, vector<32x32xbf16>
      %32 = arith.extf %31 : vector<32x32xbf16> to vector<32x32xf32>
      %33 = arith.addf %30, %32 : vector<32x32xf32>
      %34 = arith.truncf %33 : vector<32x32xf32> to vector<32x32xbf16>
      %c0_24 = arith.constant 0 : index
      %c0_25 = arith.constant 0 : index
      %35 = vector.load %arg9[%c0_24, %c0_25] : memref<32x32xbf16, #tpu.memory_space<vmem>>, vector<32x32xbf16>
      tpu.vector_store %arg9[%c0_24, %c0_25], %34 {strides = array<i32>} : memref<32x32xbf16, #tpu.memory_space<vmem>>, vector<32x32xbf16>,
    } else {
    }
    return
  }
  func.func @transform_0(%arg0: i32, %arg1: i32) -> (i32, i32) {
    %c0_i32 = arith.constant 0 : i32
    %c0_i32_0 = arith.constant 0 : i32
    return %arg0, %c0_i32 : i32, i32
  }
  func.func @transform_1(%arg0: i32, %arg1: i32) -> (i32, i32) {
    %c0_i32 = arith.constant 0 : i32
    %c0_i32_0 = arith.constant 0 : i32
    %c0_i32_1 = arith.constant 0 : i32
    return %c0_i32, %c0_i32_0 : i32, i32
  }
  func.func @transform_2(%arg0: i32, %arg1: i32) -> (i32, i32) {
    %c0_i32 = arith.constant 0 : i32
    %c0_i32_0 = arith.constant 0 : i32
    %c0_i32_1 = arith.constant 0 : i32
    return %c0_i32, %c0_i32_0 : i32, i32
  }
  func.func @transform_3(%arg0: i32, %arg1: i32) -> (i32, i32) {
    %c0_i32 = arith.constant 0 : i32
    %c0_i32_0 = arith.constant 0 : i32
    return %c0_i32, %arg1 : i32, i32
  }
  func.func @transform_4(%arg0: i32, %arg1: i32) -> (i32, i32) {
    %c0_i32 = arith.constant 0 : i32
    %c0_i32_0 = arith.constant 0 : i32
    return %c0_i32, %arg1 : i32, i32
  }
  func.func @transform_5(%arg0: i32, %arg1: i32) -> (i32, i32) {
    %c0_i32 = arith.constant 0 : i32
    %c0_i32_0 = arith.constant 0 : i32
    return %arg1, %c0_i32 : i32, i32
  }
  func.func @transform_6(%arg0: i32, %arg1: i32) -> (i32, i32) {
    %c0_i32 = arith.constant 0 : i32
    %c0_i32_0 = arith.constant 0 : i32
    %c0_i32_1 = arith.constant 0 : i32
    return %c0_i32, %c0_i32_0 : i32, i32
  }
  func.func @transform_7(%arg0: i32, %arg1: i32) -> (i32, i32) {
    %c0_i32 = arith.constant 0 : i32
    %c0_i32_0 = arith.constant 0 : i32
    return %arg0, %c0_i32 : i32, i32
  }
}

module attributes {stable_mosaic.version = 11 : i64} {
  func.func @_self_attn_kernel(%arg0: i32, %arg1: memref<1x16x32xbf16, #tpu.memory_space<vmem>>, %arg2: memref<1x32xf32, #tpu.memory_space<vmem>>, %arg3: memref<1x32xf32, #tpu.memory_space<vmem>>, %arg4: memref<32x96xbf16, #tpu.memory_space<vmem>>, %arg5: memref<1x96xf32, #tpu.memory_space<vmem>>, %arg6: memref<32x32xbf16, #tpu.memory_space<vmem>>, %arg7: memref<1x32xf32, #tpu.memory_space<vmem>>, %arg8: memref<1x16x32xbf16, #tpu.memory_space<vmem>>) attributes {dimension_semantics = [#tpu.dimension_semantics<parallel>], iteration_bounds = array<i64: 2>, scalar_prefetch = 0 : i64, scratch_operands = 0 : i64, tpu.core_type = #tpu.core_type<tc>, window_params = [{transform_indices = @transform_0, window_bounds = array<i64: 1, 16, 32>}, {pipeline_mode = #tpu.pipeline_mode<synchronous>, transform_indices = @transform_1, window_bounds = array<i64: 1, 32>}, {pipeline_mode = #tpu.pipeline_mode<synchronous>, transform_indices = @transform_2, window_bounds = array<i64: 1, 32>}, {pipeline_mode = #tpu.pipeline_mode<synchronous>, transform_indices = @transform_3, window_bounds = array<i64: 32, 96>}, {pipeline_mode = #tpu.pipeline_mode<synchronous>, transform_indices = @transform_4, window_bounds = array<i64: 1, 96>}, {pipeline_mode = #tpu.pipeline_mode<synchronous>, transform_indices = @transform_5, window_bounds = array<i64: 32, 32>}, {pipeline_mode = #tpu.pipeline_mode<synchronous>, transform_indices = @transform_6, window_bounds = array<i64: 1, 32>}, {transform_indices = @transform_7, window_bounds = array<i64: 1, 16, 32>}]} {
    %c0 = arith.constant 0 : index
    %c0_0 = arith.constant 0 : index
    %c0_1 = arith.constant 0 : index
    %0 = vector.load %arg1[%c0, %c0_0, %c0_1] : memref<1x16x32xbf16, #tpu.memory_space<vmem>>, vector<1x16x32xbf16>
    %1 = vector.shape_cast %0 : vector<1x16x32xbf16> to vector<16x32xbf16>
    %2 = arith.extf %1 : vector<16x32xbf16> to vector<16x32xf32>
    %c0_2 = arith.constant 0 : index
    %c0_3 = arith.constant 0 : index
    %3 = vector.load %arg2[%c0_2, %c0_3] : memref<1x32xf32, #tpu.memory_space<vmem>>, vector<1x32xf32>
    %c0_4 = arith.constant 0 : index
    %c0_5 = arith.constant 0 : index
    %4 = vector.load %arg3[%c0_4, %c0_5] : memref<1x32xf32, #tpu.memory_space<vmem>>, vector<1x32xf32>
    %cst = arith.constant dense<0.000000e+00> : vector<16xf32>
    %5 = vector.multi_reduction <add>, %2, %cst [1] : vector<16x32xf32> to vector<16xf32>
    %6 = vector.shape_cast %5 : vector<16xf32> to vector<16x1xf32>
    %cst_6 = arith.constant 3.200000e+01 : f32
    %7 = vector.broadcast %cst_6 : f32 to vector<16x1xf32>
    %8 = arith.divf %6, %7 : vector<16x1xf32>
    %9 = vector.broadcast %8 : vector<16x1xf32> to vector<16x32xf32>
    %10 = arith.subf %2, %9 : vector<16x32xf32>
    %11 = arith.mulf %10, %10 : vector<16x32xf32>
    %cst_7 = arith.constant dense<0.000000e+00> : vector<16xf32>
    %12 = vector.multi_reduction <add>, %11, %cst_7 [1] : vector<16x32xf32> to vector<16xf32>
    %13 = vector.shape_cast %12 : vector<16xf32> to vector<16x1xf32>
    %cst_8 = arith.constant 3.200000e+01 : f32
    %14 = vector.broadcast %cst_8 : f32 to vector<16x1xf32>
    %15 = arith.divf %13, %14 : vector<16x1xf32>
    %16 = vector.broadcast %8 : vector<16x1xf32> to vector<16x32xf32>
    %17 = arith.subf %2, %16 : vector<16x32xf32>
    %cst_9 = arith.constant 9.99999974E-6 : f32
    %18 = vector.broadcast %cst_9 : f32 to vector<16x1xf32>
    %19 = arith.addf %15, %18 : vector<16x1xf32>
    %20 = math.rsqrt %19 : vector<16x1xf32>
    %21 = vector.broadcast %20 : vector<16x1xf32> to vector<16x32xf32>
    %22 = arith.mulf %17, %21 : vector<16x32xf32>
    %23 = vector.broadcast %3 : vector<1x32xf32> to vector<16x32xf32>
    %24 = arith.mulf %22, %23 : vector<16x32xf32>
    %25 = vector.broadcast %4 : vector<1x32xf32> to vector<16x32xf32>
    %26 = arith.addf %24, %25 : vector<16x32xf32>
    %27 = arith.truncf %26 : vector<16x32xf32> to vector<16x32xbf16>
    %c0_10 = arith.constant 0 : index
    %c0_11 = arith.constant 0 : index
    %28 = vector.load %arg4[%c0_10, %c0_11] : memref<32x96xbf16, #tpu.memory_space<vmem>>, vector<32x96xbf16>
    %cst_12 = arith.constant dense<0.000000e+00> : vector<16x96xf32>
    %29 = tpu.matmul %27, %28, %cst_12 {dimension_numbers = #tpu.dot_dimension_numbers<[1], [0], [0], [1], [0, 0, 1, 1], [], []>} : vector<16x32xbf16>, vector<32x96xbf16>, vector<16x96xf32> -> vector<16x96xf32>
    %c0_13 = arith.constant 0 : index
    %c0_14 = arith.constant 0 : index
    %30 = vector.load %arg5[%c0_13, %c0_14] : memref<1x96xf32, #tpu.memory_space<vmem>>, vector<1x96xf32>
    %31 = vector.broadcast %30 : vector<1x96xf32> to vector<16x96xf32>
    %32 = arith.addf %29, %31 : vector<16x96xf32>
    %33 = vector.extract_strided_slice %32 {offsets = [0, 0], sizes = [16, 32], strides = [1, 1]} : vector<16x96xf32> to vector<16x32xf32>
    %cst_15 = arith.constant 0.353553385 : f32
    %34 = vector.broadcast %cst_15 : f32 to vector<16x32xf32>
    %35 = arith.mulf %33, %34 : vector<16x32xf32>
    %36 = vector.extract_strided_slice %32 {offsets = [0, 32], sizes = [16, 32], strides = [1, 1]} : vector<16x96xf32> to vector<16x32xf32>
    %37 = vector.extract_strided_slice %32 {offsets = [0, 64], sizes = [16, 32], strides = [1, 1]} : vector<16x96xf32> to vector<16x32xf32>
    %c0_16 = arith.constant 0 : index
    %c0_17 = arith.constant 0 : index
    %38 = vector.load %arg7[%c0_16, %c0_17] : memref<1x32xf32, #tpu.memory_space<vmem>>, vector<1x32xf32>
    %39 = vector.broadcast %38 : vector<1x32xf32> to vector<16x32xf32>
    %40 = arith.addf %2, %39 : vector<16x32xf32>
    %41 = vector.extract_strided_slice %35 {offsets = [0, 0], sizes = [16, 8], strides = [1, 1]} : vector<16x32xf32> to vector<16x8xf32>
    %42 = arith.truncf %41 : vector<16x8xf32> to vector<16x8xbf16>
    %43 = vector.extract_strided_slice %36 {offsets = [0, 0], sizes = [16, 8], strides = [1, 1]} : vector<16x32xf32> to vector<16x8xf32>
    %44 = arith.truncf %43 : vector<16x8xf32> to vector<16x8xbf16>
    %45 = vector.extract_strided_slice %37 {offsets = [0, 0], sizes = [16, 8], strides = [1, 1]} : vector<16x32xf32> to vector<16x8xf32>
    %46 = arith.truncf %45 : vector<16x8xf32> to vector<16x8xbf16>
    %47 = tpu.transpose %44, [1, 0] : vector<16x8xbf16> -> vector<8x16xbf16>
    %cst_18 = arith.constant dense<0.000000e+00> : vector<16x16xf32>
    %48 = tpu.matmul %42, %47, %cst_18 {dimension_numbers = #tpu.dot_dimension_numbers<[1], [0], [0], [1], [0, 0, 1, 1], [], []>} : vector<16x8xbf16>, vector<8x16xbf16>, vector<16x16xf32> -> vector<16x16xf32>
    %cst_19 = arith.constant dense<0xFF800000> : vector<16xf32>
    %49 = vector.multi_reduction <maximumf>, %48, %cst_19 [1] : vector<16x16xf32> to vector<16xf32>
    %50 = vector.shape_cast %49 : vector<16xf32> to vector<16x1xf32>
    %51 = vector.broadcast %50 : vector<16x1xf32> to vector<16x16xf32>
    %52 = arith.subf %48, %51 : vector<16x16xf32>
    %53 = math.exp %52 : vector<16x16xf32>
    %cst_20 = arith.constant dense<0.000000e+00> : vector<16xf32>
    %54 = vector.multi_reduction <add>, %53, %cst_20 [1] : vector<16x16xf32> to vector<16xf32>
    %55 = vector.shape_cast %54 : vector<16xf32> to vector<16x1xf32>
    %56 = tpu.reciprocal %55 {approx = true} : vector<16x1xf32> -> vector<16x1xf32>
    %57 = vector.broadcast %56 : vector<16x1xf32> to vector<16x16xf32>
    %58 = arith.mulf %53, %57 : vector<16x16xf32>
    %59 = arith.truncf %58 : vector<16x16xf32> to vector<16x16xbf16>
    %cst_21 = arith.constant dense<0.000000e+00> : vector<16x8xf32>
    %60 = tpu.matmul %59, %46, %cst_21 {dimension_numbers = #tpu.dot_dimension_numbers<[1], [0], [0], [1], [0, 0, 1, 1], [], []>} : vector<16x16xbf16>, vector<16x8xbf16>, vector<16x8xf32> -> vector<16x8xf32>
    %61 = arith.truncf %60 : vector<16x8xf32> to vector<16x8xbf16>
    %c0_22 = arith.constant 0 : index
    %c0_23 = arith.constant 0 : index
    %62 = vector.load %arg6[%c0_22, %c0_23] : memref<32x32xbf16, #tpu.memory_space<vmem>>, vector<8x32xbf16>
    %cst_24 = arith.constant dense<0.000000e+00> : vector<16x32xf32>
    %63 = tpu.matmul %61, %62, %cst_24 {dimension_numbers = #tpu.dot_dimension_numbers<[1], [0], [0], [1], [0, 0, 1, 1], [], []>} : vector<16x8xbf16>, vector<8x32xbf16>, vector<16x32xf32> -> vector<16x32xf32>
    %64 = arith.addf %40, %63 : vector<16x32xf32>
    %65 = vector.extract_strided_slice %35 {offsets = [0, 8], sizes = [16, 8], strides = [1, 1]} : vector<16x32xf32> to vector<16x8xf32>
    %66 = arith.truncf %65 : vector<16x8xf32> to vector<16x8xbf16>
    %67 = vector.extract_strided_slice %36 {offsets = [0, 8], sizes = [16, 8], strides = [1, 1]} : vector<16x32xf32> to vector<16x8xf32>
    %68 = arith.truncf %67 : vector<16x8xf32> to vector<16x8xbf16>
    %69 = vector.extract_strided_slice %37 {offsets = [0, 8], sizes = [16, 8], strides = [1, 1]} : vector<16x32xf32> to vector<16x8xf32>
    %70 = arith.truncf %69 : vector<16x8xf32> to vector<16x8xbf16>
    %71 = tpu.transpose %68, [1, 0] : vector<16x8xbf16> -> vector<8x16xbf16>
    %cst_25 = arith.constant dense<0.000000e+00> : vector<16x16xf32>
    %72 = tpu.matmul %66, %71, %cst_25 {dimension_numbers = #tpu.dot_dimension_numbers<[1], [0], [0], [1], [0, 0, 1, 1], [], []>} : vector<16x8xbf16>, vector<8x16xbf16>, vector<16x16xf32> -> vector<16x16xf32>
    %cst_26 = arith.constant dense<0xFF800000> : vector<16xf32>
    %73 = vector.multi_reduction <maximumf>, %72, %cst_26 [1] : vector<16x16xf32> to vector<16xf32>
    %74 = vector.shape_cast %73 : vector<16xf32> to vector<16x1xf32>
    %75 = vector.broadcast %74 : vector<16x1xf32> to vector<16x16xf32>
    %76 = arith.subf %72, %75 : vector<16x16xf32>
    %77 = math.exp %76 : vector<16x16xf32>
    %cst_27 = arith.constant dense<0.000000e+00> : vector<16xf32>
    %78 = vector.multi_reduction <add>, %77, %cst_27 [1] : vector<16x16xf32> to vector<16xf32>
    %79 = vector.shape_cast %78 : vector<16xf32> to vector<16x1xf32>
    %80 = tpu.reciprocal %79 {approx = true} : vector<16x1xf32> -> vector<16x1xf32>
    %81 = vector.broadcast %80 : vector<16x1xf32> to vector<16x16xf32>
    %82 = arith.mulf %77, %81 : vector<16x16xf32>
    %83 = arith.truncf %82 : vector<16x16xf32> to vector<16x16xbf16>
    %cst_28 = arith.constant dense<0.000000e+00> : vector<16x8xf32>
    %84 = tpu.matmul %83, %70, %cst_28 {dimension_numbers = #tpu.dot_dimension_numbers<[1], [0], [0], [1], [0, 0, 1, 1], [], []>} : vector<16x16xbf16>, vector<16x8xbf16>, vector<16x8xf32> -> vector<16x8xf32>
    %85 = arith.truncf %84 : vector<16x8xf32> to vector<16x8xbf16>
    %c8 = arith.constant 8 : index
    %c0_29 = arith.constant 0 : index
    %86 = vector.load %arg6[%c8, %c0_29] : memref<32x32xbf16, #tpu.memory_space<vmem>>, vector<8x32xbf16>
    %cst_30 = arith.constant dense<0.000000e+00> : vector<16x32xf32>
    %87 = tpu.matmul %85, %86, %cst_30 {dimension_numbers = #tpu.dot_dimension_numbers<[1], [0], [0], [1], [0, 0, 1, 1], [], []>} : vector<16x8xbf16>, vector<8x32xbf16>, vector<16x32xf32> -> vector<16x32xf32>
    %88 = arith.addf %64, %87 : vector<16x32xf32>
    %89 = vector.extract_strided_slice %35 {offsets = [0, 16], sizes = [16, 8], strides = [1, 1]} : vector<16x32xf32> to vector<16x8xf32>
    %90 = arith.truncf %89 : vector<16x8xf32> to vector<16x8xbf16>
    %91 = vector.extract_strided_slice %36 {offsets = [0, 16], sizes = [16, 8], strides = [1, 1]} : vector<16x32xf32> to vector<16x8xf32>
    %92 = arith.truncf %91 : vector<16x8xf32> to vector<16x8xbf16>
    %93 = vector.extract_strided_slice %37 {offsets = [0, 16], sizes = [16, 8], strides = [1, 1]} : vector<16x32xf32> to vector<16x8xf32>
    %94 = arith.truncf %93 : vector<16x8xf32> to vector<16x8xbf16>
    %95 = tpu.transpose %92, [1, 0] : vector<16x8xbf16> -> vector<8x16xbf16>
    %cst_31 = arith.constant dense<0.000000e+00> : vector<16x16xf32>
    %96 = tpu.matmul %90, %95, %cst_31 {dimension_numbers = #tpu.dot_dimension_numbers<[1], [0], [0], [1], [0, 0, 1, 1], [], []>} : vector<16x8xbf16>, vector<8x16xbf16>, vector<16x16xf32> -> vector<16x16xf32>
    %cst_32 = arith.constant dense<0xFF800000> : vector<16xf32>
    %97 = vector.multi_reduction <maximumf>, %96, %cst_32 [1] : vector<16x16xf32> to vector<16xf32>
    %98 = vector.shape_cast %97 : vector<16xf32> to vector<16x1xf32>
    %99 = vector.broadcast %98 : vector<16x1xf32> to vector<16x16xf32>
    %100 = arith.subf %96, %99 : vector<16x16xf32>
    %101 = math.exp %100 : vector<16x16xf32>
    %cst_33 = arith.constant dense<0.000000e+00> : vector<16xf32>
    %102 = vector.multi_reduction <add>, %101, %cst_33 [1] : vector<16x16xf32> to vector<16xf32>
    %103 = vector.shape_cast %102 : vector<16xf32> to vector<16x1xf32>
    %104 = tpu.reciprocal %103 {approx = true} : vector<16x1xf32> -> vector<16x1xf32>
    %105 = vector.broadcast %104 : vector<16x1xf32> to vector<16x16xf32>
    %106 = arith.mulf %101, %105 : vector<16x16xf32>
    %107 = arith.truncf %106 : vector<16x16xf32> to vector<16x16xbf16>
    %cst_34 = arith.constant dense<0.000000e+00> : vector<16x8xf32>
    %108 = tpu.matmul %107, %94, %cst_34 {dimension_numbers = #tpu.dot_dimension_numbers<[1], [0], [0], [1], [0, 0, 1, 1], [], []>} : vector<16x16xbf16>, vector<16x8xbf16>, vector<16x8xf32> -> vector<16x8xf32>
    %109 = arith.truncf %108 : vector<16x8xf32> to vector<16x8xbf16>
    %c16 = arith.constant 16 : index
    %c0_35 = arith.constant 0 : index
    %110 = vector.load %arg6[%c16, %c0_35] : memref<32x32xbf16, #tpu.memory_space<vmem>>, vector<8x32xbf16>
    %cst_36 = arith.constant dense<0.000000e+00> : vector<16x32xf32>
    %111 = tpu.matmul %109, %110, %cst_36 {dimension_numbers = #tpu.dot_dimension_numbers<[1], [0], [0], [1], [0, 0, 1, 1], [], []>} : vector<16x8xbf16>, vector<8x32xbf16>, vector<16x32xf32> -> vector<16x32xf32>
    %112 = arith.addf %88, %111 : vector<16x32xf32>
    %113 = vector.extract_strided_slice %35 {offsets = [0, 24], sizes = [16, 8], strides = [1, 1]} : vector<16x32xf32> to vector<16x8xf32>
    %114 = arith.truncf %113 : vector<16x8xf32> to vector<16x8xbf16>
    %115 = vector.extract_strided_slice %36 {offsets = [0, 24], sizes = [16, 8], strides = [1, 1]} : vector<16x32xf32> to vector<16x8xf32>
    %116 = arith.truncf %115 : vector<16x8xf32> to vector<16x8xbf16>
    %117 = vector.extract_strided_slice %37 {offsets = [0, 24], sizes = [16, 8], strides = [1, 1]} : vector<16x32xf32> to vector<16x8xf32>
    %118 = arith.truncf %117 : vector<16x8xf32> to vector<16x8xbf16>
    %119 = tpu.transpose %116, [1, 0] : vector<16x8xbf16> -> vector<8x16xbf16>
    %cst_37 = arith.constant dense<0.000000e+00> : vector<16x16xf32>
    %120 = tpu.matmul %114, %119, %cst_37 {dimension_numbers = #tpu.dot_dimension_numbers<[1], [0], [0], [1], [0, 0, 1, 1], [], []>} : vector<16x8xbf16>, vector<8x16xbf16>, vector<16x16xf32> -> vector<16x16xf32>
    %cst_38 = arith.constant dense<0xFF800000> : vector<16xf32>
    %121 = vector.multi_reduction <maximumf>, %120, %cst_38 [1] : vector<16x16xf32> to vector<16xf32>
    %122 = vector.shape_cast %121 : vector<16xf32> to vector<16x1xf32>
    %123 = vector.broadcast %122 : vector<16x1xf32> to vector<16x16xf32>
    %124 = arith.subf %120, %123 : vector<16x16xf32>
    %125 = math.exp %124 : vector<16x16xf32>
    %cst_39 = arith.constant dense<0.000000e+00> : vector<16xf32>
    %126 = vector.multi_reduction <add>, %125, %cst_39 [1] : vector<16x16xf32> to vector<16xf32>
    %127 = vector.shape_cast %126 : vector<16xf32> to vector<16x1xf32>
    %128 = tpu.reciprocal %127 {approx = true} : vector<16x1xf32> -> vector<16x1xf32>
    %129 = vector.broadcast %128 : vector<16x1xf32> to vector<16x16xf32>
    %130 = arith.mulf %125, %129 : vector<16x16xf32>
    %131 = arith.truncf %130 : vector<16x16xf32> to vector<16x16xbf16>
    %cst_40 = arith.constant dense<0.000000e+00> : vector<16x8xf32>
    %132 = tpu.matmul %131, %118, %cst_40 {dimension_numbers = #tpu.dot_dimension_numbers<[1], [0], [0], [1], [0, 0, 1, 1], [], []>} : vector<16x16xbf16>, vector<16x8xbf16>, vector<16x8xf32> -> vector<16x8xf32>
    %133 = arith.truncf %132 : vector<16x8xf32> to vector<16x8xbf16>
    %c24 = arith.constant 24 : index
    %c0_41 = arith.constant 0 : index
    %134 = vector.load %arg6[%c24, %c0_41] : memref<32x32xbf16, #tpu.memory_space<vmem>>, vector<8x32xbf16>
    %cst_42 = arith.constant dense<0.000000e+00> : vector<16x32xf32>
    %135 = tpu.matmul %133, %134, %cst_42 {dimension_numbers = #tpu.dot_dimension_numbers<[1], [0], [0], [1], [0, 0, 1, 1], [], []>} : vector<16x8xbf16>, vector<8x32xbf16>, vector<16x32xf32> -> vector<16x32xf32>
    %136 = arith.addf %112, %135 : vector<16x32xf32>
    %137 = arith.truncf %136 : vector<16x32xf32> to vector<16x32xbf16>
    %c0_43 = arith.constant 0 : index
    %c0_44 = arith.constant 0 : index
    %c0_45 = arith.constant 0 : index
    %138 = vector.load %arg8[%c0_43, %c0_44, %c0_45] : memref<1x16x32xbf16, #tpu.memory_space<vmem>>, vector<1x16x32xbf16>
    %139 = vector.shape_cast %138 : vector<1x16x32xbf16> to vector<16x32xbf16>
    %140 = vector.shape_cast %137 : vector<16x32xbf16> to vector<1x16x32xbf16>
    tpu.vector_store %arg8[%c0_43, %c0_44, %c0_45], %140 {strides = array<i32>} : memref<1x16x32xbf16, #tpu.memory_space<vmem>>, vector<1x16x32xbf16>,
    return
  }
  func.func @transform_0(%arg0: i32) -> (i32, i32, i32) {
    %c0_i32 = arith.constant 0 : i32
    %c0_i32_0 = arith.constant 0 : i32
    %c0_i32_1 = arith.constant 0 : i32
    return %arg0, %c0_i32, %c0_i32_0 : i32, i32, i32
  }
  func.func @transform_1(%arg0: i32) -> (i32, i32) {
    %c0_i32 = arith.constant 0 : i32
    %c0_i32_0 = arith.constant 0 : i32
    %c0_i32_1 = arith.constant 0 : i32
    return %c0_i32, %c0_i32_0 : i32, i32
  }
  func.func @transform_2(%arg0: i32) -> (i32, i32) {
    %c0_i32 = arith.constant 0 : i32
    %c0_i32_0 = arith.constant 0 : i32
    %c0_i32_1 = arith.constant 0 : i32
    return %c0_i32, %c0_i32_0 : i32, i32
  }
  func.func @transform_3(%arg0: i32) -> (i32, i32) {
    %c0_i32 = arith.constant 0 : i32
    %c0_i32_0 = arith.constant 0 : i32
    %c0_i32_1 = arith.constant 0 : i32
    return %c0_i32, %c0_i32_0 : i32, i32
  }
  func.func @transform_4(%arg0: i32) -> (i32, i32) {
    %c0_i32 = arith.constant 0 : i32
    %c0_i32_0 = arith.constant 0 : i32
    %c0_i32_1 = arith.constant 0 : i32
    return %c0_i32, %c0_i32_0 : i32, i32
  }
  func.func @transform_5(%arg0: i32) -> (i32, i32) {
    %c0_i32 = arith.constant 0 : i32
    %c0_i32_0 = arith.constant 0 : i32
    %c0_i32_1 = arith.constant 0 : i32
    return %c0_i32, %c0_i32_0 : i32, i32
  }
  func.func @transform_6(%arg0: i32) -> (i32, i32) {
    %c0_i32 = arith.constant 0 : i32
    %c0_i32_0 = arith.constant 0 : i32
    %c0_i32_1 = arith.constant 0 : i32
    return %c0_i32, %c0_i32_0 : i32, i32
  }
  func.func @transform_7(%arg0: i32) -> (i32, i32, i32) {
    %c0_i32 = arith.constant 0 : i32
    %c0_i32_0 = arith.constant 0 : i32
    %c0_i32_1 = arith.constant 0 : i32
    return %arg0, %c0_i32, %c0_i32_0 : i32, i32, i32
  }
}

module attributes {stable_mosaic.version = 11 : i64} {
  func.func @_self_attn_kernel(%arg0: i32, %arg1: memref<1x8x32xbf16, #tpu.memory_space<vmem>>, %arg2: memref<1x32xf32, #tpu.memory_space<vmem>>, %arg3: memref<1x32xf32, #tpu.memory_space<vmem>>, %arg4: memref<32x96xbf16, #tpu.memory_space<vmem>>, %arg5: memref<1x96xf32, #tpu.memory_space<vmem>>, %arg6: memref<32x32xbf16, #tpu.memory_space<vmem>>, %arg7: memref<1x32xf32, #tpu.memory_space<vmem>>, %arg8: memref<1x8x32xbf16, #tpu.memory_space<vmem>>) attributes {dimension_semantics = [#tpu.dimension_semantics<parallel>], iteration_bounds = array<i64: 2>, scalar_prefetch = 0 : i64, scratch_operands = 0 : i64, tpu.core_type = #tpu.core_type<tc>, window_params = [{transform_indices = @transform_0, window_bounds = array<i64: 1, 8, 32>}, {pipeline_mode = #tpu.pipeline_mode<synchronous>, transform_indices = @transform_1, window_bounds = array<i64: 1, 32>}, {pipeline_mode = #tpu.pipeline_mode<synchronous>, transform_indices = @transform_2, window_bounds = array<i64: 1, 32>}, {pipeline_mode = #tpu.pipeline_mode<synchronous>, transform_indices = @transform_3, window_bounds = array<i64: 32, 96>}, {pipeline_mode = #tpu.pipeline_mode<synchronous>, transform_indices = @transform_4, window_bounds = array<i64: 1, 96>}, {pipeline_mode = #tpu.pipeline_mode<synchronous>, transform_indices = @transform_5, window_bounds = array<i64: 32, 32>}, {pipeline_mode = #tpu.pipeline_mode<synchronous>, transform_indices = @transform_6, window_bounds = array<i64: 1, 32>}, {transform_indices = @transform_7, window_bounds = array<i64: 1, 8, 32>}]} {
    %c0 = arith.constant 0 : index
    %c0_0 = arith.constant 0 : index
    %c0_1 = arith.constant 0 : index
    %0 = vector.load %arg1[%c0, %c0_0, %c0_1] : memref<1x8x32xbf16, #tpu.memory_space<vmem>>, vector<1x8x32xbf16>
    %1 = vector.shape_cast %0 : vector<1x8x32xbf16> to vector<8x32xbf16>
    %2 = arith.extf %1 : vector<8x32xbf16> to vector<8x32xf32>
    %c0_2 = arith.constant 0 : index
    %c0_3 = arith.constant 0 : index
    %3 = vector.load %arg2[%c0_2, %c0_3] : memref<1x32xf32, #tpu.memory_space<vmem>>, vector<1x32xf32>
    %c0_4 = arith.constant 0 : index
    %c0_5 = arith.constant 0 : index
    %4 = vector.load %arg3[%c0_4, %c0_5] : memref<1x32xf32, #tpu.memory_space<vmem>>, vector<1x32xf32>
    %cst = arith.constant dense<0.000000e+00> : vector<8xf32>
    %5 = vector.multi_reduction <add>, %2, %cst [1] : vector<8x32xf32> to vector<8xf32>
    %6 = vector.shape_cast %5 : vector<8xf32> to vector<8x1xf32>
    %cst_6 = arith.constant 3.200000e+01 : f32
    %7 = vector.broadcast %cst_6 : f32 to vector<8x1xf32>
    %8 = arith.divf %6, %7 : vector<8x1xf32>
    %9 = vector.broadcast %8 : vector<8x1xf32> to vector<8x32xf32>
    %10 = arith.subf %2, %9 : vector<8x32xf32>
    %11 = arith.mulf %10, %10 : vector<8x32xf32>
    %cst_7 = arith.constant dense<0.000000e+00> : vector<8xf32>
    %12 = vector.multi_reduction <add>, %11, %cst_7 [1] : vector<8x32xf32> to vector<8xf32>
    %13 = vector.shape_cast %12 : vector<8xf32> to vector<8x1xf32>
    %cst_8 = arith.constant 3.200000e+01 : f32
    %14 = vector.broadcast %cst_8 : f32 to vector<8x1xf32>
    %15 = arith.divf %13, %14 : vector<8x1xf32>
    %16 = vector.broadcast %8 : vector<8x1xf32> to vector<8x32xf32>
    %17 = arith.subf %2, %16 : vector<8x32xf32>
    %cst_9 = arith.constant 9.99999974E-6 : f32
    %18 = vector.broadcast %cst_9 : f32 to vector<8x1xf32>
    %19 = arith.addf %15, %18 : vector<8x1xf32>
    %20 = math.rsqrt %19 : vector<8x1xf32>
    %21 = vector.broadcast %20 : vector<8x1xf32> to vector<8x32xf32>
    %22 = arith.mulf %17, %21 : vector<8x32xf32>
    %23 = vector.broadcast %3 : vector<1x32xf32> to vector<8x32xf32>
    %24 = arith.mulf %22, %23 : vector<8x32xf32>
    %25 = vector.broadcast %4 : vector<1x32xf32> to vector<8x32xf32>
    %26 = arith.addf %24, %25 : vector<8x32xf32>
    %27 = arith.truncf %26 : vector<8x32xf32> to vector<8x32xbf16>
    %c0_10 = arith.constant 0 : index
    %c0_11 = arith.constant 0 : index
    %28 = vector.load %arg4[%c0_10, %c0_11] : memref<32x96xbf16, #tpu.memory_space<vmem>>, vector<32x96xbf16>
    %cst_12 = arith.constant dense<0.000000e+00> : vector<8x96xf32>
    %29 = tpu.matmul %27, %28, %cst_12 {dimension_numbers = #tpu.dot_dimension_numbers<[1], [0], [0], [1], [0, 0, 1, 1], [], []>} : vector<8x32xbf16>, vector<32x96xbf16>, vector<8x96xf32> -> vector<8x96xf32>
    %c0_13 = arith.constant 0 : index
    %c0_14 = arith.constant 0 : index
    %30 = vector.load %arg5[%c0_13, %c0_14] : memref<1x96xf32, #tpu.memory_space<vmem>>, vector<1x96xf32>
    %31 = vector.broadcast %30 : vector<1x96xf32> to vector<8x96xf32>
    %32 = arith.addf %29, %31 : vector<8x96xf32>
    %33 = vector.extract_strided_slice %32 {offsets = [0, 0], sizes = [8, 32], strides = [1, 1]} : vector<8x96xf32> to vector<8x32xf32>
    %cst_15 = arith.constant 0.353553385 : f32
    %34 = vector.broadcast %cst_15 : f32 to vector<8x32xf32>
    %35 = arith.mulf %33, %34 : vector<8x32xf32>
    %36 = vector.extract_strided_slice %32 {offsets = [0, 32], sizes = [8, 32], strides = [1, 1]} : vector<8x96xf32> to vector<8x32xf32>
    %37 = vector.extract_strided_slice %32 {offsets = [0, 64], sizes = [8, 32], strides = [1, 1]} : vector<8x96xf32> to vector<8x32xf32>
    %c0_16 = arith.constant 0 : index
    %c0_17 = arith.constant 0 : index
    %38 = vector.load %arg7[%c0_16, %c0_17] : memref<1x32xf32, #tpu.memory_space<vmem>>, vector<1x32xf32>
    %39 = vector.broadcast %38 : vector<1x32xf32> to vector<8x32xf32>
    %40 = arith.addf %2, %39 : vector<8x32xf32>
    %41 = vector.extract_strided_slice %35 {offsets = [0, 0], sizes = [8, 8], strides = [1, 1]} : vector<8x32xf32> to vector<8x8xf32>
    %42 = arith.truncf %41 : vector<8x8xf32> to vector<8x8xbf16>
    %43 = vector.extract_strided_slice %36 {offsets = [0, 0], sizes = [8, 8], strides = [1, 1]} : vector<8x32xf32> to vector<8x8xf32>
    %44 = arith.truncf %43 : vector<8x8xf32> to vector<8x8xbf16>
    %45 = vector.extract_strided_slice %37 {offsets = [0, 0], sizes = [8, 8], strides = [1, 1]} : vector<8x32xf32> to vector<8x8xf32>
    %46 = arith.truncf %45 : vector<8x8xf32> to vector<8x8xbf16>
    %47 = tpu.transpose %44, [1, 0] : vector<8x8xbf16> -> vector<8x8xbf16>
    %cst_18 = arith.constant dense<0.000000e+00> : vector<8x8xf32>
    %48 = tpu.matmul %42, %47, %cst_18 {dimension_numbers = #tpu.dot_dimension_numbers<[1], [0], [0], [1], [0, 0, 1, 1], [], []>} : vector<8x8xbf16>, vector<8x8xbf16>, vector<8x8xf32> -> vector<8x8xf32>
    %cst_19 = arith.constant dense<0xFF800000> : vector<8xf32>
    %49 = vector.multi_reduction <maximumf>, %48, %cst_19 [1] : vector<8x8xf32> to vector<8xf32>
    %50 = vector.shape_cast %49 : vector<8xf32> to vector<8x1xf32>
    %51 = vector.broadcast %50 : vector<8x1xf32> to vector<8x8xf32>
    %52 = arith.subf %48, %51 : vector<8x8xf32>
    %53 = math.exp %52 : vector<8x8xf32>
    %cst_20 = arith.constant dense<0.000000e+00> : vector<8xf32>
    %54 = vector.multi_reduction <add>, %53, %cst_20 [1] : vector<8x8xf32> to vector<8xf32>
    %55 = vector.shape_cast %54 : vector<8xf32> to vector<8x1xf32>
    %56 = tpu.reciprocal %55 {approx = true} : vector<8x1xf32> -> vector<8x1xf32>
    %57 = vector.broadcast %56 : vector<8x1xf32> to vector<8x8xf32>
    %58 = arith.mulf %53, %57 : vector<8x8xf32>
    %59 = arith.truncf %58 : vector<8x8xf32> to vector<8x8xbf16>
    %cst_21 = arith.constant dense<0.000000e+00> : vector<8x8xf32>
    %60 = tpu.matmul %59, %46, %cst_21 {dimension_numbers = #tpu.dot_dimension_numbers<[1], [0], [0], [1], [0, 0, 1, 1], [], []>} : vector<8x8xbf16>, vector<8x8xbf16>, vector<8x8xf32> -> vector<8x8xf32>
    %61 = arith.truncf %60 : vector<8x8xf32> to vector<8x8xbf16>
    %c0_22 = arith.constant 0 : index
    %c0_23 = arith.constant 0 : index
    %62 = vector.load %arg6[%c0_22, %c0_23] : memref<32x32xbf16, #tpu.memory_space<vmem>>, vector<8x32xbf16>
    %cst_24 = arith.constant dense<0.000000e+00> : vector<8x32xf32>
    %63 = tpu.matmul %61, %62, %cst_24 {dimension_numbers = #tpu.dot_dimension_numbers<[1], [0], [0], [1], [0, 0, 1, 1], [], []>} : vector<8x8xbf16>, vector<8x32xbf16>, vector<8x32xf32> -> vector<8x32xf32>
    %64 = arith.addf %40, %63 : vector<8x32xf32>
    %65 = vector.extract_strided_slice %35 {offsets = [0, 8], sizes = [8, 8], strides = [1, 1]} : vector<8x32xf32> to vector<8x8xf32>
    %66 = arith.truncf %65 : vector<8x8xf32> to vector<8x8xbf16>
    %67 = vector.extract_strided_slice %36 {offsets = [0, 8], sizes = [8, 8], strides = [1, 1]} : vector<8x32xf32> to vector<8x8xf32>
    %68 = arith.truncf %67 : vector<8x8xf32> to vector<8x8xbf16>
    %69 = vector.extract_strided_slice %37 {offsets = [0, 8], sizes = [8, 8], strides = [1, 1]} : vector<8x32xf32> to vector<8x8xf32>
    %70 = arith.truncf %69 : vector<8x8xf32> to vector<8x8xbf16>
    %71 = tpu.transpose %68, [1, 0] : vector<8x8xbf16> -> vector<8x8xbf16>
    %cst_25 = arith.constant dense<0.000000e+00> : vector<8x8xf32>
    %72 = tpu.matmul %66, %71, %cst_25 {dimension_numbers = #tpu.dot_dimension_numbers<[1], [0], [0], [1], [0, 0, 1, 1], [], []>} : vector<8x8xbf16>, vector<8x8xbf16>, vector<8x8xf32> -> vector<8x8xf32>
    %cst_26 = arith.constant dense<0xFF800000> : vector<8xf32>
    %73 = vector.multi_reduction <maximumf>, %72, %cst_26 [1] : vector<8x8xf32> to vector<8xf32>
    %74 = vector.shape_cast %73 : vector<8xf32> to vector<8x1xf32>
    %75 = vector.broadcast %74 : vector<8x1xf32> to vector<8x8xf32>
    %76 = arith.subf %72, %75 : vector<8x8xf32>
    %77 = math.exp %76 : vector<8x8xf32>
    %cst_27 = arith.constant dense<0.000000e+00> : vector<8xf32>
    %78 = vector.multi_reduction <add>, %77, %cst_27 [1] : vector<8x8xf32> to vector<8xf32>
    %79 = vector.shape_cast %78 : vector<8xf32> to vector<8x1xf32>
    %80 = tpu.reciprocal %79 {approx = true} : vector<8x1xf32> -> vector<8x1xf32>
    %81 = vector.broadcast %80 : vector<8x1xf32> to vector<8x8xf32>
    %82 = arith.mulf %77, %81 : vector<8x8xf32>
    %83 = arith.truncf %82 : vector<8x8xf32> to vector<8x8xbf16>
    %cst_28 = arith.constant dense<0.000000e+00> : vector<8x8xf32>
    %84 = tpu.matmul %83, %70, %cst_28 {dimension_numbers = #tpu.dot_dimension_numbers<[1], [0], [0], [1], [0, 0, 1, 1], [], []>} : vector<8x8xbf16>, vector<8x8xbf16>, vector<8x8xf32> -> vector<8x8xf32>
    %85 = arith.truncf %84 : vector<8x8xf32> to vector<8x8xbf16>
    %c8 = arith.constant 8 : index
    %c0_29 = arith.constant 0 : index
    %86 = vector.load %arg6[%c8, %c0_29] : memref<32x32xbf16, #tpu.memory_space<vmem>>, vector<8x32xbf16>
    %cst_30 = arith.constant dense<0.000000e+00> : vector<8x32xf32>
    %87 = tpu.matmul %85, %86, %cst_30 {dimension_numbers = #tpu.dot_dimension_numbers<[1], [0], [0], [1], [0, 0, 1, 1], [], []>} : vector<8x8xbf16>, vector<8x32xbf16>, vector<8x32xf32> -> vector<8x32xf32>
    %88 = arith.addf %64, %87 : vector<8x32xf32>
    %89 = vector.extract_strided_slice %35 {offsets = [0, 16], sizes = [8, 8], strides = [1, 1]} : vector<8x32xf32> to vector<8x8xf32>
    %90 = arith.truncf %89 : vector<8x8xf32> to vector<8x8xbf16>
    %91 = vector.extract_strided_slice %36 {offsets = [0, 16], sizes = [8, 8], strides = [1, 1]} : vector<8x32xf32> to vector<8x8xf32>
    %92 = arith.truncf %91 : vector<8x8xf32> to vector<8x8xbf16>
    %93 = vector.extract_strided_slice %37 {offsets = [0, 16], sizes = [8, 8], strides = [1, 1]} : vector<8x32xf32> to vector<8x8xf32>
    %94 = arith.truncf %93 : vector<8x8xf32> to vector<8x8xbf16>
    %95 = tpu.transpose %92, [1, 0] : vector<8x8xbf16> -> vector<8x8xbf16>
    %cst_31 = arith.constant dense<0.000000e+00> : vector<8x8xf32>
    %96 = tpu.matmul %90, %95, %cst_31 {dimension_numbers = #tpu.dot_dimension_numbers<[1], [0], [0], [1], [0, 0, 1, 1], [], []>} : vector<8x8xbf16>, vector<8x8xbf16>, vector<8x8xf32> -> vector<8x8xf32>
    %cst_32 = arith.constant dense<0xFF800000> : vector<8xf32>
    %97 = vector.multi_reduction <maximumf>, %96, %cst_32 [1] : vector<8x8xf32> to vector<8xf32>
    %98 = vector.shape_cast %97 : vector<8xf32> to vector<8x1xf32>
    %99 = vector.broadcast %98 : vector<8x1xf32> to vector<8x8xf32>
    %100 = arith.subf %96, %99 : vector<8x8xf32>
    %101 = math.exp %100 : vector<8x8xf32>
    %cst_33 = arith.constant dense<0.000000e+00> : vector<8xf32>
    %102 = vector.multi_reduction <add>, %101, %cst_33 [1] : vector<8x8xf32> to vector<8xf32>
    %103 = vector.shape_cast %102 : vector<8xf32> to vector<8x1xf32>
    %104 = tpu.reciprocal %103 {approx = true} : vector<8x1xf32> -> vector<8x1xf32>
    %105 = vector.broadcast %104 : vector<8x1xf32> to vector<8x8xf32>
    %106 = arith.mulf %101, %105 : vector<8x8xf32>
    %107 = arith.truncf %106 : vector<8x8xf32> to vector<8x8xbf16>
    %cst_34 = arith.constant dense<0.000000e+00> : vector<8x8xf32>
    %108 = tpu.matmul %107, %94, %cst_34 {dimension_numbers = #tpu.dot_dimension_numbers<[1], [0], [0], [1], [0, 0, 1, 1], [], []>} : vector<8x8xbf16>, vector<8x8xbf16>, vector<8x8xf32> -> vector<8x8xf32>
    %109 = arith.truncf %108 : vector<8x8xf32> to vector<8x8xbf16>
    %c16 = arith.constant 16 : index
    %c0_35 = arith.constant 0 : index
    %110 = vector.load %arg6[%c16, %c0_35] : memref<32x32xbf16, #tpu.memory_space<vmem>>, vector<8x32xbf16>
    %cst_36 = arith.constant dense<0.000000e+00> : vector<8x32xf32>
    %111 = tpu.matmul %109, %110, %cst_36 {dimension_numbers = #tpu.dot_dimension_numbers<[1], [0], [0], [1], [0, 0, 1, 1], [], []>} : vector<8x8xbf16>, vector<8x32xbf16>, vector<8x32xf32> -> vector<8x32xf32>
    %112 = arith.addf %88, %111 : vector<8x32xf32>
    %113 = vector.extract_strided_slice %35 {offsets = [0, 24], sizes = [8, 8], strides = [1, 1]} : vector<8x32xf32> to vector<8x8xf32>
    %114 = arith.truncf %113 : vector<8x8xf32> to vector<8x8xbf16>
    %115 = vector.extract_strided_slice %36 {offsets = [0, 24], sizes = [8, 8], strides = [1, 1]} : vector<8x32xf32> to vector<8x8xf32>
    %116 = arith.truncf %115 : vector<8x8xf32> to vector<8x8xbf16>
    %117 = vector.extract_strided_slice %37 {offsets = [0, 24], sizes = [8, 8], strides = [1, 1]} : vector<8x32xf32> to vector<8x8xf32>
    %118 = arith.truncf %117 : vector<8x8xf32> to vector<8x8xbf16>
    %119 = tpu.transpose %116, [1, 0] : vector<8x8xbf16> -> vector<8x8xbf16>
    %cst_37 = arith.constant dense<0.000000e+00> : vector<8x8xf32>
    %120 = tpu.matmul %114, %119, %cst_37 {dimension_numbers = #tpu.dot_dimension_numbers<[1], [0], [0], [1], [0, 0, 1, 1], [], []>} : vector<8x8xbf16>, vector<8x8xbf16>, vector<8x8xf32> -> vector<8x8xf32>
    %cst_38 = arith.constant dense<0xFF800000> : vector<8xf32>
    %121 = vector.multi_reduction <maximumf>, %120, %cst_38 [1] : vector<8x8xf32> to vector<8xf32>
    %122 = vector.shape_cast %121 : vector<8xf32> to vector<8x1xf32>
    %123 = vector.broadcast %122 : vector<8x1xf32> to vector<8x8xf32>
    %124 = arith.subf %120, %123 : vector<8x8xf32>
    %125 = math.exp %124 : vector<8x8xf32>
    %cst_39 = arith.constant dense<0.000000e+00> : vector<8xf32>
    %126 = vector.multi_reduction <add>, %125, %cst_39 [1] : vector<8x8xf32> to vector<8xf32>
    %127 = vector.shape_cast %126 : vector<8xf32> to vector<8x1xf32>
    %128 = tpu.reciprocal %127 {approx = true} : vector<8x1xf32> -> vector<8x1xf32>
    %129 = vector.broadcast %128 : vector<8x1xf32> to vector<8x8xf32>
    %130 = arith.mulf %125, %129 : vector<8x8xf32>
    %131 = arith.truncf %130 : vector<8x8xf32> to vector<8x8xbf16>
    %cst_40 = arith.constant dense<0.000000e+00> : vector<8x8xf32>
    %132 = tpu.matmul %131, %118, %cst_40 {dimension_numbers = #tpu.dot_dimension_numbers<[1], [0], [0], [1], [0, 0, 1, 1], [], []>} : vector<8x8xbf16>, vector<8x8xbf16>, vector<8x8xf32> -> vector<8x8xf32>
    %133 = arith.truncf %132 : vector<8x8xf32> to vector<8x8xbf16>
    %c24 = arith.constant 24 : index
    %c0_41 = arith.constant 0 : index
    %134 = vector.load %arg6[%c24, %c0_41] : memref<32x32xbf16, #tpu.memory_space<vmem>>, vector<8x32xbf16>
    %cst_42 = arith.constant dense<0.000000e+00> : vector<8x32xf32>
    %135 = tpu.matmul %133, %134, %cst_42 {dimension_numbers = #tpu.dot_dimension_numbers<[1], [0], [0], [1], [0, 0, 1, 1], [], []>} : vector<8x8xbf16>, vector<8x32xbf16>, vector<8x32xf32> -> vector<8x32xf32>
    %136 = arith.addf %112, %135 : vector<8x32xf32>
    %137 = arith.truncf %136 : vector<8x32xf32> to vector<8x32xbf16>
    %c0_43 = arith.constant 0 : index
    %c0_44 = arith.constant 0 : index
    %c0_45 = arith.constant 0 : index
    %138 = vector.load %arg8[%c0_43, %c0_44, %c0_45] : memref<1x8x32xbf16, #tpu.memory_space<vmem>>, vector<1x8x32xbf16>
    %139 = vector.shape_cast %138 : vector<1x8x32xbf16> to vector<8x32xbf16>
    %140 = vector.shape_cast %137 : vector<8x32xbf16> to vector<1x8x32xbf16>
    tpu.vector_store %arg8[%c0_43, %c0_44, %c0_45], %140 {strides = array<i32>} : memref<1x8x32xbf16, #tpu.memory_space<vmem>>, vector<1x8x32xbf16>,
    return
  }
  func.func @transform_0(%arg0: i32) -> (i32, i32, i32) {
    %c0_i32 = arith.constant 0 : i32
    %c0_i32_0 = arith.constant 0 : i32
    %c0_i32_1 = arith.constant 0 : i32
    return %arg0, %c0_i32, %c0_i32_0 : i32, i32, i32
  }
  func.func @transform_1(%arg0: i32) -> (i32, i32) {
    %c0_i32 = arith.constant 0 : i32
    %c0_i32_0 = arith.constant 0 : i32
    %c0_i32_1 = arith.constant 0 : i32
    return %c0_i32, %c0_i32_0 : i32, i32
  }
  func.func @transform_2(%arg0: i32) -> (i32, i32) {
    %c0_i32 = arith.constant 0 : i32
    %c0_i32_0 = arith.constant 0 : i32
    %c0_i32_1 = arith.constant 0 : i32
    return %c0_i32, %c0_i32_0 : i32, i32
  }
  func.func @transform_3(%arg0: i32) -> (i32, i32) {
    %c0_i32 = arith.constant 0 : i32
    %c0_i32_0 = arith.constant 0 : i32
    %c0_i32_1 = arith.constant 0 : i32
    return %c0_i32, %c0_i32_0 : i32, i32
  }
  func.func @transform_4(%arg0: i32) -> (i32, i32) {
    %c0_i32 = arith.constant 0 : i32
    %c0_i32_0 = arith.constant 0 : i32
    %c0_i32_1 = arith.constant 0 : i32
    return %c0_i32, %c0_i32_0 : i32, i32
  }
  func.func @transform_5(%arg0: i32) -> (i32, i32) {
    %c0_i32 = arith.constant 0 : i32
    %c0_i32_0 = arith.constant 0 : i32
    %c0_i32_1 = arith.constant 0 : i32
    return %c0_i32, %c0_i32_0 : i32, i32
  }
  func.func @transform_6(%arg0: i32) -> (i32, i32) {
    %c0_i32 = arith.constant 0 : i32
    %c0_i32_0 = arith.constant 0 : i32
    %c0_i32_1 = arith.constant 0 : i32
    return %c0_i32, %c0_i32_0 : i32, i32
  }
  func.func @transform_7(%arg0: i32) -> (i32, i32, i32) {
    %c0_i32 = arith.constant 0 : i32
    %c0_i32_0 = arith.constant 0 : i32
    %c0_i32_1 = arith.constant 0 : i32
    return %arg0, %c0_i32, %c0_i32_0 : i32, i32, i32
  }
}

module attributes {stable_mosaic.version = 11 : i64} {
  func.func @_cross_attn_kernel(%arg0: i32, %arg1: memref<1x8x32xbf16, #tpu.memory_space<vmem>>, %arg2: memref<1x16x32xbf16, #tpu.memory_space<vmem>>, %arg3: memref<1x16x32xbf16, #tpu.memory_space<vmem>>, %arg4: memref<1x32xf32, #tpu.memory_space<vmem>>, %arg5: memref<1x32xf32, #tpu.memory_space<vmem>>, %arg6: memref<32x32xbf16, #tpu.memory_space<vmem>>, %arg7: memref<1x32xf32, #tpu.memory_space<vmem>>, %arg8: memref<32x32xbf16, #tpu.memory_space<vmem>>, %arg9: memref<1x32xf32, #tpu.memory_space<vmem>>, %arg10: memref<32x32xbf16, #tpu.memory_space<vmem>>, %arg11: memref<1x32xf32, #tpu.memory_space<vmem>>, %arg12: memref<32x32xbf16, #tpu.memory_space<vmem>>, %arg13: memref<1x32xf32, #tpu.memory_space<vmem>>, %arg14: memref<1x8x32xbf16, #tpu.memory_space<vmem>>) attributes {dimension_semantics = [#tpu.dimension_semantics<parallel>], iteration_bounds = array<i64: 2>, scalar_prefetch = 0 : i64, scratch_operands = 0 : i64, tpu.core_type = #tpu.core_type<tc>, window_params = [{transform_indices = @transform_0, window_bounds = array<i64: 1, 8, 32>}, {transform_indices = @transform_1, window_bounds = array<i64: 1, 16, 32>}, {transform_indices = @transform_2, window_bounds = array<i64: 1, 16, 32>}, {pipeline_mode = #tpu.pipeline_mode<synchronous>, transform_indices = @transform_3, window_bounds = array<i64: 1, 32>}, {pipeline_mode = #tpu.pipeline_mode<synchronous>, transform_indices = @transform_4, window_bounds = array<i64: 1, 32>}, {pipeline_mode = #tpu.pipeline_mode<synchronous>, transform_indices = @transform_5, window_bounds = array<i64: 32, 32>}, {pipeline_mode = #tpu.pipeline_mode<synchronous>, transform_indices = @transform_6, window_bounds = array<i64: 1, 32>}, {pipeline_mode = #tpu.pipeline_mode<synchronous>, transform_indices = @transform_7, window_bounds = array<i64: 32, 32>}, {pipeline_mode = #tpu.pipeline_mode<synchronous>, transform_indices = @transform_8, window_bounds = array<i64: 1, 32>}, {pipeline_mode = #tpu.pipeline_mode<synchronous>, transform_indices = @transform_9, window_bounds = array<i64: 32, 32>}, {pipeline_mode = #tpu.pipeline_mode<synchronous>, transform_indices = @transform_10, window_bounds = array<i64: 1, 32>}, {pipeline_mode = #tpu.pipeline_mode<synchronous>, transform_indices = @transform_11, window_bounds = array<i64: 32, 32>}, {pipeline_mode = #tpu.pipeline_mode<synchronous>, transform_indices = @transform_12, window_bounds = array<i64: 1, 32>}, {transform_indices = @transform_13, window_bounds = array<i64: 1, 8, 32>}]} {
    %c0 = arith.constant 0 : index
    %c0_0 = arith.constant 0 : index
    %c0_1 = arith.constant 0 : index
    %0 = vector.load %arg1[%c0, %c0_0, %c0_1] : memref<1x8x32xbf16, #tpu.memory_space<vmem>>, vector<1x8x32xbf16>
    %1 = vector.shape_cast %0 : vector<1x8x32xbf16> to vector<8x32xbf16>
    %2 = arith.extf %1 : vector<8x32xbf16> to vector<8x32xf32>
    %c0_2 = arith.constant 0 : index
    %c0_3 = arith.constant 0 : index
    %c0_4 = arith.constant 0 : index
    %3 = vector.load %arg2[%c0_2, %c0_3, %c0_4] : memref<1x16x32xbf16, #tpu.memory_space<vmem>>, vector<1x16x32xbf16>
    %4 = vector.shape_cast %3 : vector<1x16x32xbf16> to vector<16x32xbf16>
    %5 = arith.extf %4 : vector<16x32xbf16> to vector<16x32xf32>
    %c0_5 = arith.constant 0 : index
    %c0_6 = arith.constant 0 : index
    %c0_7 = arith.constant 0 : index
    %6 = vector.load %arg3[%c0_5, %c0_6, %c0_7] : memref<1x16x32xbf16, #tpu.memory_space<vmem>>, vector<1x16x32xbf16>
    %7 = vector.shape_cast %6 : vector<1x16x32xbf16> to vector<16x32xbf16>
    %8 = arith.extf %7 : vector<16x32xbf16> to vector<16x32xf32>
    %c0_8 = arith.constant 0 : index
    %c0_9 = arith.constant 0 : index
    %9 = vector.load %arg4[%c0_8, %c0_9] : memref<1x32xf32, #tpu.memory_space<vmem>>, vector<1x32xf32>
    %c0_10 = arith.constant 0 : index
    %c0_11 = arith.constant 0 : index
    %10 = vector.load %arg5[%c0_10, %c0_11] : memref<1x32xf32, #tpu.memory_space<vmem>>, vector<1x32xf32>
    %cst = arith.constant dense<0.000000e+00> : vector<8xf32>
    %11 = vector.multi_reduction <add>, %2, %cst [1] : vector<8x32xf32> to vector<8xf32>
    %12 = vector.shape_cast %11 : vector<8xf32> to vector<8x1xf32>
    %cst_12 = arith.constant 3.200000e+01 : f32
    %13 = vector.broadcast %cst_12 : f32 to vector<8x1xf32>
    %14 = arith.divf %12, %13 : vector<8x1xf32>
    %15 = vector.broadcast %14 : vector<8x1xf32> to vector<8x32xf32>
    %16 = arith.subf %2, %15 : vector<8x32xf32>
    %17 = arith.mulf %16, %16 : vector<8x32xf32>
    %cst_13 = arith.constant dense<0.000000e+00> : vector<8xf32>
    %18 = vector.multi_reduction <add>, %17, %cst_13 [1] : vector<8x32xf32> to vector<8xf32>
    %19 = vector.shape_cast %18 : vector<8xf32> to vector<8x1xf32>
    %cst_14 = arith.constant 3.200000e+01 : f32
    %20 = vector.broadcast %cst_14 : f32 to vector<8x1xf32>
    %21 = arith.divf %19, %20 : vector<8x1xf32>
    %22 = vector.broadcast %14 : vector<8x1xf32> to vector<8x32xf32>
    %23 = arith.subf %2, %22 : vector<8x32xf32>
    %cst_15 = arith.constant 9.99999974E-6 : f32
    %24 = vector.broadcast %cst_15 : f32 to vector<8x1xf32>
    %25 = arith.addf %21, %24 : vector<8x1xf32>
    %26 = math.rsqrt %25 : vector<8x1xf32>
    %27 = vector.broadcast %26 : vector<8x1xf32> to vector<8x32xf32>
    %28 = arith.mulf %23, %27 : vector<8x32xf32>
    %29 = vector.broadcast %9 : vector<1x32xf32> to vector<8x32xf32>
    %30 = arith.mulf %28, %29 : vector<8x32xf32>
    %31 = vector.broadcast %10 : vector<1x32xf32> to vector<8x32xf32>
    %32 = arith.addf %30, %31 : vector<8x32xf32>
    %cst_16 = arith.constant dense<0.000000e+00> : vector<16xf32>
    %33 = vector.multi_reduction <add>, %5, %cst_16 [1] : vector<16x32xf32> to vector<16xf32>
    %34 = vector.shape_cast %33 : vector<16xf32> to vector<16x1xf32>
    %cst_17 = arith.constant 3.200000e+01 : f32
    %35 = vector.broadcast %cst_17 : f32 to vector<16x1xf32>
    %36 = arith.divf %34, %35 : vector<16x1xf32>
    %37 = vector.broadcast %36 : vector<16x1xf32> to vector<16x32xf32>
    %38 = arith.subf %5, %37 : vector<16x32xf32>
    %39 = arith.mulf %38, %38 : vector<16x32xf32>
    %cst_18 = arith.constant dense<0.000000e+00> : vector<16xf32>
    %40 = vector.multi_reduction <add>, %39, %cst_18 [1] : vector<16x32xf32> to vector<16xf32>
    %41 = vector.shape_cast %40 : vector<16xf32> to vector<16x1xf32>
    %cst_19 = arith.constant 3.200000e+01 : f32
    %42 = vector.broadcast %cst_19 : f32 to vector<16x1xf32>
    %43 = arith.divf %41, %42 : vector<16x1xf32>
    %44 = vector.broadcast %36 : vector<16x1xf32> to vector<16x32xf32>
    %45 = arith.subf %5, %44 : vector<16x32xf32>
    %cst_20 = arith.constant 9.99999974E-6 : f32
    %46 = vector.broadcast %cst_20 : f32 to vector<16x1xf32>
    %47 = arith.addf %43, %46 : vector<16x1xf32>
    %48 = math.rsqrt %47 : vector<16x1xf32>
    %49 = vector.broadcast %48 : vector<16x1xf32> to vector<16x32xf32>
    %50 = arith.mulf %45, %49 : vector<16x32xf32>
    %51 = vector.broadcast %9 : vector<1x32xf32> to vector<16x32xf32>
    %52 = arith.mulf %50, %51 : vector<16x32xf32>
    %53 = vector.broadcast %10 : vector<1x32xf32> to vector<16x32xf32>
    %54 = arith.addf %52, %53 : vector<16x32xf32>
    %cst_21 = arith.constant dense<0.000000e+00> : vector<16xf32>
    %55 = vector.multi_reduction <add>, %8, %cst_21 [1] : vector<16x32xf32> to vector<16xf32>
    %56 = vector.shape_cast %55 : vector<16xf32> to vector<16x1xf32>
    %cst_22 = arith.constant 3.200000e+01 : f32
    %57 = vector.broadcast %cst_22 : f32 to vector<16x1xf32>
    %58 = arith.divf %56, %57 : vector<16x1xf32>
    %59 = vector.broadcast %58 : vector<16x1xf32> to vector<16x32xf32>
    %60 = arith.subf %8, %59 : vector<16x32xf32>
    %61 = arith.mulf %60, %60 : vector<16x32xf32>
    %cst_23 = arith.constant dense<0.000000e+00> : vector<16xf32>
    %62 = vector.multi_reduction <add>, %61, %cst_23 [1] : vector<16x32xf32> to vector<16xf32>
    %63 = vector.shape_cast %62 : vector<16xf32> to vector<16x1xf32>
    %cst_24 = arith.constant 3.200000e+01 : f32
    %64 = vector.broadcast %cst_24 : f32 to vector<16x1xf32>
    %65 = arith.divf %63, %64 : vector<16x1xf32>
    %66 = vector.broadcast %58 : vector<16x1xf32> to vector<16x32xf32>
    %67 = arith.subf %8, %66 : vector<16x32xf32>
    %cst_25 = arith.constant 9.99999974E-6 : f32
    %68 = vector.broadcast %cst_25 : f32 to vector<16x1xf32>
    %69 = arith.addf %65, %68 : vector<16x1xf32>
    %70 = math.rsqrt %69 : vector<16x1xf32>
    %71 = vector.broadcast %70 : vector<16x1xf32> to vector<16x32xf32>
    %72 = arith.mulf %67, %71 : vector<16x32xf32>
    %73 = vector.broadcast %9 : vector<1x32xf32> to vector<16x32xf32>
    %74 = arith.mulf %72, %73 : vector<16x32xf32>
    %75 = vector.broadcast %10 : vector<1x32xf32> to vector<16x32xf32>
    %76 = arith.addf %74, %75 : vector<16x32xf32>
    %77 = arith.truncf %32 : vector<8x32xf32> to vector<8x32xbf16>
    %c0_26 = arith.constant 0 : index
    %c0_27 = arith.constant 0 : index
    %78 = vector.load %arg6[%c0_26, %c0_27] : memref<32x32xbf16, #tpu.memory_space<vmem>>, vector<32x32xbf16>
    %cst_28 = arith.constant dense<0.000000e+00> : vector<8x32xf32>
    %79 = tpu.matmul %77, %78, %cst_28 {dimension_numbers = #tpu.dot_dimension_numbers<[1], [0], [0], [1], [0, 0, 1, 1], [], []>} : vector<8x32xbf16>, vector<32x32xbf16>, vector<8x32xf32> -> vector<8x32xf32>
    %c0_29 = arith.constant 0 : index
    %c0_30 = arith.constant 0 : index
    %80 = vector.load %arg7[%c0_29, %c0_30] : memref<1x32xf32, #tpu.memory_space<vmem>>, vector<1x32xf32>
    %81 = vector.broadcast %80 : vector<1x32xf32> to vector<8x32xf32>
    %82 = arith.addf %79, %81 : vector<8x32xf32>
    %cst_31 = arith.constant 0.353553385 : f32
    %83 = vector.broadcast %cst_31 : f32 to vector<8x32xf32>
    %84 = arith.mulf %82, %83 : vector<8x32xf32>
    %85 = arith.truncf %54 : vector<16x32xf32> to vector<16x32xbf16>
    %c0_32 = arith.constant 0 : index
    %c0_33 = arith.constant 0 : index
    %86 = vector.load %arg8[%c0_32, %c0_33] : memref<32x32xbf16, #tpu.memory_space<vmem>>, vector<32x32xbf16>
    %cst_34 = arith.constant dense<0.000000e+00> : vector<16x32xf32>
    %87 = tpu.matmul %85, %86, %cst_34 {dimension_numbers = #tpu.dot_dimension_numbers<[1], [0], [0], [1], [0, 0, 1, 1], [], []>} : vector<16x32xbf16>, vector<32x32xbf16>, vector<16x32xf32> -> vector<16x32xf32>
    %c0_35 = arith.constant 0 : index
    %c0_36 = arith.constant 0 : index
    %88 = vector.load %arg9[%c0_35, %c0_36] : memref<1x32xf32, #tpu.memory_space<vmem>>, vector<1x32xf32>
    %89 = vector.broadcast %88 : vector<1x32xf32> to vector<16x32xf32>
    %90 = arith.addf %87, %89 : vector<16x32xf32>
    %91 = arith.truncf %76 : vector<16x32xf32> to vector<16x32xbf16>
    %c0_37 = arith.constant 0 : index
    %c0_38 = arith.constant 0 : index
    %92 = vector.load %arg10[%c0_37, %c0_38] : memref<32x32xbf16, #tpu.memory_space<vmem>>, vector<32x32xbf16>
    %cst_39 = arith.constant dense<0.000000e+00> : vector<16x32xf32>
    %93 = tpu.matmul %91, %92, %cst_39 {dimension_numbers = #tpu.dot_dimension_numbers<[1], [0], [0], [1], [0, 0, 1, 1], [], []>} : vector<16x32xbf16>, vector<32x32xbf16>, vector<16x32xf32> -> vector<16x32xf32>
    %c0_40 = arith.constant 0 : index
    %c0_41 = arith.constant 0 : index
    %94 = vector.load %arg11[%c0_40, %c0_41] : memref<1x32xf32, #tpu.memory_space<vmem>>, vector<1x32xf32>
    %95 = vector.broadcast %94 : vector<1x32xf32> to vector<16x32xf32>
    %96 = arith.addf %93, %95 : vector<16x32xf32>
    %c0_42 = arith.constant 0 : index
    %c0_43 = arith.constant 0 : index
    %97 = vector.load %arg13[%c0_42, %c0_43] : memref<1x32xf32, #tpu.memory_space<vmem>>, vector<1x32xf32>
    %98 = vector.broadcast %97 : vector<1x32xf32> to vector<8x32xf32>
    %99 = arith.addf %2, %98 : vector<8x32xf32>
    %100 = vector.extract_strided_slice %84 {offsets = [0, 0], sizes = [8, 8], strides = [1, 1]} : vector<8x32xf32> to vector<8x8xf32>
    %101 = arith.truncf %100 : vector<8x8xf32> to vector<8x8xbf16>
    %102 = vector.extract_strided_slice %90 {offsets = [0, 0], sizes = [16, 8], strides = [1, 1]} : vector<16x32xf32> to vector<16x8xf32>
    %103 = arith.truncf %102 : vector<16x8xf32> to vector<16x8xbf16>
    %104 = vector.extract_strided_slice %96 {offsets = [0, 0], sizes = [16, 8], strides = [1, 1]} : vector<16x32xf32> to vector<16x8xf32>
    %105 = arith.truncf %104 : vector<16x8xf32> to vector<16x8xbf16>
    %106 = tpu.transpose %103, [1, 0] : vector<16x8xbf16> -> vector<8x16xbf16>
    %cst_44 = arith.constant dense<0.000000e+00> : vector<8x16xf32>
    %107 = tpu.matmul %101, %106, %cst_44 {dimension_numbers = #tpu.dot_dimension_numbers<[1], [0], [0], [1], [0, 0, 1, 1], [], []>} : vector<8x8xbf16>, vector<8x16xbf16>, vector<8x16xf32> -> vector<8x16xf32>
    %cst_45 = arith.constant dense<0xFF800000> : vector<8xf32>
    %108 = vector.multi_reduction <maximumf>, %107, %cst_45 [1] : vector<8x16xf32> to vector<8xf32>
    %109 = vector.shape_cast %108 : vector<8xf32> to vector<8x1xf32>
    %110 = vector.broadcast %109 : vector<8x1xf32> to vector<8x16xf32>
    %111 = arith.subf %107, %110 : vector<8x16xf32>
    %112 = math.exp %111 : vector<8x16xf32>
    %cst_46 = arith.constant dense<0.000000e+00> : vector<8xf32>
    %113 = vector.multi_reduction <add>, %112, %cst_46 [1] : vector<8x16xf32> to vector<8xf32>
    %114 = vector.shape_cast %113 : vector<8xf32> to vector<8x1xf32>
    %115 = tpu.reciprocal %114 {approx = true} : vector<8x1xf32> -> vector<8x1xf32>
    %116 = vector.broadcast %115 : vector<8x1xf32> to vector<8x16xf32>
    %117 = arith.mulf %112, %116 : vector<8x16xf32>
    %118 = arith.truncf %117 : vector<8x16xf32> to vector<8x16xbf16>
    %cst_47 = arith.constant dense<0.000000e+00> : vector<8x8xf32>
    %119 = tpu.matmul %118, %105, %cst_47 {dimension_numbers = #tpu.dot_dimension_numbers<[1], [0], [0], [1], [0, 0, 1, 1], [], []>} : vector<8x16xbf16>, vector<16x8xbf16>, vector<8x8xf32> -> vector<8x8xf32>
    %120 = arith.truncf %119 : vector<8x8xf32> to vector<8x8xbf16>
    %c0_48 = arith.constant 0 : index
    %c0_49 = arith.constant 0 : index
    %121 = vector.load %arg12[%c0_48, %c0_49] : memref<32x32xbf16, #tpu.memory_space<vmem>>, vector<8x32xbf16>
    %cst_50 = arith.constant dense<0.000000e+00> : vector<8x32xf32>
    %122 = tpu.matmul %120, %121, %cst_50 {dimension_numbers = #tpu.dot_dimension_numbers<[1], [0], [0], [1], [0, 0, 1, 1], [], []>} : vector<8x8xbf16>, vector<8x32xbf16>, vector<8x32xf32> -> vector<8x32xf32>
    %123 = arith.addf %99, %122 : vector<8x32xf32>
    %124 = vector.extract_strided_slice %84 {offsets = [0, 8], sizes = [8, 8], strides = [1, 1]} : vector<8x32xf32> to vector<8x8xf32>
    %125 = arith.truncf %124 : vector<8x8xf32> to vector<8x8xbf16>
    %126 = vector.extract_strided_slice %90 {offsets = [0, 8], sizes = [16, 8], strides = [1, 1]} : vector<16x32xf32> to vector<16x8xf32>
    %127 = arith.truncf %126 : vector<16x8xf32> to vector<16x8xbf16>
    %128 = vector.extract_strided_slice %96 {offsets = [0, 8], sizes = [16, 8], strides = [1, 1]} : vector<16x32xf32> to vector<16x8xf32>
    %129 = arith.truncf %128 : vector<16x8xf32> to vector<16x8xbf16>
    %130 = tpu.transpose %127, [1, 0] : vector<16x8xbf16> -> vector<8x16xbf16>
    %cst_51 = arith.constant dense<0.000000e+00> : vector<8x16xf32>
    %131 = tpu.matmul %125, %130, %cst_51 {dimension_numbers = #tpu.dot_dimension_numbers<[1], [0], [0], [1], [0, 0, 1, 1], [], []>} : vector<8x8xbf16>, vector<8x16xbf16>, vector<8x16xf32> -> vector<8x16xf32>
    %cst_52 = arith.constant dense<0xFF800000> : vector<8xf32>
    %132 = vector.multi_reduction <maximumf>, %131, %cst_52 [1] : vector<8x16xf32> to vector<8xf32>
    %133 = vector.shape_cast %132 : vector<8xf32> to vector<8x1xf32>
    %134 = vector.broadcast %133 : vector<8x1xf32> to vector<8x16xf32>
    %135 = arith.subf %131, %134 : vector<8x16xf32>
    %136 = math.exp %135 : vector<8x16xf32>
    %cst_53 = arith.constant dense<0.000000e+00> : vector<8xf32>
    %137 = vector.multi_reduction <add>, %136, %cst_53 [1] : vector<8x16xf32> to vector<8xf32>
    %138 = vector.shape_cast %137 : vector<8xf32> to vector<8x1xf32>
    %139 = tpu.reciprocal %138 {approx = true} : vector<8x1xf32> -> vector<8x1xf32>
    %140 = vector.broadcast %139 : vector<8x1xf32> to vector<8x16xf32>
    %141 = arith.mulf %136, %140 : vector<8x16xf32>
    %142 = arith.truncf %141 : vector<8x16xf32> to vector<8x16xbf16>
    %cst_54 = arith.constant dense<0.000000e+00> : vector<8x8xf32>
    %143 = tpu.matmul %142, %129, %cst_54 {dimension_numbers = #tpu.dot_dimension_numbers<[1], [0], [0], [1], [0, 0, 1, 1], [], []>} : vector<8x16xbf16>, vector<16x8xbf16>, vector<8x8xf32> -> vector<8x8xf32>
    %144 = arith.truncf %143 : vector<8x8xf32> to vector<8x8xbf16>
    %c8 = arith.constant 8 : index
    %c0_55 = arith.constant 0 : index
    %145 = vector.load %arg12[%c8, %c0_55] : memref<32x32xbf16, #tpu.memory_space<vmem>>, vector<8x32xbf16>
    %cst_56 = arith.constant dense<0.000000e+00> : vector<8x32xf32>
    %146 = tpu.matmul %144, %145, %cst_56 {dimension_numbers = #tpu.dot_dimension_numbers<[1], [0], [0], [1], [0, 0, 1, 1], [], []>} : vector<8x8xbf16>, vector<8x32xbf16>, vector<8x32xf32> -> vector<8x32xf32>
    %147 = arith.addf %123, %146 : vector<8x32xf32>
    %148 = vector.extract_strided_slice %84 {offsets = [0, 16], sizes = [8, 8], strides = [1, 1]} : vector<8x32xf32> to vector<8x8xf32>
    %149 = arith.truncf %148 : vector<8x8xf32> to vector<8x8xbf16>
    %150 = vector.extract_strided_slice %90 {offsets = [0, 16], sizes = [16, 8], strides = [1, 1]} : vector<16x32xf32> to vector<16x8xf32>
    %151 = arith.truncf %150 : vector<16x8xf32> to vector<16x8xbf16>
    %152 = vector.extract_strided_slice %96 {offsets = [0, 16], sizes = [16, 8], strides = [1, 1]} : vector<16x32xf32> to vector<16x8xf32>
    %153 = arith.truncf %152 : vector<16x8xf32> to vector<16x8xbf16>
    %154 = tpu.transpose %151, [1, 0] : vector<16x8xbf16> -> vector<8x16xbf16>
    %cst_57 = arith.constant dense<0.000000e+00> : vector<8x16xf32>
    %155 = tpu.matmul %149, %154, %cst_57 {dimension_numbers = #tpu.dot_dimension_numbers<[1], [0], [0], [1], [0, 0, 1, 1], [], []>} : vector<8x8xbf16>, vector<8x16xbf16>, vector<8x16xf32> -> vector<8x16xf32>
    %cst_58 = arith.constant dense<0xFF800000> : vector<8xf32>
    %156 = vector.multi_reduction <maximumf>, %155, %cst_58 [1] : vector<8x16xf32> to vector<8xf32>
    %157 = vector.shape_cast %156 : vector<8xf32> to vector<8x1xf32>
    %158 = vector.broadcast %157 : vector<8x1xf32> to vector<8x16xf32>
    %159 = arith.subf %155, %158 : vector<8x16xf32>
    %160 = math.exp %159 : vector<8x16xf32>
    %cst_59 = arith.constant dense<0.000000e+00> : vector<8xf32>
    %161 = vector.multi_reduction <add>, %160, %cst_59 [1] : vector<8x16xf32> to vector<8xf32>
    %162 = vector.shape_cast %161 : vector<8xf32> to vector<8x1xf32>
    %163 = tpu.reciprocal %162 {approx = true} : vector<8x1xf32> -> vector<8x1xf32>
    %164 = vector.broadcast %163 : vector<8x1xf32> to vector<8x16xf32>
    %165 = arith.mulf %160, %164 : vector<8x16xf32>
    %166 = arith.truncf %165 : vector<8x16xf32> to vector<8x16xbf16>
    %cst_60 = arith.constant dense<0.000000e+00> : vector<8x8xf32>
    %167 = tpu.matmul %166, %153, %cst_60 {dimension_numbers = #tpu.dot_dimension_numbers<[1], [0], [0], [1], [0, 0, 1, 1], [], []>} : vector<8x16xbf16>, vector<16x8xbf16>, vector<8x8xf32> -> vector<8x8xf32>
    %168 = arith.truncf %167 : vector<8x8xf32> to vector<8x8xbf16>
    %c16 = arith.constant 16 : index
    %c0_61 = arith.constant 0 : index
    %169 = vector.load %arg12[%c16, %c0_61] : memref<32x32xbf16, #tpu.memory_space<vmem>>, vector<8x32xbf16>
    %cst_62 = arith.constant dense<0.000000e+00> : vector<8x32xf32>
    %170 = tpu.matmul %168, %169, %cst_62 {dimension_numbers = #tpu.dot_dimension_numbers<[1], [0], [0], [1], [0, 0, 1, 1], [], []>} : vector<8x8xbf16>, vector<8x32xbf16>, vector<8x32xf32> -> vector<8x32xf32>
    %171 = arith.addf %147, %170 : vector<8x32xf32>
    %172 = vector.extract_strided_slice %84 {offsets = [0, 24], sizes = [8, 8], strides = [1, 1]} : vector<8x32xf32> to vector<8x8xf32>
    %173 = arith.truncf %172 : vector<8x8xf32> to vector<8x8xbf16>
    %174 = vector.extract_strided_slice %90 {offsets = [0, 24], sizes = [16, 8], strides = [1, 1]} : vector<16x32xf32> to vector<16x8xf32>
    %175 = arith.truncf %174 : vector<16x8xf32> to vector<16x8xbf16>
    %176 = vector.extract_strided_slice %96 {offsets = [0, 24], sizes = [16, 8], strides = [1, 1]} : vector<16x32xf32> to vector<16x8xf32>
    %177 = arith.truncf %176 : vector<16x8xf32> to vector<16x8xbf16>
    %178 = tpu.transpose %175, [1, 0] : vector<16x8xbf16> -> vector<8x16xbf16>
    %cst_63 = arith.constant dense<0.000000e+00> : vector<8x16xf32>
    %179 = tpu.matmul %173, %178, %cst_63 {dimension_numbers = #tpu.dot_dimension_numbers<[1], [0], [0], [1], [0, 0, 1, 1], [], []>} : vector<8x8xbf16>, vector<8x16xbf16>, vector<8x16xf32> -> vector<8x16xf32>
    %cst_64 = arith.constant dense<0xFF800000> : vector<8xf32>
    %180 = vector.multi_reduction <maximumf>, %179, %cst_64 [1] : vector<8x16xf32> to vector<8xf32>
    %181 = vector.shape_cast %180 : vector<8xf32> to vector<8x1xf32>
    %182 = vector.broadcast %181 : vector<8x1xf32> to vector<8x16xf32>
    %183 = arith.subf %179, %182 : vector<8x16xf32>
    %184 = math.exp %183 : vector<8x16xf32>
    %cst_65 = arith.constant dense<0.000000e+00> : vector<8xf32>
    %185 = vector.multi_reduction <add>, %184, %cst_65 [1] : vector<8x16xf32> to vector<8xf32>
    %186 = vector.shape_cast %185 : vector<8xf32> to vector<8x1xf32>
    %187 = tpu.reciprocal %186 {approx = true} : vector<8x1xf32> -> vector<8x1xf32>
    %188 = vector.broadcast %187 : vector<8x1xf32> to vector<8x16xf32>
    %189 = arith.mulf %184, %188 : vector<8x16xf32>
    %190 = arith.truncf %189 : vector<8x16xf32> to vector<8x16xbf16>
    %cst_66 = arith.constant dense<0.000000e+00> : vector<8x8xf32>
    %191 = tpu.matmul %190, %177, %cst_66 {dimension_numbers = #tpu.dot_dimension_numbers<[1], [0], [0], [1], [0, 0, 1, 1], [], []>} : vector<8x16xbf16>, vector<16x8xbf16>, vector<8x8xf32> -> vector<8x8xf32>
    %192 = arith.truncf %191 : vector<8x8xf32> to vector<8x8xbf16>
    %c24 = arith.constant 24 : index
    %c0_67 = arith.constant 0 : index
    %193 = vector.load %arg12[%c24, %c0_67] : memref<32x32xbf16, #tpu.memory_space<vmem>>, vector<8x32xbf16>
    %cst_68 = arith.constant dense<0.000000e+00> : vector<8x32xf32>
    %194 = tpu.matmul %192, %193, %cst_68 {dimension_numbers = #tpu.dot_dimension_numbers<[1], [0], [0], [1], [0, 0, 1, 1], [], []>} : vector<8x8xbf16>, vector<8x32xbf16>, vector<8x32xf32> -> vector<8x32xf32>
    %195 = arith.addf %171, %194 : vector<8x32xf32>
    %196 = arith.truncf %195 : vector<8x32xf32> to vector<8x32xbf16>
    %c0_69 = arith.constant 0 : index
    %c0_70 = arith.constant 0 : index
    %c0_71 = arith.constant 0 : index
    %197 = vector.load %arg14[%c0_69, %c0_70, %c0_71] : memref<1x8x32xbf16, #tpu.memory_space<vmem>>, vector<1x8x32xbf16>
    %198 = vector.shape_cast %197 : vector<1x8x32xbf16> to vector<8x32xbf16>
    %199 = vector.shape_cast %196 : vector<8x32xbf16> to vector<1x8x32xbf16>
    tpu.vector_store %arg14[%c0_69, %c0_70, %c0_71], %199 {strides = array<i32>} : memref<1x8x32xbf16, #tpu.memory_space<vmem>>, vector<1x8x32xbf16>,
    return
  }
  func.func @transform_0(%arg0: i32) -> (i32, i32, i32) {
    %c0_i32 = arith.constant 0 : i32
    %c0_i32_0 = arith.constant 0 : i32
    %c0_i32_1 = arith.constant 0 : i32
    return %arg0, %c0_i32, %c0_i32_0 : i32, i32, i32
  }
  func.func @transform_1(%arg0: i32) -> (i32, i32, i32) {
    %c0_i32 = arith.constant 0 : i32
    %c0_i32_0 = arith.constant 0 : i32
    %c0_i32_1 = arith.constant 0 : i32
    return %arg0, %c0_i32, %c0_i32_0 : i32, i32, i32
  }
  func.func @transform_2(%arg0: i32) -> (i32, i32, i32) {
    %c0_i32 = arith.constant 0 : i32
    %c0_i32_0 = arith.constant 0 : i32
    %c0_i32_1 = arith.constant 0 : i32
    return %arg0, %c0_i32, %c0_i32_0 : i32, i32, i32
  }
  func.func @transform_3(%arg0: i32) -> (i32, i32) {
    %c0_i32 = arith.constant 0 : i32
    %c0_i32_0 = arith.constant 0 : i32
    %c0_i32_1 = arith.constant 0 : i32
    return %c0_i32, %c0_i32_0 : i32, i32
  }
  func.func @transform_4(%arg0: i32) -> (i32, i32) {
    %c0_i32 = arith.constant 0 : i32
    %c0_i32_0 = arith.constant 0 : i32
    %c0_i32_1 = arith.constant 0 : i32
    return %c0_i32, %c0_i32_0 : i32, i32
  }
  func.func @transform_5(%arg0: i32) -> (i32, i32) {
    %c0_i32 = arith.constant 0 : i32
    %c0_i32_0 = arith.constant 0 : i32
    %c0_i32_1 = arith.constant 0 : i32
    return %c0_i32, %c0_i32_0 : i32, i32
  }
  func.func @transform_6(%arg0: i32) -> (i32, i32) {
    %c0_i32 = arith.constant 0 : i32
    %c0_i32_0 = arith.constant 0 : i32
    %c0_i32_1 = arith.constant 0 : i32
    return %c0_i32, %c0_i32_0 : i32, i32
  }
  func.func @transform_7(%arg0: i32) -> (i32, i32) {
    %c0_i32 = arith.constant 0 : i32
    %c0_i32_0 = arith.constant 0 : i32
    %c0_i32_1 = arith.constant 0 : i32
    return %c0_i32, %c0_i32_0 : i32, i32
  }
  func.func @transform_8(%arg0: i32) -> (i32, i32) {
    %c0_i32 = arith.constant 0 : i32
    %c0_i32_0 = arith.constant 0 : i32
    %c0_i32_1 = arith.constant 0 : i32
    return %c0_i32, %c0_i32_0 : i32, i32
  }
  func.func @transform_9(%arg0: i32) -> (i32, i32) {
    %c0_i32 = arith.constant 0 : i32
    %c0_i32_0 = arith.constant 0 : i32
    %c0_i32_1 = arith.constant 0 : i32
    return %c0_i32, %c0_i32_0 : i32, i32
  }
  func.func @transform_10(%arg0: i32) -> (i32, i32) {
    %c0_i32 = arith.constant 0 : i32
    %c0_i32_0 = arith.constant 0 : i32
    %c0_i32_1 = arith.constant 0 : i32
    return %c0_i32, %c0_i32_0 : i32, i32
  }
  func.func @transform_11(%arg0: i32) -> (i32, i32) {
    %c0_i32 = arith.constant 0 : i32
    %c0_i32_0 = arith.constant 0 : i32
    %c0_i32_1 = arith.constant 0 : i32
    return %c0_i32, %c0_i32_0 : i32, i32
  }
  func.func @transform_12(%arg0: i32) -> (i32, i32) {
    %c0_i32 = arith.constant 0 : i32
    %c0_i32_0 = arith.constant 0 : i32
    %c0_i32_1 = arith.constant 0 : i32
    return %c0_i32, %c0_i32_0 : i32, i32
  }
  func.func @transform_13(%arg0: i32) -> (i32, i32, i32) {
    %c0_i32 = arith.constant 0 : i32
    %c0_i32_0 = arith.constant 0 : i32
    %c0_i32_1 = arith.constant 0 : i32
    return %arg0, %c0_i32, %c0_i32_0 : i32, i32, i32
  }
}

module attributes {stable_mosaic.version = 11 : i64} {
  func.func @_ffn_kernel(%arg0: i32, %arg1: i32, %arg2: memref<16x32xbf16, #tpu.memory_space<vmem>>, %arg3: memref<1x32xf32, #tpu.memory_space<vmem>>, %arg4: memref<1x32xf32, #tpu.memory_space<vmem>>, %arg5: memref<32x128xbf16, #tpu.memory_space<vmem>>, %arg6: memref<1x128xf32, #tpu.memory_space<vmem>>, %arg7: memref<128x32xbf16, #tpu.memory_space<vmem>>, %arg8: memref<1x32xf32, #tpu.memory_space<vmem>>, %arg9: memref<16x32xbf16, #tpu.memory_space<vmem>>, %arg10: memref<16x32xf32, #tpu.memory_space<vmem>>, %arg11: memref<16x32xf32, #tpu.memory_space<vmem>>) attributes {dimension_semantics = [#tpu.dimension_semantics<parallel>, #tpu.dimension_semantics<arbitrary>], iteration_bounds = array<i64: 1, 1>, scalar_prefetch = 0 : i64, scratch_operands = 2 : i64, tpu.core_type = #tpu.core_type<tc>, window_params = [{transform_indices = @transform_0, window_bounds = array<i64: 16, 32>}, {pipeline_mode = #tpu.pipeline_mode<synchronous>, transform_indices = @transform_1, window_bounds = array<i64: 1, 32>}, {pipeline_mode = #tpu.pipeline_mode<synchronous>, transform_indices = @transform_2, window_bounds = array<i64: 1, 32>}, {transform_indices = @transform_3, window_bounds = array<i64: 32, 128>}, {transform_indices = @transform_4, window_bounds = array<i64: 1, 128>}, {transform_indices = @transform_5, window_bounds = array<i64: 128, 32>}, {pipeline_mode = #tpu.pipeline_mode<synchronous>, transform_indices = @transform_6, window_bounds = array<i64: 1, 32>}, {transform_indices = @transform_7, window_bounds = array<i64: 16, 32>}]} {
    %c0_i32 = arith.constant 0 : i32
    %0 = arith.cmpi eq, %arg1, %c0_i32 : i32
    %1 = arith.extui %0 : i1 to i32
    %c0_i32_0 = arith.constant 0 : i32
    %2 = arith.cmpi ne, %1, %c0_i32_0 : i32
    scf.if %2 {
      %c0_18 = arith.constant 0 : index
      %c0_19 = arith.constant 0 : index
      %27 = vector.load %arg2[%c0_18, %c0_19] : memref<16x32xbf16, #tpu.memory_space<vmem>>, vector<16x32xbf16>
      %28 = arith.extf %27 : vector<16x32xbf16> to vector<16x32xf32>
      %c0_20 = arith.constant 0 : index
      %c0_21 = arith.constant 0 : index
      %29 = vector.load %arg3[%c0_20, %c0_21] : memref<1x32xf32, #tpu.memory_space<vmem>>, vector<1x32xf32>
      %c0_22 = arith.constant 0 : index
      %c0_23 = arith.constant 0 : index
      %30 = vector.load %arg4[%c0_22, %c0_23] : memref<1x32xf32, #tpu.memory_space<vmem>>, vector<1x32xf32>
      %cst_24 = arith.constant dense<0.000000e+00> : vector<16xf32>
      %31 = vector.multi_reduction <add>, %28, %cst_24 [1] : vector<16x32xf32> to vector<16xf32>
      %32 = vector.shape_cast %31 : vector<16xf32> to vector<16x1xf32>
      %cst_25 = arith.constant 3.200000e+01 : f32
      %33 = vector.broadcast %cst_25 : f32 to vector<16x1xf32>
      %34 = arith.divf %32, %33 : vector<16x1xf32>
      %35 = vector.broadcast %34 : vector<16x1xf32> to vector<16x32xf32>
      %36 = arith.subf %28, %35 : vector<16x32xf32>
      %37 = arith.mulf %36, %36 : vector<16x32xf32>
      %cst_26 = arith.constant dense<0.000000e+00> : vector<16xf32>
      %38 = vector.multi_reduction <add>, %37, %cst_26 [1] : vector<16x32xf32> to vector<16xf32>
      %39 = vector.shape_cast %38 : vector<16xf32> to vector<16x1xf32>
      %cst_27 = arith.constant 3.200000e+01 : f32
      %40 = vector.broadcast %cst_27 : f32 to vector<16x1xf32>
      %41 = arith.divf %39, %40 : vector<16x1xf32>
      %42 = vector.broadcast %34 : vector<16x1xf32> to vector<16x32xf32>
      %43 = arith.subf %28, %42 : vector<16x32xf32>
      %cst_28 = arith.constant 9.99999974E-6 : f32
      %44 = vector.broadcast %cst_28 : f32 to vector<16x1xf32>
      %45 = arith.addf %41, %44 : vector<16x1xf32>
      %46 = math.rsqrt %45 : vector<16x1xf32>
      %47 = vector.broadcast %46 : vector<16x1xf32> to vector<16x32xf32>
      %48 = arith.mulf %43, %47 : vector<16x32xf32>
      %49 = vector.broadcast %29 : vector<1x32xf32> to vector<16x32xf32>
      %50 = arith.mulf %48, %49 : vector<16x32xf32>
      %51 = vector.broadcast %30 : vector<1x32xf32> to vector<16x32xf32>
      %52 = arith.addf %50, %51 : vector<16x32xf32>
      %c0_29 = arith.constant 0 : index
      %c0_30 = arith.constant 0 : index
      %53 = vector.load %arg10[%c0_29, %c0_30] : memref<16x32xf32, #tpu.memory_space<vmem>>, vector<16x32xf32>
      tpu.vector_store %arg10[%c0_29, %c0_30], %52 {strides = array<i32>} : memref<16x32xf32, #tpu.memory_space<vmem>>, vector<16x32xf32>,
      %cst_31 = arith.constant 0.000000e+00 : f32
      %54 = vector.broadcast %cst_31 : f32 to vector<16x32xf32>
      %c0_32 = arith.constant 0 : index
      %c0_33 = arith.constant 0 : index
      %55 = vector.load %arg11[%c0_32, %c0_33] : memref<16x32xf32, #tpu.memory_space<vmem>>, vector<16x32xf32>
      tpu.vector_store %arg11[%c0_32, %c0_33], %54 {strides = array<i32>} : memref<16x32xf32, #tpu.memory_space<vmem>>, vector<16x32xf32>,
    } else {
    }
    %c0 = arith.constant 0 : index
    %c0_1 = arith.constant 0 : index
    %3 = vector.load %arg10[%c0, %c0_1] : memref<16x32xf32, #tpu.memory_space<vmem>>, vector<16x32xf32>
    %4 = arith.truncf %3 : vector<16x32xf32> to vector<16x32xbf16>
    %c0_2 = arith.constant 0 : index
    %c0_3 = arith.constant 0 : index
    %5 = vector.load %arg5[%c0_2, %c0_3] : memref<32x128xbf16, #tpu.memory_space<vmem>>, vector<32x128xbf16>
    %cst = arith.constant dense<0.000000e+00> : vector<16x128xf32>
    %6 = tpu.matmul %4, %5, %cst {dimension_numbers = #tpu.dot_dimension_numbers<[1], [0], [0], [1], [0, 0, 1, 1], [], []>} : vector<16x32xbf16>, vector<32x128xbf16>, vector<16x128xf32> -> vector<16x128xf32>
    %c0_4 = arith.constant 0 : index
    %c0_5 = arith.constant 0 : index
    %7 = vector.load %arg6[%c0_4, %c0_5] : memref<1x128xf32, #tpu.memory_space<vmem>>, vector<1x128xf32>
    %8 = vector.broadcast %7 : vector<1x128xf32> to vector<16x128xf32>
    %9 = arith.addf %6, %8 : vector<16x128xf32>
    %cst_6 = arith.constant 5.000000e-01 : f32
    %10 = vector.broadcast %cst_6 : f32 to vector<16x128xf32>
    %11 = arith.mulf %10, %9 : vector<16x128xf32>
    %cst_7 = arith.constant 0.707106769 : f32
    %12 = vector.broadcast %cst_7 : f32 to vector<16x128xf32>
    %13 = arith.mulf %9, %12 : vector<16x128xf32>
    %14 = math.erf %13 : vector<16x128xf32>
    %cst_8 = arith.constant 1.000000e+00 : f32
    %15 = vector.broadcast %cst_8 : f32 to vector<16x128xf32>
    %16 = arith.addf %15, %14 : vector<16x128xf32>
    %17 = arith.mulf %11, %16 : vector<16x128xf32>
    %c0_9 = arith.constant 0 : index
    %c0_10 = arith.constant 0 : index
    %18 = vector.load %arg11[%c0_9, %c0_10] : memref<16x32xf32, #tpu.memory_space<vmem>>, vector<16x32xf32>
    %19 = arith.truncf %17 : vector<16x128xf32> to vector<16x128xbf16>
    %c0_11 = arith.constant 0 : index
    %c0_12 = arith.constant 0 : index
    %20 = vector.load %arg7[%c0_11, %c0_12] : memref<128x32xbf16, #tpu.memory_space<vmem>>, vector<128x32xbf16>
    %cst_13 = arith.constant dense<0.000000e+00> : vector<16x32xf32>
    %21 = tpu.matmul %19, %20, %cst_13 {dimension_numbers = #tpu.dot_dimension_numbers<[1], [0], [0], [1], [0, 0, 1, 1], [], []>} : vector<16x128xbf16>, vector<128x32xbf16>, vector<16x32xf32> -> vector<16x32xf32>
    %22 = arith.addf %18, %21 : vector<16x32xf32>
    %c0_14 = arith.constant 0 : index
    %c0_15 = arith.constant 0 : index
    %23 = vector.load %arg11[%c0_14, %c0_15] : memref<16x32xf32, #tpu.memory_space<vmem>>, vector<16x32xf32>
    tpu.vector_store %arg11[%c0_14, %c0_15], %22 {strides = array<i32>} : memref<16x32xf32, #tpu.memory_space<vmem>>, vector<16x32xf32>,
    %c0_i32_16 = arith.constant 0 : i32
    %24 = arith.cmpi eq, %arg1, %c0_i32_16 : i32
    %25 = arith.extui %24 : i1 to i32
    %c0_i32_17 = arith.constant 0 : i32
    %26 = arith.cmpi ne, %25, %c0_i32_17 : i32
    scf.if %26 {
      %c0_18 = arith.constant 0 : index
      %c0_19 = arith.constant 0 : index
      %27 = vector.load %arg11[%c0_18, %c0_19] : memref<16x32xf32, #tpu.memory_space<vmem>>, vector<16x32xf32>
      %c0_20 = arith.constant 0 : index
      %c0_21 = arith.constant 0 : index
      %28 = vector.load %arg8[%c0_20, %c0_21] : memref<1x32xf32, #tpu.memory_space<vmem>>, vector<1x32xf32>
      %29 = vector.broadcast %28 : vector<1x32xf32> to vector<16x32xf32>
      %30 = arith.addf %27, %29 : vector<16x32xf32>
      %c0_22 = arith.constant 0 : index
      %c0_23 = arith.constant 0 : index
      %31 = vector.load %arg2[%c0_22, %c0_23] : memref<16x32xbf16, #tpu.memory_space<vmem>>, vector<16x32xbf16>
      %32 = arith.extf %31 : vector<16x32xbf16> to vector<16x32xf32>
      %33 = arith.addf %30, %32 : vector<16x32xf32>
      %34 = arith.truncf %33 : vector<16x32xf32> to vector<16x32xbf16>
      %c0_24 = arith.constant 0 : index
      %c0_25 = arith.constant 0 : index
      %35 = vector.load %arg9[%c0_24, %c0_25] : memref<16x32xbf16, #tpu.memory_space<vmem>>, vector<16x32xbf16>
      tpu.vector_store %arg9[%c0_24, %c0_25], %34 {strides = array<i32>} : memref<16x32xbf16, #tpu.memory_space<vmem>>, vector<16x32xbf16>,
    } else {
    }
    return
  }
  func.func @transform_0(%arg0: i32, %arg1: i32) -> (i32, i32) {
    %c0_i32 = arith.constant 0 : i32
    %c0_i32_0 = arith.constant 0 : i32
    return %arg0, %c0_i32 : i32, i32
  }
  func.func @transform_1(%arg0: i32, %arg1: i32) -> (i32, i32) {
    %c0_i32 = arith.constant 0 : i32
    %c0_i32_0 = arith.constant 0 : i32
    %c0_i32_1 = arith.constant 0 : i32
    return %c0_i32, %c0_i32_0 : i32, i32
  }
  func.func @transform_2(%arg0: i32, %arg1: i32) -> (i32, i32) {
    %c0_i32 = arith.constant 0 : i32
    %c0_i32_0 = arith.constant 0 : i32
    %c0_i32_1 = arith.constant 0 : i32
    return %c0_i32, %c0_i32_0 : i32, i32
  }
  func.func @transform_3(%arg0: i32, %arg1: i32) -> (i32, i32) {
    %c0_i32 = arith.constant 0 : i32
    %c0_i32_0 = arith.constant 0 : i32
    return %c0_i32, %arg1 : i32, i32
  }
  func.func @transform_4(%arg0: i32, %arg1: i32) -> (i32, i32) {
    %c0_i32 = arith.constant 0 : i32
    %c0_i32_0 = arith.constant 0 : i32
    return %c0_i32, %arg1 : i32, i32
  }
  func.func @transform_5(%arg0: i32, %arg1: i32) -> (i32, i32) {
    %c0_i32 = arith.constant 0 : i32
    %c0_i32_0 = arith.constant 0 : i32
    return %arg1, %c0_i32 : i32, i32
  }
  func.func @transform_6(%arg0: i32, %arg1: i32) -> (i32, i32) {
    %c0_i32 = arith.constant 0 : i32
    %c0_i32_0 = arith.constant 0 : i32
    %c0_i32_1 = arith.constant 0 : i32
    return %c0_i32, %c0_i32_0 : i32, i32
  }
  func.func @transform_7(%arg0: i32, %arg1: i32) -> (i32, i32) {
    %c0_i32 = arith.constant 0 : i32
    %c0_i32_0 = arith.constant 0 : i32
    return %arg0, %c0_i32 : i32, i32
  }
}

</mosaic_0001>

<bundles_post_ra>
// kernel: _lambda_.11
= control target key start
LH: loop header
LB: loop body
LE: loop exit
PB: predicated region body
PF: predicated region fallthrough
CT: control target
= control target key end

     0   :  { %vm41_vm0 = vcmask 261120   ;;  %vm401_vm1 = vcmask 257024   ;;  %s664_s0 = inlined_call_operand.vmem [shape: bf16[32,32], index: 0, kind: input, shape index: {}]   ;;  %s665_s3 = inlined_call_operand.vmem [shape: bf16[32,128], index: 3, kind: input, shape index: {}]   ;;  %s666_s5 = inlined_call_operand.vmem [shape: bf16[128,32], index: 5, kind: input, shape index: {}]   ;;  %s667_s1 = inlined_call_operand.vmem [shape: f32[1,32], index: 1, kind: input, shape index: {}]   ;;  %s668_s2 = inlined_call_operand.vmem [shape: f32[1,32], index: 2, kind: input, shape index: {}]   ;;  %s669_s4 = inlined_call_operand.vmem [shape: f32[1,128], index: 4, kind: input, shape index: {}]   ;;  %s670_s6 = inlined_call_operand.vmem [shape: f32[1,32], index: 6, kind: input, shape index: {}]   ;;  %s671_s7 = inlined_call_operand.vmem [shape: bf16[32,32], index: 7, kind: output, shape index: {}]  }
   0x1   :  { %v435_v0 = vld [vmem:[%s664_s0] sm:$0xff]   ;;  %v451_v1 = vld [vmem:[%s664_s0 + $0x8] sm:$0xff]  }
   0x2   :  { %v568_v2 = vunpack.c.l.bf16 %v435_v0  ;;  %v570_v3 = vunpack.c.h.bf16 %v435_v0  ;;  %v572_v4 = vunpack.c.l.bf16 %v451_v1  ;;  %v574_v5 = vunpack.c.h.bf16 %v451_v1  ;;  %v495_v30 = vld [vmem:[%s665_s3] sm:$0xff]   ;;  %v496_v31 = vld [vmem:[%s665_s3 + $0x8] sm:$0xff]  }
   0x3   :  { %466 = vmatprep.subr.bf16.mxu0 %v495_v30  ;;  %v497_v32 = vld [vmem:[%s666_s5] sm:$0xff]   ;;  %v498_v33 = vld [vmem:[%s666_s5 + $0x8] sm:$0xff]  }
   0x4   :  { %v42_v6 = vsel %vm41_vm0, %v568_v2, 0.0  ;;  %v48_v7 = vsel %vm41_vm0, %v572_v4, 0.0  ;;  %v45_v8 = vsel %vm41_vm0, %v570_v3, 0.0  ;;  %v51_v9 = vsel %vm41_vm0, %v574_v5, 0.0  ;;  %467 = vmatpush3.bf16.msra.mxu0 %v495_v30  ;;  %474 = vmatprep.subr.bf16.mxu1 %v497_v32  ;;  %v410_v47 = vld [vmem:[%s667_s1] ss:$0 sm:$0xff] }
   0x5   :  { %43 = vadd.xlane.f32.xlu0 %v42_v6  ;;  %49 = vadd.xlane.f32.xlu1 %v48_v7  ;;  %v411_v49 = vld [vmem:[%s668_s2] ss:$0 sm:$0xff] }
   0x6   :  { %468 = vmatprep.subr.bf16.mxu0 %v496_v31  ;;  %475 = vmatpush3.bf16.msra.mxu1 %v497_v32 }
   0x7   :  { %476 = vmatprep.subr.bf16.mxu1 %v498_v33 }
   0x8   :  { %469 = vmatpush3.bf16.msra.mxu0 %v496_v31 }
   0x9   :  { %46 = vadd.xlane.f32.xlu0 %v45_v8  ;;  %52 = vadd.xlane.f32.xlu1 %v51_v9 }
   0xa   :  { %477 = vmatpush3.bf16.msra.mxu1 %v498_v33 }
  0x92   :  { %v44_v10 = vpop.xlane.xlu0 %43  ;;  %v50_v11 = vpop.xlane.xlu1 %49 }
  0x93   :  { %v55_v12 = vmul.f32 0.03125, %v44_v10  ;;  %v57_v13 = vmul.f32 0.03125, %v50_v11  ;;  %v499_v10 = vld [vmem:[%s666_s5 + $0x10] sm:$0xff]   ;;  %v500_v11 = vld [vmem:[%s666_s5 + $0x18] sm:$0xff]  }
  0x94   :  { %478 = vmatprep.subr.bf16.mxu1 %v499_v10 }
  0x95   :  { %v59_v14 = vsub.f32 %v568_v2, %v55_v12  ;;  %v61_v15 = vsub.f32 %v572_v4, %v57_v13  ;;  %479 = vmatpush3.bf16.msra.mxu1 %v499_v10  ;;  %v501_v12 = vld [vmem:[%s666_s5 + $0x20] sm:$0xff]   ;;  %v502_v13 = vld [vmem:[%s666_s5 + $0x28] sm:$0xff]  }
  0x96   :  { %v47_v16 = vpop.xlane.xlu0 %46  ;;  %v53_v17 = vpop.xlane.xlu1 %52  ;;  %480 = vmatprep.subr.bf16.mxu1 %v500_v11 }
  0x97   :  { %v56_v18 = vmul.f32 0.03125, %v47_v16  ;;  %v58_v19 = vmul.f32 0.03125, %v53_v17  ;;  %v63_v20 = vmul.f32 %v59_v14, %v59_v14  ;;  %v65_v21 = vmul.f32 %v61_v15, %v61_v15  ;;  %v412_v17 = vld [vmem:[%s669_s4] ss:$0 sm:$0xff] }
  0x98   :  { %v521_v16 = vmov 0.0  }
  0x99   :  { %v60_v22 = vsub.f32 %v570_v3, %v56_v18  ;;  %v62_v23 = vsub.f32 %v574_v5, %v58_v19  ;;  %v67_v24 = vsel %vm41_vm0, %v63_v20, 0.0  ;;  %v73_v25 = vsel %vm41_vm0, %v65_v21, 0.0  ;;  %481 = vmatpush3.bf16.msra.mxu1 %v500_v11  ;;  %121 = vst.msk [vmem:[#allocation3 + $0x10] sm:$0xff] %vm41_vm0, %v521_v16  ;;  %119 = vst.msk [vmem:[#allocation3] sm:$0xff] %vm41_vm0, %v521_v16 }
  0x9a   :  { %68 = vadd.xlane.f32.xlu0 %v67_v24  ;;  %482 = vmatprep.subr.bf16.mxu1 %v501_v12  ;;  %120 = vst.msk [vmem:[#allocation3 + $0x8] sm:$0xff] %vm41_vm0, %v521_v16  ;;  %122 = vst.msk [vmem:[#allocation3 + $0x18] sm:$0xff] %vm41_vm0, %v521_v16 }
  0x9b   :  { %v64_v26 = vmul.f32 %v60_v22, %v60_v22  ;;  %v66_v27 = vmul.f32 %v62_v23, %v62_v23 }
  0x9d   :  { %v70_v28 = vsel %vm41_vm0, %v64_v26, 0.0  ;;  %v76_v29 = vsel %vm41_vm0, %v66_v27, 0.0  ;;  %483 = vmatpush3.bf16.msra.mxu1 %v501_v12 }
  0x9e   :  { %74 = vadd.xlane.f32.xlu0 %v73_v25  ;;  %71 = vadd.xlane.f32.xlu1 %v70_v28 }
  0x9f   :  { %484 = vmatprep.subr.bf16.mxu1 %v502_v13 }
  0xa1   :  { %485 = vmatpush3.bf16.msra.mxu1 %v502_v13 }
  0xa2   :  { %77 = vadd.xlane.f32.xlu1 %v76_v29 }
 0x127   :  { %v69_v34 = vpop.xlane.xlu0 %68 }
 0x128   :  { %v79_v35 = vmul.f32 0.03125, %v69_v34 }
 0x12a   :  { %v83_v36 = vadd.f32 1e-05, %v79_v35 }
 0x12b   :  { %v72_v37 = vpop.xlane.xlu1 %71  ;;  %v75_v38 = vpop.xlane.xlu0 %74 }
 0x12c   :  { %505 = vrsqrt.f32 %v83_v36  ;;  %v80_v39 = vmul.f32 0.03125, %v72_v37  ;;  %v81_v40 = vmul.f32 0.03125, %v75_v38 }
 0x12e   :  { %v84_v41 = vadd.f32 1e-05, %v80_v39  ;;  %v85_v42 = vadd.f32 1e-05, %v81_v40 }
 0x12f   :  { %v78_v43 = vpop.xlane.xlu1 %77 }
 0x130   :  { %507 = vrsqrt.f32 %v84_v41  ;;  %v82_v44 = vmul.f32 0.03125, %v78_v43 }
 0x131   :  { %509 = vrsqrt.f32 %v85_v42 }
 0x132   :  { %v86_v45 = vadd.f32 1e-05, %v82_v44 }
 0x134   :  { %511 = vrsqrt.f32 %v86_v45 }
 0x136   :  { %v506_v46 = vpop.eup %505 }
 0x137   :  { %v91_v48 = vmul.f32 %v506_v46, %v59_v14  ;;  %v503_v14 = vld [vmem:[%s666_s5 + $0x30] sm:$0xff]  }
 0x138   :  { %486 = vmatprep.subr.bf16.mxu1 %v503_v14 }
 0x139   :  { %v101_v50 = vmul.f32 %v410_v47, %v91_v48  ;;  %487 = vmatpush3.bf16.msra.mxu1 %v503_v14  ;;  %v230_v48 = vld [vmem:[#allocation3 + $0x10] sm:$0xff] }
 0x13a   :  { %v508_v51 = vpop.eup %507 }
 0x13b   :  { %v510_v52 = vpop.eup %509  ;;  %v111_v53 = vadd.f32 %v411_v49, %v101_v50  ;;  %v92_v54 = vmul.f32 %v508_v51, %v60_v22  ;;  %v231_v51 = vld [vmem:[#allocation3 + $0x18] sm:$0xff] }
 0x13c   :  { %v93_v55 = vmul.f32 %v510_v52, %v61_v15  ;;  %v504_v15 = vld [vmem:[%s666_s5 + $0x38] sm:$0xff]  }
 0x13d   :  { %115 = vst.msk [vmem:[#allocation2] sm:$0xff] %vm41_vm0, %v111_v53  ;;  %v102_v56 = vmul.f32 %v410_v47, %v92_v54  ;;  %488 = vmatprep.subr.bf16.mxu1 %v504_v15  ;;  %v229_v54 = vld [vmem:[#allocation3 + $0x8] sm:$0xff] }
 0x13e   :  { %v512_v57 = vpop.eup %511  ;;  %v103_v58 = vmul.f32 %v410_v47, %v93_v55  ;;  %489 = vmatpush3.bf16.msra.mxu1 %v504_v15 }
 0x13f   :  { %v112_v59 = vadd.f32 %v411_v49, %v102_v56  ;;  %v94_v60 = vmul.f32 %v512_v57, %v62_v23 }
 0x140   :  { %v113_v61 = vadd.f32 %v411_v49, %v103_v58 }
 0x141   :  { %116 = vst.msk [vmem:[#allocation2 + $0x8] sm:$0xff] %vm41_vm0, %v112_v59  ;;  %v104_v62 = vmul.f32 %v410_v47, %v94_v60  ;;  %v425_v60 = vld [vmem:[%s670_s6] ss:$0 sm:$0xff] }
 0x142   :  { %117 = vst.msk [vmem:[#allocation2 + $0x10] sm:$0xff] %vm41_vm0, %v113_v61 }
 0x143   :  { %v114_v63 = vadd.f32 %v411_v49, %v104_v62  ;;  %v228_v49 = vld [vmem:[#allocation3] sm:$0xff] }
 0x144   :  { %v123_v0 = vld [vmem:[#allocation2] sm:$0xff] }
 0x145   :  { %118 = vst.msk [vmem:[#allocation2 + $0x18] sm:$0xff] %vm41_vm0, %v114_v63 }
 0x148   :  { %v124_v1 = vld [vmem:[#allocation2 + $0x8] sm:$0xff] }
 0x149   :  { %v127_v6 = vpack.c.bf16 %v124_v1, %v123_v0  ;;  %v125_v7 = vld [vmem:[#allocation2 + $0x10] sm:$0xff] }
 0x14b   :  { %470 = vmatprep.mubr.msk.bf16.mxu0 %vm41_vm0, %v127_v6 }
 0x14c   :  { %v126_v8 = vld [vmem:[#allocation2 + $0x18] sm:$0xff] }
 0x14d   :  { %v128_v9 = vpack.c.bf16 %v126_v8, %v125_v7 }
 0x14f   :  { %471 = vmatmul.mubr.msk.bf16.vlgmr.msra.gmra.mrb[0].mxu0 %vm41_vm0, %v128_v9 }
 0x222   :  { %v472_v18 = vpop.f32.mrb[0].mxu0 }
 0x223   :  { %v202_v19 = vadd.f32 %v472_v18, %v412_v17  ;;  %v193_v20 = vpop.f32.mrb[1].mxu0 }
 0x224   :  { %v194_v21 = vadd.f32 %v412_v17, %v193_v20  ;;  %v473_v22 = vpop.f32.mrb[2].mxu0 }
 0x225   :  { %v214_v23 = vmul.f32 0.70710677, %v202_v19  ;;  %v205_v24 = vadd.f32 %v473_v22, %v412_v17  ;;  %v196_v25 = vpop.f32.mrb[3].mxu0  ;;  %v210_v36 = vmul.f32 0.5, %v202_v19 }
 0x226   :  { %v212_v26 = vmul.f32 0.70710677, %v194_v21  ;;  %v197_v27 = vadd.f32 %v412_v17, %v196_v25  ;;  %v208_v39 = vmul.f32 0.5, %v194_v21 }
 0x227   :  { %513 = verf.f32 %v214_v23  ;;  %v215_v28 = vmul.f32 0.70710677, %v205_v24  ;;  %v211_v37 = vmul.f32 0.5, %v205_v24 }
 0x228   :  { %515 = verf.f32 %v212_v26  ;;  %v213_v29 = vmul.f32 0.70710677, %v197_v27  ;;  %v209_v40 = vmul.f32 0.5, %v197_v27 }
 0x229   :  { %517 = verf.f32 %v215_v28 }
 0x22a   :  { %519 = verf.f32 %v213_v29 }
 0x231   :  { %v514_v30 = vpop.eup %513 }
 0x232   :  { %v516_v31 = vpop.eup %515  ;;  %v222_v32 = vadd.f32 1.0, %v514_v30 }
 0x233   :  { %v518_v33 = vpop.eup %517  ;;  %v220_v34 = vadd.f32 1.0, %v516_v31 }
 0x234   :  { %v520_v35 = vpop.eup %519  ;;  %v223_v38 = vadd.f32 1.0, %v518_v33  ;;  %v226_v42 = vmul.f32 %v222_v32, %v210_v36 }
 0x235   :  { %v221_v41 = vadd.f32 1.0, %v520_v35  ;;  %v224_v44 = vmul.f32 %v220_v34, %v208_v39 }
 0x236   :  { %v227_v43 = vmul.f32 %v223_v38, %v211_v37 }
 0x237   :  { %v225_v45 = vmul.f32 %v221_v41, %v209_v40 }
 0x238   :  { %v233_v46 = vpack.c.bf16 %v227_v43, %v226_v42 }
 0x239   :  { %v232_v47 = vpack.c.bf16 %v225_v45, %v224_v44 }
 0x23b   :  { %490 = vmatprep.mubr.bf16.mxu1 %v232_v47 }
 0x23c   :  { %491 = vmatmul.mubr.bf16.vlgmr.msra.gmra.mrb[0].mxu1 %v233_v46 }
 0x30f   :  { %v492_v50 = vpop.f32.mrb[0].mxu1 }
 0x310   :  { %v349_v52 = vadd.f32 %v492_v50, %v230_v48  ;;  %v332_v53 = vpop.f32.mrb[1].mxu1 }
 0x311   :  { %v347_v55 = vadd.f32 %v332_v53, %v228_v49  ;;  %v493_v56 = vpop.f32.mrb[2].mxu1 }
 0x312   :  { %353 = vst.msk [vmem:[#allocation3 + $0x10] sm:$0xff] %vm41_vm0, %v349_v52  ;;  %v350_v57 = vadd.f32 %v493_v56, %v231_v51  ;;  %v335_v58 = vpop.f32.mrb[3].mxu1 }
 0x313   :  { %351 = vst.msk [vmem:[#allocation3] sm:$0xff] %vm41_vm0, %v347_v55  ;;  %v348_v59 = vadd.f32 %v335_v58, %v229_v54 }
 0x314   :  { %354 = vst.msk [vmem:[#allocation3 + $0x18] sm:$0xff] %vm41_vm0, %v350_v57 }
 0x315   :  { %352 = vst.msk [vmem:[#allocation3 + $0x8] sm:$0xff] %vm41_vm0, %v348_v59 }
 0x319   :  { %v360_v61 = vld [vmem:[#allocation3 + $0x10] sm:$0xff] }
 0x31a   :  { %v371_v62 = vadd.f32 %v425_v60, %v360_v61  ;;  %v358_v63 = vld [vmem:[#allocation3] sm:$0xff] }
 0x31b   :  { %v369_v0 = vadd.f32 %v425_v60, %v358_v63  ;;  %v361_v1 = vld [vmem:[#allocation3 + $0x18] sm:$0xff] }
 0x31c   :  { %v383_v6 = vadd.f32 %v572_v4, %v371_v62  ;;  %v372_v7 = vadd.f32 %v425_v60, %v361_v1  ;;  %v359_v8 = vld [vmem:[#allocation3 + $0x8] sm:$0xff] }
 0x31d   :  { %v381_v9 = vadd.f32 %v568_v2, %v369_v0  ;;  %v370_v10 = vadd.f32 %v425_v60, %v359_v8 }
 0x31e   :  { %v432_v11 = vpack.c.bf16 %v383_v6, %v383_v6  ;;  %v384_v12 = vadd.f32 %v574_v5, %v372_v7 }
 0x31f   :  { %v430_v13 = vpack.c.bf16 %v381_v9, %v381_v9  ;;  %v382_v14 = vadd.f32 %v570_v3, %v370_v10 }
 0x320   :  { %404 = vst.msk [vmem:[%s671_s7 + $0x8] sm:$0xf] %vm401_vm1, %v432_v11  ;;  %v433_v15 = vpack.c.bf16 %v384_v12, %v384_v12 }
 0x321   :  { %402 = vst.msk [vmem:[%s671_s7] sm:$0xf] %vm401_vm1, %v430_v13  ;;  %v431_v4 = vpack.c.bf16 %v382_v14, %v382_v14 }
 0x322   :  { %405 = vst.msk [vmem:[%s671_s7 + $0xc] sm:$0xf] %vm401_vm1, %v433_v15 }
 0x323   :  { %403 = vst.msk [vmem:[%s671_s7 + $0x4] sm:$0xf] %vm401_vm1, %v431_v4 }

// kernel: _lambda_.10
= control target key start
LH: loop header
LB: loop body
LE: loop exit
PB: predicated region body
PF: predicated region fallthrough
CT: control target
= control target key end

     0   :  { %s1449_s24 = smov 0   ;;  %s1614_s0 = inlined_call_operand.vmem [shape: bf16[2,16,32], index: 0, kind: input, shape index: {}]   ;;  %s1615_s1 = inlined_call_operand.vmem [shape: f32[1,32], index: 1, kind: input, shape index: {}]   ;;  %s1616_s2 = inlined_call_operand.vmem [shape: f32[1,32], index: 2, kind: input, shape index: {}]   ;;  %s1617_s3 = inlined_call_operand.vmem [shape: bf16[32,96], index: 3, kind: input, shape index: {}]   ;;  %s1618_s4 = inlined_call_operand.vmem [shape: f32[1,96], index: 4, kind: input, shape index: {}]   ;;  %s1619_s5 = inlined_call_operand.vmem [shape: bf16[32,32], index: 5, kind: input, shape index: {}]   ;;  %s1620_s6 = inlined_call_operand.vmem [shape: f32[1,32], index: 6, kind: input, shape index: {}]   ;;  %s1621_s7 = inlined_call_operand.vmem [shape: bf16[2,16,32], index: 7, kind: output, shape index: {}]  }
   0x1 LB: > { %s1168_s25 = sadd.s32 4294967295, %s1394_s24   ;;  %p1172_p0 = scmp.ge.s32.totalorder %s1394_s24, 1  ;;  %s1394_s24 = sphi %s1449_s24, %s17_s24  }
   0x2   : > { %p237_p1 = scmp.lt.s32.totalorder %s1394_s24, 3 }
   0x4   : > { %p238_p2 = pnand %p1172_p0, %p237_p1 }
   0x5   : > { %p269_p3 = scmp.lt.s32.totalorder (!%p238_p2), %s1168_s25, 1  ;;  %vm286_vm0 = vcmask (!%p238_p2), 261120   ;;  %v1350_v15 = vld [vmem:[%s1617_s3] sm:$0xff] (!%p238_p2)   ;;  %v1396_v16 = vmov (!%p238_p2), 0.0   ;;  %v1351_v17 = vld [vmem:[%s1617_s3 + $0x8] sm:$0xff] (!%p238_p2)   ;;  %vm1397_vm1 = vmmov (!%p238_p2), 0  }
   0x6   : > { %241 = sbr.rel (%p238_p2) target bundleno = 2734 (0xaae), region = 48  ;;  %1235 = vmatprep.subr.bf16.mxu0 (!%p238_p2), %v1396_v16  ;;  %1243 = vmatprep.subr.bf16.mxu1 (!%p238_p2), %v1396_v16  ;;  %v1177_v26 = vld [vmem:[%s1615_s1] ss:$0 sm:$0xff] (!%p238_p2)  ;;  %s1398_s17 = smov (!%p238_p2), 96   ;;  %vm414_vm2 = vcmask (!%p238_p2), 64512   ;;  %vm462_vm3 = vcmask (!%p238_p2), 130048  }
   0x7   : > { %1236 = vmatpush3.bf16.msra.mxu0 (!%p238_p2), %v1350_v15  ;;  %1239 = vmatprep.mubr.msk.bf16.mxu0 (!%p238_p2), %vm1397_vm1, %v1396_v16  ;;  %v1178_v30 = vld [vmem:[%s1616_s2] ss:$0 sm:$0xff] (!%p238_p2)  ;;  %s1399_s18 = smov (!%p238_p2), 88   ;;  %s1400_s19 = smov (!%p238_p2), 120   ;;  %vm538_vm4 = vcmask (!%p238_p2), 1043456   ;;  %vm1110_vm5 = vcmask (!%p238_p2), 257024  }
   0x8   : > { %1237 = vmatprep.subr.bf16.mxu0 (!%p238_p2), %v1396_v16  ;;  %1245 = vmatprep.mubr.msk.bf16.mxu1 (!%p238_p2), %vm1397_vm1, %v1396_v16  ;;  %v1179_v35 = vld [vmem:[%s1618_s4] ss:$0 sm:$0xff] (!%p238_p2)  ;;  %s1401_s20 = smov (!%p238_p2), 80   ;;  %s1402_s21 = smov (!%p238_p2), 64  }
   0x9   : > { %s1403_s22 = smov (!%p238_p2), 112   ;;  %s1404_s28 = smov (!%p238_p2), 72  }
   0xa   : > { %s1406_s30 = smov (!%p238_p2), 56   ;;  %s1407_s8 = smov (!%p238_p2), 40  }
   0xb   : > { %1238 = vmatpush3.bf16.msra.mxu0 (!%p238_p2), %v1351_v17  ;;  %v534_v17 = vld [vmem:[%s1619_s5] sm:$0xf] (!%p238_p2)  ;;  %s1408_s9 = smov (!%p238_p2), 48  }
   0xc   : > { %1249 = vmatprep.subr.bf16.mxu0 (!%p238_p2), %v1396_v16 }
   0xd   : > { %s1623_s25 = smov (!%p269_p3, %s1168_s25), 1 }
   0xe   : > { %s1200_s26 = sshll.u32 %s1623_s25, 3 }
   0xf   : > { %s273_s29 = scalar_lea.vmem %s1614_s0, %s1200_s26 }
  0x10   : > { %v1205_v0 = vld [vmem:[%s273_s29] sm:$0xff]   ;;  %s1405_s29 = smov 104  }
  0x11   : > { %v1465_v1 = vunpack.c.l.bf16 %v1205_v0  ;;  %v1467_v2 = vunpack.c.h.bf16 %v1205_v0 }
  0x13   : > { %v287_v3 = vsel %vm286_vm0, %v1465_v1, 0.0  ;;  %v290_v4 = vsel %vm286_vm0, %v1467_v2, 0.0 }
  0x14   : > { %288 = vadd.xlane.f32.xlu0 %v287_v3 }
  0x18   : > { %291 = vadd.xlane.f32.xlu0 %v290_v4 }
  0xa1   : > { %v289_v5 = vpop.xlane.xlu0 %288 }
  0xa2   : > { %v294_v6 = vmul.f32 0.03125, %v289_v5 }
  0xa4   : > { %v296_v7 = vsub.f32 %v1465_v1, %v294_v6 }
  0xa5   : > { %v292_v8 = vpop.xlane.xlu0 %291 }
  0xa6   : > { %v295_v9 = vmul.f32 0.03125, %v292_v8  ;;  %v298_v10 = vmul.f32 %v296_v7, %v296_v7 }
  0xa8   : > { %v297_v11 = vsub.f32 %v1467_v2, %v295_v9  ;;  %v300_v12 = vsel %vm286_vm0, %v298_v10, 0.0 }
  0xa9   : > { %301 = vadd.xlane.f32.xlu1 %v300_v12 }
  0xaa   : > { %v299_v13 = vmul.f32 %v297_v11, %v297_v11 }
  0xac   : > { %v303_v14 = vsel %vm286_vm0, %v299_v13, 0.0 }
  0xad   : > { %304 = vadd.xlane.f32.xlu1 %v303_v14 }
 0x136   : > { %v302_v18 = vpop.xlane.xlu1 %301 }
 0x137   : > { %v306_v19 = vmul.f32 0.03125, %v302_v18  ;;  %v540_v18 = vsel %vm538_vm4, %v534_v17, 0 }
 0x139   : > { %v308_v20 = vadd.f32 1e-05, %v306_v19 }
 0x13a   : > { %v305_v21 = vpop.xlane.xlu1 %304 }
 0x13b   : > { %1352 = vrsqrt.f32 %v308_v20  ;;  %v307_v22 = vmul.f32 0.03125, %v305_v21 }
 0x13d   : > { %v309_v23 = vadd.f32 1e-05, %v307_v22 }
 0x13f   : > { %1354 = vrsqrt.f32 %v309_v23 }
 0x145   : > { %v1353_v24 = vpop.eup %1352 }
 0x146   : > { %v312_v25 = vmul.f32 %v1353_v24, %v296_v7 }
 0x148   : > { %v320_v29 = vmul.f32 %v1177_v26, %v312_v25 }
 0x149   : > { %v1355_v27 = vpop.eup %1354 }
 0x14a   : > { %v313_v28 = vmul.f32 %v1355_v27, %v297_v11  ;;  %v328_v32 = vadd.f32 %v1178_v30, %v320_v29 }
 0x14c   : > { %v321_v31 = vmul.f32 %v1177_v26, %v313_v28 }
 0x14e   : > { %v329_v33 = vadd.f32 %v1178_v30, %v321_v31 }
 0x150   : > { %v330_v34 = vpack.c.bf16 %v329_v33, %v328_v32 }
 0x152   : > { %1240 = vmatmul.mubr.msk.bf16.vlgmr.msra.gmra.mrb[0].mxu0 %vm286_vm0, %v330_v34 }
 0x153   : > { %1251 = vmatprep.mubr.msk.bf16.mxu0 %vm1397_vm1, %v1396_v16 }
 0x225   : > { %v391_v36 = vpop.f32.mrb[0].mxu0 }
 0x226   : > { %v392_v37 = vadd.f32 %v1179_v35, %v391_v36  ;;  %v1241_v38 = vpop.f32.mrb[1].mxu0 }
 0x227   : > { %v394_v39 = vpop.f32.mrb[2].mxu0 }
 0x228   : > { %v395_v40 = vadd.f32 %v1179_v35, %v394_v39  ;;  %v1242_v41 = vpop.f32.mrb[3].mxu0  ;;  %v398_v42 = vmul.f32 0.35355338, %v392_v37 }
 0x22a   : > { %v399_v43 = vmul.f32 0.35355338, %v395_v40  ;;  %v1503_v44 = vpack.c.bf16 %v395_v40, %v392_v37 }
 0x22c   : > { %v1505_v45 = vpack.c.bf16 %v399_v43, %v398_v42  ;;  %412 = vrot.lane.b32.xlu0 %v1503_v44, %s1398_s17 }
 0x230   : > { %588 = vrot.lane.b32.xlu0 %v1503_v44, %s1399_s18 }
 0x234   : > { %586 = vrot.lane.b32.xlu0 %v1505_v45, %s1400_s19 }
 0x238   : > { %760 = vrot.lane.b32.xlu0 %v1503_v44, %s1401_s20  ;;  %s278_s20 = scalar_lea.vmem %s1621_s7, %s1200_s26 }
 0x29e   : > { %v413_v46 = vpop.permute.xlu0 %412 }
 0x29f   : > { %v419_v47 = vsel %vm414_vm2, %v413_v46, 0 }
 0x2a0   : > { %1244 = vmatpush3.bf16.xpose.msra.mxu1 %v419_v47 }
 0x2a1   : > { %1255 = vmatprep.subr.bf16.mxu1 %v1396_v16 }
 0x2a2   : > { %v589_v6 = vpop.permute.xlu0 %588 }
 0x2a3   : > { %v594_v12 = vsel %vm414_vm2, %v589_v6, 0 }
 0x2a6   : > { %v587_v11 = vpop.permute.xlu0 %586 }
 0x2a7   : > { %1246 = vmatmul.mubr.msk.bf16.vlgmr.msra.gmra.mrb[0].mxu1 %vm414_vm2, %v1505_v45 }
 0x2a8   : > { %1257 = vmatprep.mubr.msk.bf16.mxu1 %vm1397_vm1, %v1396_v16  ;;  %1256 = vmatpush3.bf16.msra.mxu1 %v540_v18 }
 0x2a9   : > { %1267 = vmatprep.subr.bf16.mxu1 %v1396_v16 }
 0x2aa   : > { %v761_v13 = vpop.permute.xlu0 %760 }
 0x2ab   : > { %v766_v14 = vsel %vm414_vm2, %v761_v13, 0 }
 0x37a   : > { %v455_v48 = vpop.f32.mrb[0].mxu1 }
 0x37b   : > { %v1247_v49 = vpop.f32.mrb[1].mxu1  ;;  %v463_v50 = vsel %vm462_vm3, %v455_v48, -inf }
 0x37c   : > { %464 = vmax.xlane.f32.xlu1 %v463_v50  ;;  %v458_v51 = vpop.f32.mrb[2].mxu1 }
 0x37d   : > { %v1248_v52 = vpop.f32.mrb[3].mxu1  ;;  %v466_v53 = vsel %vm462_vm3, %v458_v51, -inf }
 0x380   : > { %467 = vmax.xlane.f32.xlu1 %v466_v53 }
 0x409   : > { %v465_v54 = vpop.xlane.xlu1 %464 }
 0x40a   : > { %v469_v55 = vsub.f32 %v455_v48, %v465_v54 }
 0x40c   : > { %v471_v56 = vmul.f32 1.442695, %v469_v55 }
 0x40d   : > { %v468_v57 = vpop.xlane.xlu1 %467 }
 0x40e   : > { %1356 = vpow2.f32 %v471_v56  ;;  %v470_v58 = vsub.f32 %v458_v51, %v468_v57 }
 0x410   : > { %v473_v59 = vmul.f32 1.442695, %v470_v58 }
 0x412   : > { %1358 = vpow2.f32 %v473_v59 }
 0x418   : > { %v1357_v60 = vpop.eup %1356 }
 0x419   : > { %v475_v61 = vsel %vm462_vm3, %v1357_v60, 0.0 }
 0x41a   : > { %476 = vadd.xlane.f32.xlu1 %v475_v61 }
 0x41c   : > { %v1359_v62 = vpop.eup %1358 }
 0x41d   : > { %v478_v63 = vsel %vm462_vm3, %v1359_v62, 0.0 }
 0x41e   : > { %479 = vadd.xlane.f32.xlu1 %v478_v63 }
 0x42f   : > { %486 = vrot.lane.b32.xlu1 %v1503_v44, %s1402_s21 }
 0x433   : > { %758 = vrot.lane.b32.xlu1 %v1505_v45, %s1403_s22 }
 0x4a7   : > { %v477_v0 = vpop.xlane.xlu1 %476 }
 0x4a8   : > { %1360 = vrcp.f32 %v477_v0 }
 0x4ab   : > { %v480_v3 = vpop.xlane.xlu1 %479 }
 0x4ac   : > { %1362 = vrcp.f32 %v480_v3 }
 0x4af   : > { %v487_v4 = vpop.permute.xlu1 %486 }
 0x4b0   : > { %1250 = vmatpush3.bf16.msra.mxu0 %v487_v4 }
 0x4b1   : > { %1261 = vmatprep.subr.bf16.mxu0 %v1396_v16 }
 0x4b2   : > { %v1361_v5 = vpop.eup %1360 }
 0x4b3   : > { %v483_v8 = vmul.f32 %v1361_v5, %v1357_v60  ;;  %v759_v15 = vpop.permute.xlu1 %758 }
 0x4b6   : > { %v1363_v7 = vpop.eup %1362 }
 0x4b7   : > { %v484_v9 = vmul.f32 %v1363_v7, %v1359_v62 }
 0x4b9   : > { %v485_v10 = vpack.c.bf16 %v484_v9, %v483_v8 }
 0x4bb   : > { %1252 = vmatmul.mubr.msk.bf16.vlgmr.msra.gmra.mrb[4].mxu0 %vm462_vm3, %v485_v10 }
 0x4bc   : > { %1262 = vmatpush3.bf16.xpose.msra.mxu0 %v594_v12  ;;  %1263 = vmatprep.mubr.msk.bf16.mxu0 %vm1397_vm1, %v1396_v16 }
 0x4bd   : > { %1279 = vmatprep.subr.bf16.mxu0 %v1396_v16 }
 0x4c3   : > { %1264 = vmatmul.mubr.msk.bf16.vlgmr.msra.gmra.mrb[8].mxu0 %vm414_vm2, %v587_v11 }
 0x4c4   : > { %1280 = vmatpush3.bf16.xpose.msra.mxu0 %v766_v14  ;;  %1281 = vmatprep.mubr.msk.bf16.mxu0 %vm1397_vm1, %v1396_v16 }
 0x4c5   : > { %1285 = vmatprep.subr.bf16.mxu0 %v1396_v16 }
 0x4cb   : > { %1282 = vmatmul.mubr.msk.bf16.vlgmr.msra.gmra.mrb[12].mxu0 %vm414_vm2, %v759_v15 }
 0x4cc   : > { %1287 = vmatprep.mubr.msk.bf16.mxu0 %vm1397_vm1, %v1396_v16 }
 0x58e   : > { %v526_v19 = vpop.f32.mrb[4].mxu0 }
 0x58f   : > { %v1253_v20 = vpop.f32.mrb[5].mxu0 }
 0x590   : > { %v529_v21 = vpop.f32.mrb[6].mxu0 }
 0x591   : > { %v533_v22 = vpack.c.bf16 %v529_v21, %v526_v19  ;;  %v1254_v23 = vpop.f32.mrb[7].mxu0 }
 0x593   : > { %1258 = vmatmul.mubr.msk.bf16.vlgmr.msra.gmra.mrb[4].mxu1 %vm414_vm2, %v533_v22 }
 0x594   : > { %1269 = vmatprep.mubr.msk.bf16.mxu1 %vm1397_vm1, %v1396_v16 }
 0x596   : > { %v630_v24 = vpop.f32.mrb[8].mxu0 }
 0x597   : > { %v1265_v25 = vpop.f32.mrb[9].mxu0  ;;  %v637_v34 = vsel %vm462_vm3, %v630_v24, -inf }
 0x598   : > { %v1545_v26 = vpop.f32.mrb[10].mxu0  ;;  %v708_v25 = vld [vmem:[%s1619_s5 + $0x4] sm:$0xf] }
 0x599   : > { %v1266_v27 = vpop.f32.mrb[11].mxu0  ;;  %v640_v52 = vsel %vm462_vm3, %v1545_v26, -inf }
 0x59e   : > { %v802_v28 = vpop.f32.mrb[12].mxu0 }
 0x59f   : > { %v1283_v29 = vpop.f32.mrb[13].mxu0  ;;  %v809_v30 = vsel %vm462_vm3, %v802_v28, -inf }
 0x5a0   : > { %810 = vmax.xlane.f32.xlu0 %v809_v30  ;;  %v805_v31 = vpop.f32.mrb[14].mxu0 }
 0x5a1   : > { %v1284_v32 = vpop.f32.mrb[15].mxu0  ;;  %v812_v33 = vsel %vm462_vm3, %v805_v31, -inf }
 0x5a2   : > { %813 = vmax.xlane.f32.xlu1 %v812_v33 }
 0x5b3   : > { %932 = vrot.lane.b32.xlu1 %v1503_v44, %s1404_s28 }
 0x5b7   : > { %930 = vrot.lane.b32.xlu1 %v1505_v45, %s1405_s29 }
 0x5db   : > { %638 = vmax.xlane.f32.xlu1 %v637_v34 }
 0x5ec   : > { %660 = vrot.lane.b32.xlu1 %v1503_v44, %s1406_s30 }
 0x5f0   : > { %1004 = vrot.lane.b32.xlu1 %v1503_v44, %s1407_s8 }
 0x62d   : > { %v811_v35 = vpop.xlane.xlu0 %810 }
 0x62e   : > { %v815_v36 = vsub.f32 %v802_v28, %v811_v35 }
 0x62f   : > { %v814_v37 = vpop.xlane.xlu1 %813 }
 0x630   : > { %v817_v38 = vmul.f32 1.442695, %v815_v36  ;;  %v816_v39 = vsub.f32 %v805_v31, %v814_v37 }
 0x632   : > { %1364 = vpow2.f32 %v817_v38  ;;  %v819_v40 = vmul.f32 1.442695, %v816_v39  ;;  %v880_v38 = vld [vmem:[%s1619_s5 + $0x8] sm:$0xf] }
 0x633   : > { %v933_v46 = vpop.permute.xlu1 %932 }
 0x634   : > { %1366 = vpow2.f32 %v819_v40  ;;  %v938_v62 = vsel %vm414_vm2, %v933_v46, 0 }
 0x637   : > { %v931_v47 = vpop.permute.xlu1 %930 }
 0x63c   : > { %v1365_v41 = vpop.eup %1364 }
 0x63d   : > { %v821_v42 = vsel %vm462_vm3, %v1365_v41, 0.0 }
 0x63e   : > { %v1367_v43 = vpop.eup %1366  ;;  %822 = vadd.xlane.f32.xlu0 %v821_v42 }
 0x63f   : > { %v824_v45 = vsel %vm462_vm3, %v1367_v43, 0.0 }
 0x642   : > { %825 = vadd.xlane.f32.xlu0 %v824_v45 }
 0x658   : > { %832 = vrot.lane.b32.xlu0 %v1503_v44, %s1408_s9 }
 0x668   : > { %v639_v48 = vpop.xlane.xlu1 %638 }
 0x669   : > { %v643_v49 = vsub.f32 %v630_v24, %v639_v48 }
 0x66b   : > { %v645_v50 = vmul.f32 1.442695, %v643_v49 }
 0x66c   : > { %v661_v51 = vpop.permute.xlu1 %660 }
 0x66d   : > { %1368 = vpow2.f32 %v645_v50  ;;  %1268 = vmatpush3.bf16.msra.mxu1 %v661_v51  ;;  %v1052_v50 = vld [vmem:[%s1619_s5 + $0xc] sm:$0xf] }
 0x66e   : > { %1273 = vmatprep.subr.bf16.mxu1 %v1396_v16 }
 0x670   : > { %v1005_v45 = vpop.permute.xlu1 %1004 }
 0x677   : > { %v1369_v53 = vpop.eup %1368  ;;  %641 = vmax.xlane.f32.xlu0 %v640_v52 }
 0x678   : > { %v649_v54 = vsel %vm462_vm3, %v1369_v53, 0.0 }
 0x67b   : > { %650 = vadd.xlane.f32.xlu0 %v649_v54  ;;  %v1057_v54 = vsel %vm538_vm4, %v1052_v50, 0 }
 0x6cb   : > { %v823_v55 = vpop.xlane.xlu0 %822 }
 0x6cc   : > { %1370 = vrcp.f32 %v823_v55 }
 0x6cf   : > { %v826_v44 = vpop.xlane.xlu0 %825 }
 0x6d0   : > { %1372 = vrcp.f32 %v826_v44 }
 0x6d3   : > { %v833_v56 = vpop.permute.xlu0 %832 }
 0x6d4   : > { %1286 = vmatpush3.bf16.msra.mxu0 %v833_v56 }
 0x6d5   : > { %1297 = vmatprep.subr.bf16.mxu0 %v1396_v16 }
 0x6d6   : > { %v1371_v57 = vpop.eup %1370 }
 0x6d7   : > { %v829_v59 = vmul.f32 %v1371_v57, %v1365_v41 }
 0x6da   : > { %v1373_v58 = vpop.eup %1372 }
 0x6db   : > { %v830_v60 = vmul.f32 %v1373_v58, %v1367_v43  ;;  %v885_v43 = vsel %vm538_vm4, %v880_v38, 0 }
 0x6dd   : > { %v831_v61 = vpack.c.bf16 %v830_v60, %v829_v59  ;;  %v1183_v59 = vld [vmem:[%s1620_s6] ss:$0 sm:$0xff] }
 0x6de   : > { %v407_v60 = vadd.f32 %v1465_v1, %v1183_v59 }
 0x6df   : > { %1288 = vmatmul.mubr.msk.bf16.vlgmr.msra.gmra.mrb[16].mxu0 %vm462_vm3, %v831_v61  ;;  %v408_v61 = vadd.f32 %v1467_v2, %v1183_v59 }
 0x6e0   : > { %1298 = vmatpush3.bf16.xpose.msra.mxu0 %v938_v62  ;;  %1299 = vmatprep.mubr.msk.bf16.mxu0 %vm1397_vm1, %v1396_v16 }
 0x6e7   : > { %1300 = vmatmul.mubr.msk.bf16.vlgmr.msra.gmra.mrb[20].mxu0 %vm414_vm2, %v931_v47 }
 0x704   : > { %v642_v63 = vpop.xlane.xlu0 %641 }
 0x705   : > { %v644_v0 = vsub.f32 %v1545_v26, %v642_v63  ;;  %v713_v26 = vsel %vm538_vm4, %v708_v25, 0 }
 0x707   : > { %v647_v3 = vmul.f32 1.442695, %v644_v0 }
 0x708   : > { %v651_v6 = vpop.xlane.xlu0 %650 }
 0x709   : > { %1374 = vpow2.f32 %v647_v3 }
 0x70a   : > { %1376 = vrcp.f32 %v651_v6 }
 0x713   : > { %v1375_v4 = vpop.eup %1374 }
 0x714   : > { %v652_v5 = vsel %vm462_vm3, %v1375_v4, 0.0  ;;  %v1377_v8 = vpop.eup %1376 }
 0x715   : > { %653 = vadd.xlane.f32.xlu0 %v652_v5  ;;  %v657_v10 = vmul.f32 %v1377_v8, %v1369_v53 }
 0x7a2   : > { %v654_v7 = vpop.xlane.xlu0 %653 }
 0x7a3   : > { %1378 = vrcp.f32 %v654_v7 }
 0x7ad   : > { %v1379_v9 = vpop.eup %1378 }
 0x7ae   : > { %v658_v11 = vmul.f32 %v1379_v9, %v1375_v4 }
 0x7b0   : > { %v659_v12 = vpack.c.bf16 %v658_v11, %v657_v10 }
 0x7b2   : > { %1270 = vmatmul.mubr.msk.bf16.vlgmr.msra.gmra.mrb[8].mxu1 %vm462_vm3, %v659_v12  ;;  %v872_v13 = vpop.f32.mrb[16].mxu0 }
 0x7b3   : > { %v1289_v14 = vpop.f32.mrb[17].mxu0  ;;  %1275 = vmatprep.mubr.msk.bf16.mxu1 %vm1397_vm1, %v1396_v16  ;;  %1274 = vmatpush3.bf16.msra.mxu1 %v713_v26 }
 0x7b4   : > { %v875_v15 = vpop.f32.mrb[18].mxu0  ;;  %1291 = vmatprep.subr.bf16.mxu1 %v1396_v16 }
 0x7b5   : > { %v879_v17 = vpack.c.bf16 %v875_v15, %v872_v13  ;;  %v1290_v18 = vpop.f32.mrb[19].mxu0 }
 0x7ba   : > { %v974_v19 = vpop.f32.mrb[20].mxu0 }
 0x7bb   : > { %v1301_v20 = vpop.f32.mrb[21].mxu0  ;;  %v981_v21 = vsel %vm462_vm3, %v974_v19, -inf }
 0x7bc   : > { %982 = vmax.xlane.f32.xlu0 %v981_v21  ;;  %v977_v22 = vpop.f32.mrb[22].mxu0 }
 0x7bd   : > { %v1302_v23 = vpop.f32.mrb[23].mxu0  ;;  %v984_v24 = vsel %vm462_vm3, %v977_v22, -inf }
 0x7c0   : > { %985 = vmax.xlane.f32.xlu0 %v984_v24 }
 0x849   : > { %v983_v27 = vpop.xlane.xlu0 %982 }
 0x84a   : > { %v987_v28 = vsub.f32 %v974_v19, %v983_v27 }
 0x84c   : > { %v989_v29 = vmul.f32 1.442695, %v987_v28 }
 0x84d   : > { %v986_v30 = vpop.xlane.xlu0 %985 }
 0x84e   : > { %1380 = vpow2.f32 %v989_v29  ;;  %v988_v31 = vsub.f32 %v977_v22, %v986_v30 }
 0x850   : > { %v991_v32 = vmul.f32 1.442695, %v988_v31 }
 0x852   : > { %1382 = vpow2.f32 %v991_v32 }
 0x858   : > { %v1381_v33 = vpop.eup %1380 }
 0x859   : > { %v993_v34 = vsel %vm462_vm3, %v1381_v33, 0.0 }
 0x85a   : > { %994 = vadd.xlane.f32.xlu0 %v993_v34 }
 0x85c   : > { %v1383_v35 = vpop.eup %1382 }
 0x85d   : > { %v996_v36 = vsel %vm462_vm3, %v1383_v35, 0.0 }
 0x85e   : > { %997 = vadd.xlane.f32.xlu0 %v996_v36 }
 0x885   : > { %v700_v37 = vpop.f32.mrb[8].mxu1 }
 0x886   : > { %v1271_v39 = vpop.f32.mrb[9].mxu1 }
 0x887   : > { %v703_v40 = vpop.f32.mrb[10].mxu1 }
 0x888   : > { %v707_v41 = vpack.c.bf16 %v703_v40, %v700_v37  ;;  %v1272_v42 = vpop.f32.mrb[11].mxu1 }
 0x88a   : > { %1276 = vmatmul.mubr.msk.bf16.vlgmr.msra.gmra.mrb[4].mxu1 %vm414_vm2, %v707_v41 }
 0x88b   : > { %1292 = vmatpush3.bf16.msra.mxu1 %v885_v43  ;;  %1293 = vmatprep.mubr.msk.bf16.mxu1 %vm1397_vm1, %v1396_v16 }
 0x88c   : > { %1303 = vmatprep.subr.bf16.mxu1 %v1396_v16 }
 0x896   : > { %1294 = vmatmul.mubr.msk.bf16.vlgmr.msra.gmra.mrb[4].mxu1 %vm414_vm2, %v879_v17 }
 0x897   : > { %1304 = vmatpush3.bf16.msra.mxu1 %v1005_v45  ;;  %1305 = vmatprep.mubr.msk.bf16.mxu1 %vm1397_vm1, %v1396_v16 }
 0x898   : > { %1309 = vmatprep.subr.bf16.mxu1 %v1396_v16 }
 0x8e7   : > { %v995_v46 = vpop.xlane.xlu0 %994 }
 0x8e8   : > { %1384 = vrcp.f32 %v995_v46 }
 0x8eb   : > { %v998_v47 = vpop.xlane.xlu0 %997 }
 0x8ec   : > { %1386 = vrcp.f32 %v998_v47 }
 0x8f2   : > { %v1385_v48 = vpop.eup %1384 }
 0x8f3   : > { %v1001_v51 = vmul.f32 %v1385_v48, %v1381_v33 }
 0x8f6   : > { %v1387_v49 = vpop.eup %1386 }
 0x8f7   : > { %v1002_v52 = vmul.f32 %v1387_v49, %v1383_v35 }
 0x8f9   : > { %v1003_v53 = vpack.c.bf16 %v1002_v52, %v1001_v51 }
 0x8fb   : > { %1306 = vmatmul.mubr.msk.bf16.vlgmr.msra.gmra.mrb[12].mxu1 %vm462_vm3, %v1003_v53 }
 0x8fc   : > { %1310 = vmatpush3.bf16.msra.mxu1 %v1057_v54  ;;  %1311 = vmatprep.mubr.msk.bf16.mxu1 %vm1397_vm1, %v1396_v16 }
 0x9ce   : > { %v1044_v55 = vpop.f32.mrb[12].mxu1 }
 0x9cf   : > { %v1307_v44 = vpop.f32.mrb[13].mxu1 }
 0x9d0   : > { %v1047_v56 = vpop.f32.mrb[14].mxu1 }
 0x9d1   : > { %v1051_v57 = vpack.c.bf16 %v1047_v56, %v1044_v55  ;;  %v1308_v58 = vpop.f32.mrb[15].mxu1 }
 0x9d3   : > { %1312 = vmatmul.mubr.msk.bf16.vlgmr.msra.gmra.mrb[4].mxu1 %vm414_vm2, %v1051_v57 }
 0xaa6   : > { %v1093_v62 = vpop.f32.mrb[4].mxu1 }
 0xaa7   : > { %v1315_v63 = vadd.f32 %v1093_v62, %v407_v60  ;;  %v1313_v0 = vpop.f32.mrb[5].mxu1 }
 0xaa8   : > { %v1096_v16 = vpop.f32.mrb[6].mxu1 }
 0xaa9   : > { %v1202_v3 = vpack.c.bf16 %v1315_v63, %v1315_v63  ;;  %v1316_v4 = vadd.f32 %v1096_v16, %v408_v61  ;;  %v1314_v5 = vpop.f32.mrb[7].mxu1 }
 0xaab   : > { %1111 = vst.msk [vmem:[%s278_s20] sm:$0xf] %vm1110_vm5, %v1202_v3  ;;  %v1203_v6 = vpack.c.bf16 %v1316_v4, %v1316_v4 }
 0xaad   : > { %1112 = vst.msk [vmem:[%s278_s20 + $0x4] sm:$0xf] %vm1110_vm5, %v1203_v6 }
 0xaae PF: > { %s17_s24 = sadd.s32 1, %s1394_s24  }
 0xaaf   : > { %p14_p4 = scmp.ge.s32.totalorder %s17_s24, 4  }
 0xab1   :  { %16 = sbr.rel (!%p14_p4) target bundleno = 1 (0x1), region = 78 }

// kernel: _lambda_.14
= control target key start
LH: loop header
LB: loop body
LE: loop exit
PB: predicated region body
PF: predicated region fallthrough
CT: control target
= control target key end

     0   :  { %s1330_s24 = smov 0   ;;  %s1480_s0 = inlined_call_operand.vmem [shape: bf16[2,8,32], index: 0, kind: input, shape index: {}]   ;;  %s1481_s1 = inlined_call_operand.vmem [shape: f32[1,32], index: 1, kind: input, shape index: {}]   ;;  %s1482_s2 = inlined_call_operand.vmem [shape: f32[1,32], index: 2, kind: input, shape index: {}]   ;;  %s1483_s3 = inlined_call_operand.vmem [shape: bf16[32,96], index: 3, kind: input, shape index: {}]   ;;  %s1484_s4 = inlined_call_operand.vmem [shape: f32[1,96], index: 4, kind: input, shape index: {}]   ;;  %s1485_s5 = inlined_call_operand.vmem [shape: bf16[32,32], index: 5, kind: input, shape index: {}]   ;;  %s1486_s6 = inlined_call_operand.vmem [shape: f32[1,32], index: 6, kind: input, shape index: {}]   ;;  %s1487_s7 = inlined_call_operand.vmem [shape: bf16[2,8,32], index: 7, kind: output, shape index: {}]  }
   0x1 LB: > { %s1080_s25 = sadd.s32 4294967295, %s1275_s24   ;;  %p1084_p0 = scmp.ge.s32.totalorder %s1275_s24, 1  ;;  %s1275_s24 = sphi %s1330_s24, %s17_s24  }
   0x2   : > { %p236_p1 = scmp.lt.s32.totalorder %s1275_s24, 3 }
   0x4   : > { %p237_p2 = pnand %p1084_p0, %p236_p1 }
   0x5   : > { %p266_p3 = scmp.lt.s32.totalorder (!%p237_p2), %s1080_s25, 1  ;;  %vm279_vm0 = vcmask (!%p237_p2), 261120   ;;  %v1249_v8 = vld [vmem:[%s1483_s3] sm:$0xff] (!%p237_p2)   ;;  %v1277_v9 = vmov (!%p237_p2), 0.0   ;;  %vm1278_vm1 = vmmov (!%p237_p2), 0   ;;  %v1250_v10 = vld [vmem:[%s1483_s3 + $0x8] sm:$0xff] (!%p237_p2)  }
   0x6   : > { %240 = sbr.rel (%p237_p2) target bundleno = 2712 (0xa98), region = 48  ;;  %1135 = vmatprep.subr.bf16.mxu0 (!%p237_p2), %v1277_v9  ;;  %1139 = vmatprep.mubr.msk.bf16.mxu0 (!%p237_p2), %vm1278_vm1, %v1277_v9  ;;  %v1087_v15 = vld [vmem:[%s1481_s1] ss:$0 sm:$0xff] (!%p237_p2)  ;;  %s1279_s17 = smov (!%p237_p2), 64   ;;  %vm453_vm2 = vcmask (!%p237_p2), 1043456   ;;  %vm389_vm3 = vcmask (!%p237_p2), 64512  }
   0x7   : > { %1136 = vmatpush3.bf16.msra.mxu0 (!%p237_p2), %v1249_v8  ;;  %1143 = vmatprep.subr.bf16.mxu1 (!%p237_p2), %v1277_v9  ;;  %v1088_v17 = vld [vmem:[%s1482_s2] ss:$0 sm:$0xff] (!%p237_p2)  ;;  %s1280_s18 = smov (!%p237_p2), 96   ;;  %s1281_s19 = smov (!%p237_p2), 80   ;;  %vm1025_vm4 = vcmask (!%p237_p2), 257024  }
   0x8   : > { %1137 = vmatprep.subr.bf16.mxu0 (!%p237_p2), %v1277_v9  ;;  %1145 = vmatprep.mubr.msk.bf16.mxu1 (!%p237_p2), %vm1278_vm1, %v1277_v9  ;;  %v1089_v21 = vld [vmem:[%s1484_s4] ss:$0 sm:$0xff] (!%p237_p2)  ;;  %s1282_s20 = smov (!%p237_p2), 88   ;;  %s1283_s21 = smov (!%p237_p2), 120  }
   0x9   : > { %s1284_s22 = smov (!%p237_p2), 112   ;;  %v498_v54 = vld [vmem:[%s1485_s5] sm:$0xf] (!%p237_p2)  ;;  %s1285_s28 = smov (!%p237_p2), 48  }
   0xa   : > { %v503_v55 = vsel (!%p237_p2), %vm453_vm2, %v498_v54, 0  ;;  %s1287_s30 = smov (!%p237_p2), 56   ;;  %s1288_s8 = smov (!%p237_p2), 72  }
   0xb   : > { %1138 = vmatpush3.bf16.msra.mxu0 (!%p237_p2), %v1250_v10  ;;  %s1289_s13 = smov (!%p237_p2), 40  }
   0xc   : > { %1149 = vmatprep.subr.bf16.mxu0 (!%p237_p2), %v1277_v9 }
   0xd   : > { %s1489_s25 = smov (!%p266_p3, %s1080_s25), 1 }
   0xe   : > { %s1085_s26 = sshll.u32 %s1489_s25, 2 }
   0xf   : > { %s269_s29 = scalar_lea.vmem %s1480_s0, %s1085_s26 }
  0x10   : > { %v275_v0 = vld [vmem:[%s269_s29] sm:$0xf]  ;;  %s1286_s29 = smov 104  }
  0x11   : > { %v1346_v1 = vunpack.c.l.bf16 %v275_v0 }
  0x13   : > { %v280_v2 = vsel %vm279_vm0, %v1346_v1, 0.0 }
  0x14   : > { %281 = vadd.xlane.f32.xlu0 %v280_v2 }
  0xa1   : > { %v282_v3 = vpop.xlane.xlu0 %281 }
  0xa2   : > { %v284_v4 = vmul.f32 0.03125, %v282_v3 }
  0xa4   : > { %v285_v5 = vsub.f32 %v1346_v1, %v284_v4 }
  0xa6   : > { %v286_v6 = vmul.f32 %v285_v5, %v285_v5 }
  0xa8   : > { %v287_v7 = vsel %vm279_vm0, %v286_v6, 0.0 }
  0xa9   : > { %288 = vadd.xlane.f32.xlu0 %v287_v7 }
 0x136   : > { %v289_v11 = vpop.xlane.xlu0 %288 }
 0x137   : > { %v290_v12 = vmul.f32 0.03125, %v289_v11 }
 0x139   : > { %v291_v13 = vadd.f32 1e-05, %v290_v12 }
 0x13b   : > { %1251 = vrsqrt.f32 %v291_v13 }
 0x145   : > { %v1252_v14 = vpop.eup %1251 }
 0x146   : > { %v293_v16 = vmul.f32 %v1252_v14, %v285_v5 }
 0x148   : > { %v300_v18 = vmul.f32 %v1087_v15, %v293_v16 }
 0x14a   : > { %v307_v19 = vadd.f32 %v1088_v17, %v300_v18 }
 0x14c   : > { %v308_v20 = vpack.c.bf16 %v307_v19, %v307_v19 }
 0x14e   : > { %1140 = vmatmul.mubr.msk.bf16.vlgmr.msra.gmra.mrb[0].mxu0 %vm279_vm0, %v308_v20 }
 0x14f   : > { %1151 = vmatprep.mubr.msk.bf16.mxu0 %vm1278_vm1, %v1277_v9 }
 0x221   : > { %v369_v22 = vpop.f32.mrb[0].mxu0 }
 0x222   : > { %v370_v23 = vadd.f32 %v1089_v21, %v369_v22  ;;  %v1141_v24 = vpop.f32.mrb[1].mxu0 }
 0x223   : > { %v372_v25 = vpop.f32.mrb[2].mxu0 }
 0x224   : > { %v1378_v26 = vpack.c.bf16 %v370_v23, %v370_v23  ;;  %v1142_v27 = vpop.f32.mrb[3].mxu0  ;;  %v375_v32 = vmul.f32 0.35355338, %v370_v23 }
 0x226   : > { %448 = vrot.lane.b32.xlu0 %v1378_v26, %s1279_s17  ;;  %387 = vrot.lane.b32.xlu1 %v1378_v26, %s1280_s18  ;;  %v1386_v33 = vpack.c.bf16 %v375_v32, %v375_v32 }
 0x298   : > { %v449_v28 = vpop.permute.xlu0 %448  ;;  %v388_v29 = vpop.permute.xlu1 %387 }
 0x299   : > { %v455_v30 = vsel %vm453_vm2, %v449_v28, 0  ;;  %v394_v31 = vsel %vm389_vm3, %v388_v29, 0 }
 0x29a   : > { %1144 = vmatpush3.bf16.xpose.msra.mxu1 %v394_v31  ;;  %1150 = vmatpush3.bf16.msra.mxu0 %v455_v30 }
 0x29b   : > { %1161 = vmatprep.subr.bf16.mxu0 %v1277_v9  ;;  %1155 = vmatprep.subr.bf16.mxu1 %v1277_v9 }
 0x2a1   : > { %1146 = vmatmul.mubr.msk.bf16.vlgmr.msra.gmra.mrb[0].mxu1 %vm389_vm3, %v1386_v33 }
 0x2a2   : > { %1157 = vmatprep.mubr.msk.bf16.mxu1 %vm1278_vm1, %v1277_v9  ;;  %1156 = vmatpush3.bf16.msra.mxu1 %v503_v55 }
 0x2a3   : > { %1167 = vmatprep.subr.bf16.mxu1 %v1277_v9 }
 0x374   : > { %v430_v34 = vpop.f32.mrb[0].mxu1 }
 0x375   : > { %v1147_v35 = vpop.f32.mrb[1].mxu1  ;;  %v436_v36 = vsel %vm389_vm3, %v430_v34, -inf }
 0x376   : > { %437 = vmax.xlane.f32.xlu1 %v436_v36  ;;  %v433_v37 = vpop.f32.mrb[2].mxu1  ;;  %v658_v35 = vld [vmem:[%s1485_s5 + $0x4] sm:$0xf] }
 0x377   : > { %v1148_v38 = vpop.f32.mrb[3].mxu1  ;;  %v663_v36 = vsel %vm453_vm2, %v658_v35, 0 }
 0x387   : > { %708 = vrot.lane.b32.xlu1 %v1378_v26, %s1281_s19 }
 0x403   : > { %v438_v39 = vpop.xlane.xlu1 %437 }
 0x404   : > { %v439_v40 = vsub.f32 %v430_v34, %v438_v39 }
 0x406   : > { %v440_v41 = vmul.f32 1.442695, %v439_v40 }
 0x407   : > { %v709_v50 = vpop.permute.xlu1 %708 }
 0x408   : > { %1253 = vpow2.f32 %v440_v41  ;;  %v714_v52 = vsel %vm389_vm3, %v709_v50, 0 }
 0x412   : > { %v1254_v42 = vpop.eup %1253 }
 0x413   : > { %v442_v43 = vsel %vm389_vm3, %v1254_v42, 0.0 }
 0x414   : > { %443 = vadd.xlane.f32.xlu0 %v442_v43 }
 0x42a   : > { %549 = vrot.lane.b32.xlu0 %v1378_v26, %s1282_s20  ;;  %s273_s20 = scalar_lea.vmem %s1487_s7, %s1085_s26 }
 0x42e   : > { %547 = vrot.lane.b32.xlu0 %v1386_v33, %s1283_s21 }
 0x432   : > { %706 = vrot.lane.b32.xlu0 %v1386_v33, %s1284_s22 }
 0x4a1   : > { %v444_v44 = vpop.xlane.xlu0 %443 }
 0x4a2   : > { %1255 = vrcp.f32 %v444_v44 }
 0x4a5   : > { %v550_v47 = vpop.permute.xlu0 %549 }
 0x4a6   : > { %v555_v49 = vsel %vm389_vm3, %v550_v47, 0 }
 0x4a9   : > { %v548_v51 = vpop.permute.xlu0 %547 }
 0x4ac   : > { %v1256_v45 = vpop.eup %1255 }
 0x4ad   : > { %v446_v46 = vmul.f32 %v1256_v45, %v1254_v42  ;;  %v707_v53 = vpop.permute.xlu0 %706 }
 0x4af   : > { %v447_v48 = vpack.c.bf16 %v446_v46, %v446_v46  ;;  %v817_v46 = vld [vmem:[%s1485_s5 + $0x8] sm:$0xf] }
 0x4b0   : > { %v822_v50 = vsel %vm453_vm2, %v817_v46, 0 }
 0x4b1   : > { %1152 = vmatmul.mubr.msk.bf16.vlgmr.msra.gmra.mrb[4].mxu0 %vm389_vm3, %v447_v48 }
 0x4b2   : > { %1162 = vmatpush3.bf16.xpose.msra.mxu0 %v555_v49  ;;  %1163 = vmatprep.mubr.msk.bf16.mxu0 %vm1278_vm1, %v1277_v9 }
 0x4b3   : > { %1179 = vmatprep.subr.bf16.mxu0 %v1277_v9 }
 0x4b9   : > { %1164 = vmatmul.mubr.msk.bf16.vlgmr.msra.gmra.mrb[8].mxu0 %vm389_vm3, %v548_v51 }
 0x4ba   : > { %1180 = vmatpush3.bf16.xpose.msra.mxu0 %v714_v52  ;;  %1181 = vmatprep.mubr.msk.bf16.mxu0 %vm1278_vm1, %v1277_v9 }
 0x4bb   : > { %1185 = vmatprep.subr.bf16.mxu0 %v1277_v9 }
 0x4c1   : > { %1182 = vmatmul.mubr.msk.bf16.vlgmr.msra.gmra.mrb[12].mxu0 %vm389_vm3, %v707_v53 }
 0x4c2   : > { %1187 = vmatprep.mubr.msk.bf16.mxu0 %vm1278_vm1, %v1277_v9 }
 0x584   : > { %v491_v56 = vpop.f32.mrb[4].mxu0 }
 0x585   : > { %v497_v57 = vpack.c.bf16 %v491_v56, %v491_v56  ;;  %v1153_v58 = vpop.f32.mrb[5].mxu0 }
 0x586   : > { %v494_v59 = vpop.f32.mrb[6].mxu0 }
 0x587   : > { %v1154_v60 = vpop.f32.mrb[7].mxu0  ;;  %1158 = vmatmul.mubr.msk.bf16.vlgmr.msra.gmra.mrb[4].mxu1 %vm389_vm3, %v497_v57 }
 0x588   : > { %1169 = vmatprep.mubr.msk.bf16.mxu1 %vm1278_vm1, %v1277_v9 }
 0x58c   : > { %v591_v61 = vpop.f32.mrb[8].mxu0 }
 0x58d   : > { %v1165_v62 = vpop.f32.mrb[9].mxu0  ;;  %v597_v7 = vsel %vm389_vm3, %v591_v61, -inf }
 0x58e   : > { %v594_v63 = vpop.f32.mrb[10].mxu0 }
 0x58f   : > { %v1166_v0 = vpop.f32.mrb[11].mxu0  ;;  %v976_v63 = vld [vmem:[%s1485_s5 + $0xc] sm:$0xf] }
 0x594   : > { %v750_v2 = vpop.f32.mrb[12].mxu0 }
 0x595   : > { %v1183_v3 = vpop.f32.mrb[13].mxu0  ;;  %v756_v4 = vsel %vm389_vm3, %v750_v2, -inf }
 0x596   : > { %757 = vmax.xlane.f32.xlu0 %v756_v4  ;;  %v753_v5 = vpop.f32.mrb[14].mxu0  ;;  %v981_v3 = vsel %vm453_vm2, %v976_v63, 0 }
 0x597   : > { %v1184_v6 = vpop.f32.mrb[15].mxu0 }
 0x5ac   : > { %768 = vrot.lane.b32.xlu0 %v1378_v26, %s1285_s28 }
 0x5b0   : > { %865 = vrot.lane.b32.xlu0 %v1386_v33, %s1286_s29 }
 0x5cf   : > { %598 = vmax.xlane.f32.xlu0 %v597_v7 }
 0x5e5   : > { %609 = vrot.lane.b32.xlu0 %v1378_v26, %s1287_s30 }
 0x623   : > { %v758_v8 = vpop.xlane.xlu0 %757 }
 0x624   : > { %v759_v10 = vsub.f32 %v750_v2, %v758_v8  ;;  %v1093_v8 = vld [vmem:[%s1486_s6] ss:$0 sm:$0xff] }
 0x626   : > { %v760_v11 = vmul.f32 1.442695, %v759_v10  ;;  %v383_v10 = vadd.f32 %v1093_v8, %v1346_v1 }
 0x627   : > { %v769_v12 = vpop.permute.xlu0 %768 }
 0x628   : > { %1257 = vpow2.f32 %v760_v11  ;;  %v774_v13 = vsel %vm453_vm2, %v769_v12, 0 }
 0x629   : > { %1186 = vmatpush3.bf16.msra.mxu0 %v774_v13 }
 0x62a   : > { %1197 = vmatprep.subr.bf16.mxu0 %v1277_v9 }
 0x62b   : > { %v866_v16 = vpop.permute.xlu0 %865 }
 0x632   : > { %v1258_v14 = vpop.eup %1257 }
 0x633   : > { %v762_v15 = vsel %vm389_vm3, %v1258_v14, 0.0 }
 0x634   : > { %763 = vadd.xlane.f32.xlu1 %v762_v15 }
 0x645   : > { %867 = vrot.lane.b32.xlu1 %v1378_v26, %s1288_s8 }
 0x65c   : > { %v599_v17 = vpop.xlane.xlu0 %598 }
 0x65d   : > { %v600_v18 = vsub.f32 %v591_v61, %v599_v17 }
 0x65f   : > { %v601_v19 = vmul.f32 1.442695, %v600_v18 }
 0x660   : > { %v610_v20 = vpop.permute.xlu0 %609 }
 0x661   : > { %1259 = vpow2.f32 %v601_v19  ;;  %v615_v21 = vsel %vm453_vm2, %v610_v20, 0 }
 0x662   : > { %1168 = vmatpush3.bf16.msra.mxu1 %v615_v21 }
 0x663   : > { %1173 = vmatprep.subr.bf16.mxu1 %v1277_v9 }
 0x66b   : > { %v1260_v22 = vpop.eup %1259 }
 0x66c   : > { %v603_v23 = vsel %vm389_vm3, %v1260_v22, 0.0 }
 0x66d   : > { %604 = vadd.xlane.f32.xlu1 %v603_v23 }
 0x6c1   : > { %v764_v24 = vpop.xlane.xlu1 %763 }
 0x6c2   : > { %1261 = vrcp.f32 %v764_v24 }
 0x6c5   : > { %v868_v28 = vpop.permute.xlu1 %867 }
 0x6c6   : > { %v873_v30 = vsel %vm389_vm3, %v868_v28, 0 }
 0x6cc   : > { %v1262_v25 = vpop.eup %1261 }
 0x6cd   : > { %v766_v27 = vmul.f32 %v1262_v25, %v1258_v14 }
 0x6cf   : > { %v767_v29 = vpack.c.bf16 %v766_v27, %v766_v27 }
 0x6d1   : > { %1188 = vmatmul.mubr.msk.bf16.vlgmr.msra.gmra.mrb[16].mxu0 %vm389_vm3, %v767_v29 }
 0x6d2   : > { %1198 = vmatpush3.bf16.xpose.msra.mxu0 %v873_v30  ;;  %1199 = vmatprep.mubr.msk.bf16.mxu0 %vm1278_vm1, %v1277_v9 }
 0x6d9   : > { %1200 = vmatmul.mubr.msk.bf16.vlgmr.msra.gmra.mrb[20].mxu0 %vm389_vm3, %v866_v16 }
 0x6fa   : > { %v605_v31 = vpop.xlane.xlu1 %604 }
 0x6fb   : > { %1263 = vrcp.f32 %v605_v31 }
 0x705   : > { %v1264_v32 = vpop.eup %1263 }
 0x706   : > { %v607_v33 = vmul.f32 %v1264_v32, %v1260_v22 }
 0x708   : > { %v608_v34 = vpack.c.bf16 %v607_v33, %v607_v33 }
 0x70a   : > { %1170 = vmatmul.mubr.msk.bf16.vlgmr.msra.gmra.mrb[8].mxu1 %vm389_vm3, %v608_v34 }
 0x70b   : > { %1175 = vmatprep.mubr.msk.bf16.mxu1 %vm1278_vm1, %v1277_v9  ;;  %1174 = vmatpush3.bf16.msra.mxu1 %v663_v36 }
 0x70c   : > { %1191 = vmatprep.subr.bf16.mxu1 %v1277_v9 }
 0x7a4   : > { %v810_v37 = vpop.f32.mrb[16].mxu0 }
 0x7a5   : > { %v1189_v38 = vpop.f32.mrb[17].mxu0  ;;  %v816_v53 = vpack.c.bf16 %v810_v37, %v810_v37 }
 0x7a6   : > { %v813_v39 = vpop.f32.mrb[18].mxu0 }
 0x7a7   : > { %v1190_v40 = vpop.f32.mrb[19].mxu0 }
 0x7ac   : > { %v909_v41 = vpop.f32.mrb[20].mxu0 }
 0x7ad   : > { %v1201_v42 = vpop.f32.mrb[21].mxu0  ;;  %v915_v43 = vsel %vm389_vm3, %v909_v41, -inf }
 0x7ae   : > { %916 = vmax.xlane.f32.xlu1 %v915_v43  ;;  %v912_v44 = vpop.f32.mrb[22].mxu0 }
 0x7af   : > { %v1202_v45 = vpop.f32.mrb[23].mxu0 }
 0x7dd   : > { %v651_v47 = vpop.f32.mrb[8].mxu1 }
 0x7de   : > { %v657_v48 = vpack.c.bf16 %v651_v47, %v651_v47  ;;  %v1171_v49 = vpop.f32.mrb[9].mxu1 }
 0x7df   : > { %v654_v51 = vpop.f32.mrb[10].mxu1 }
 0x7e0   : > { %v1172_v52 = vpop.f32.mrb[11].mxu1  ;;  %1176 = vmatmul.mubr.msk.bf16.vlgmr.msra.gmra.mrb[4].mxu1 %vm389_vm3, %v657_v48 }
 0x7e1   : > { %1192 = vmatpush3.bf16.msra.mxu1 %v822_v50  ;;  %1193 = vmatprep.mubr.msk.bf16.mxu1 %vm1278_vm1, %v1277_v9 }
 0x7e2   : > { %1203 = vmatprep.subr.bf16.mxu1 %v1277_v9 }
 0x7ec   : > { %1194 = vmatmul.mubr.msk.bf16.vlgmr.msra.gmra.mrb[4].mxu1 %vm389_vm3, %v816_v53 }
 0x7ed   : > { %1205 = vmatprep.mubr.msk.bf16.mxu1 %vm1278_vm1, %v1277_v9 }
 0x83b   : > { %v917_v54 = vpop.xlane.xlu1 %916 }
 0x83c   : > { %v918_v55 = vsub.f32 %v909_v41, %v917_v54 }
 0x83e   : > { %v919_v56 = vmul.f32 1.442695, %v918_v55 }
 0x840   : > { %1265 = vpow2.f32 %v919_v56 }
 0x84a   : > { %v1266_v57 = vpop.eup %1265 }
 0x84b   : > { %v921_v58 = vsel %vm389_vm3, %v1266_v57, 0.0 }
 0x84c   : > { %922 = vadd.xlane.f32.xlu1 %v921_v58 }
 0x85d   : > { %927 = vrot.lane.b32.xlu1 %v1378_v26, %s1289_s13 }
 0x8d9   : > { %v923_v59 = vpop.xlane.xlu1 %922 }
 0x8da   : > { %1267 = vrcp.f32 %v923_v59 }
 0x8dd   : > { %v928_v60 = vpop.permute.xlu1 %927 }
 0x8de   : > { %v933_v61 = vsel %vm453_vm2, %v928_v60, 0 }
 0x8df   : > { %1204 = vmatpush3.bf16.msra.mxu1 %v933_v61 }
 0x8e0   : > { %1209 = vmatprep.subr.bf16.mxu1 %v1277_v9 }
 0x8e4   : > { %v1268_v62 = vpop.eup %1267 }
 0x8e5   : > { %v925_v0 = vmul.f32 %v1268_v62, %v1266_v57 }
 0x8e7   : > { %v926_v2 = vpack.c.bf16 %v925_v0, %v925_v0 }
 0x8e9   : > { %1206 = vmatmul.mubr.msk.bf16.vlgmr.msra.gmra.mrb[12].mxu1 %vm389_vm3, %v926_v2 }
 0x8ea   : > { %1210 = vmatpush3.bf16.msra.mxu1 %v981_v3  ;;  %1211 = vmatprep.mubr.msk.bf16.mxu1 %vm1278_vm1, %v1277_v9 }
 0x9bc   : > { %v969_v26 = vpop.f32.mrb[12].mxu1 }
 0x9bd   : > { %v975_v4 = vpack.c.bf16 %v969_v26, %v969_v26  ;;  %v1207_v5 = vpop.f32.mrb[13].mxu1 }
 0x9be   : > { %v972_v6 = vpop.f32.mrb[14].mxu1 }
 0x9bf   : > { %v1208_v7 = vpop.f32.mrb[15].mxu1  ;;  %1212 = vmatmul.mubr.msk.bf16.vlgmr.msra.gmra.mrb[4].mxu1 %vm389_vm3, %v975_v4 }
 0xa92   : > { %v1017_v11 = vpop.f32.mrb[4].mxu1 }
 0xa93   : > { %v1215_v12 = vadd.f32 %v1017_v11, %v383_v10  ;;  %v1213_v13 = vpop.f32.mrb[5].mxu1 }
 0xa94   : > { %v1020_v9 = vpop.f32.mrb[6].mxu1 }
 0xa95   : > { %v1024_v14 = vpack.c.bf16 %v1215_v12, %v1215_v12  ;;  %v1214_v15 = vpop.f32.mrb[7].mxu1 }
 0xa97   : > { %1026 = vst.msk [vmem:[%s273_s20] sm:$0xf] %vm1025_vm4, %v1024_v14 }
 0xa98 PF: > { %s17_s24 = sadd.s32 1, %s1275_s24  }
 0xa99   : > { %p14_p4 = scmp.ge.s32.totalorder %s17_s24, 4  }
 0xa9b   :  { %16 = sbr.rel (!%p14_p4) target bundleno = 1 (0x1), region = 78 }

// kernel: _lambda_.15
= control target key start
LH: loop header
LB: loop body
LE: loop exit
PB: predicated region body
PF: predicated region fallthrough
CT: control target
= control target key end

     0   :  { %s1820_s25 = smov 0   ;;  %s2024_s0 = inlined_call_operand.vmem [shape: bf16[2,8,32], index: 0, kind: input, shape index: {}]   ;;  %s2025_s1 = inlined_call_operand.vmem [shape: bf16[2,16,32], index: 1, kind: input, shape index: {}]   ;;  %s2026_s2 = inlined_call_operand.vmem [shape: bf16[2,16,32], index: 2, kind: input, shape index: {}]   ;;  %s2027_s3 = inlined_call_operand.vmem [shape: f32[1,32], index: 3, kind: input, shape index: {}]   ;;  %s2028_s4 = inlined_call_operand.vmem [shape: f32[1,32], index: 4, kind: input, shape index: {}]   ;;  %s2029_s5 = inlined_call_operand.vmem [shape: bf16[32,32], index: 5, kind: input, shape index: {}]   ;;  %s2030_s6 = inlined_call_operand.vmem [shape: f32[1,32], index: 6, kind: input, shape index: {}]   ;;  %s2031_s7 = inlined_call_operand.vmem [shape: bf16[32,32], index: 7, kind: input, shape index: {}]   ;;  %s2032_s8 = inlined_call_operand.vmem [shape: f32[1,32], index: 8, kind: input, shape index: {}]   ;;  %s2033_s9 = inlined_call_operand.vmem [shape: bf16[32,32], index: 9, kind: input, shape index: {}]   ;;  %s2034_s10 = inlined_call_operand.vmem [shape: f32[1,32], index: 10, kind: input, shape index: {}]   ;;  %s2035_s11 = inlined_call_operand.vmem [shape: bf16[32,32], index: 11, kind: input, shape index: {}]   ;;  %s2036_s12 = inlined_call_operand.vmem [shape: f32[1,32], index: 12, kind: input, shape index: {}]   ;;  %s2037_s13 = inlined_call_operand.vmem [shape: bf16[2,8,32], index: 13, kind: output, shape index: {}]  }
   0x1 LB: > { %s1500_s26 = sadd.s32 4294967295, %s1743_s25   ;;  %p1504_p0 = scmp.ge.s32.totalorder %s1743_s25, 1  ;;  %s1743_s25 = sphi %s1820_s25, %s23_s25  }
   0x2   : > { %p406_p1 = scmp.lt.s32.totalorder %s1743_s25, 3 }
   0x4   : > { %p407_p2 = pnand %p1504_p0, %p406_p1 }
   0x5   : > { %p458_p3 = scmp.lt.s32.totalorder (!%p407_p2), %s1500_s26, 1  ;;  %vm489_vm0 = vcmask (!%p407_p2), 261120   ;;  %v1705_v23 = vld [vmem:[%s2029_s5] sm:$0xff] (!%p407_p2)   ;;  %v1745_v25 = vmov (!%p407_p2), 0.0   ;;  %v1707_v26 = vld [vmem:[%s2029_s5 + $0x8] sm:$0xff] (!%p407_p2)   ;;  %vm1746_vm1 = vmmov (!%p407_p2), 0  }
   0x6   : > { %410 = sbr.rel (%p407_p2) target bundleno = 2603 (0xa2b), region = 72  ;;  %v1706_v24 = vld [vmem:[%s2031_s7] sm:$0xff] (!%p407_p2)   ;;  %1583 = vmatprep.subr.bf16.mxu0 (!%p407_p2), %v1745_v25  ;;  %1591 = vmatprep.subr.bf16.mxu1 (!%p407_p2), %v1745_v25  ;;  %v1708_v27 = vld [vmem:[%s2031_s7 + $0x8] sm:$0xff] (!%p407_p2)   ;;  %vm793_vm2 = vcmask (!%p407_p2), 64512   ;;  %vm840_vm3 = vcmask (!%p407_p2), 130048   ;;  %s1748_s16 = smov (!%p407_p2), 112  }
   0x7   : > { %1584 = vmatpush3.bf16.msra.mxu0 (!%p407_p2), %v1705_v23  ;;  %1592 = vmatpush3.bf16.msra.mxu1 (!%p407_p2), %v1706_v24  ;;  %v1511_v44 = vld [vmem:[%s2027_s3] ss:$0 sm:$0xff] (!%p407_p2)  ;;  %vm901_vm4 = vcmask (!%p407_p2), 1043456   ;;  %s1749_s19 = smov (!%p407_p2), 104   ;;  %vm1421_vm5 = vcmask (!%p407_p2), 257024  }
   0x8   : > { %1585 = vmatprep.subr.bf16.mxu0 (!%p407_p2), %v1745_v25  ;;  %1593 = vmatprep.subr.bf16.mxu1 (!%p407_p2), %v1745_v25  ;;  %v1512_v49 = vld [vmem:[%s2028_s4] ss:$0 sm:$0xff] (!%p407_p2) }
   0x9   : > { %1587 = vmatprep.mubr.msk.bf16.mxu0 (!%p407_p2), %vm1746_vm1, %v1745_v25  ;;  %1595 = vmatprep.mubr.msk.bf16.mxu1 (!%p407_p2), %vm1746_vm1, %v1745_v25 }
   0xb   : > { %1586 = vmatpush3.bf16.msra.mxu0 (!%p407_p2), %v1707_v26  ;;  %1594 = vmatpush3.bf16.msra.mxu1 (!%p407_p2), %v1708_v27  ;;  %v1513_v27 = vld [vmem:[%s2030_s6] ss:$0 sm:$0xff] (!%p407_p2) }
   0xc   : > { %1607 = vmatprep.subr.bf16.mxu1 (!%p407_p2), %v1745_v25  ;;  %1599 = vmatprep.subr.bf16.mxu0 (!%p407_p2), %v1745_v25 }
   0xd   : > { %s2039_s26 = smov (!%p458_p3, %s1500_s26), 1 }
   0xe   : > { %s1540_s27 = sshll.u32 %s2039_s26, 3  ;;  %s1505_s28 = sshll.u32 %s2039_s26, 2 }
   0xf   : > { %s466_s14 = scalar_lea.vmem %s2025_s1, %s1540_s27  ;;  %s461_s17 = scalar_lea.vmem %s2024_s0, %s1505_s28 }
  0x10   : > { %v1543_v0 = vld [vmem:[%s466_s14] sm:$0xff]   ;;  %s471_s15 = scalar_lea.vmem %s2026_s2, %s1540_s27  ;;  %s1747_s27 = smov 120  }
  0x11   : > { %v477_v1 = vld [vmem:[%s461_s17] sm:$0xf]  ;;  %v1544_v2 = vunpack.c.l.bf16 %v1543_v0  ;;  %v1545_v3 = vunpack.c.h.bf16 %v1543_v0 }
  0x12   : > { %v1842_v4 = vunpack.c.l.bf16 %v477_v1  ;;  %v1547_v28 = vld [vmem:[%s471_s15] sm:$0xff]  }
  0x13   : > { %v518_v5 = vsel %vm489_vm0, %v1544_v2, 0.0  ;;  %v521_v7 = vsel %vm489_vm0, %v1545_v3, 0.0  ;;  %v1548_v29 = vunpack.c.l.bf16 %v1547_v28  ;;  %v1549_v30 = vunpack.c.h.bf16 %v1547_v28 }
  0x14   : > { %v490_v6 = vsel %vm489_vm0, %v1842_v4, 0.0  ;;  %519 = vadd.xlane.f32.xlu0 %v518_v5  ;;  %v1709_v5 = vld [vmem:[%s2033_s9] sm:$0xff]  }
  0x15   : > { %491 = vadd.xlane.f32.xlu1 %v490_v6  ;;  %v548_v31 = vsel %vm489_vm0, %v1548_v29, 0.0  ;;  %v551_v32 = vsel %vm489_vm0, %v1549_v30, 0.0  ;;  %v1710_v6 = vld [vmem:[%s2033_s9 + $0x8] sm:$0xff]  }
  0x18   : > { %522 = vadd.xlane.f32.xlu0 %v521_v7 }
  0xa1   : > { %v520_v8 = vpop.xlane.xlu0 %519 }
  0xa2   : > { %v492_v9 = vpop.xlane.xlu1 %491  ;;  %v524_v10 = vmul.f32 0.03125, %v520_v8 }
  0xa3   : > { %v494_v11 = vmul.f32 0.03125, %v492_v9 }
  0xa4   : > { %v526_v12 = vsub.f32 %v1544_v2, %v524_v10 }
  0xa5   : > { %v495_v13 = vsub.f32 %v1842_v4, %v494_v11  ;;  %v523_v14 = vpop.xlane.xlu0 %522 }
  0xa6   : > { %v525_v15 = vmul.f32 0.03125, %v523_v14  ;;  %v528_v16 = vmul.f32 %v526_v12, %v526_v12 }
  0xa7   : > { %v496_v17 = vmul.f32 %v495_v13, %v495_v13 }
  0xa8   : > { %v527_v18 = vsub.f32 %v1545_v3, %v525_v15  ;;  %v530_v19 = vsel %vm489_vm0, %v528_v16, 0.0 }
  0xa9   : > { %531 = vadd.xlane.f32.xlu1 %v530_v19  ;;  %v497_v21 = vsel %vm489_vm0, %v496_v17, 0.0 }
  0xaa   : > { %v529_v20 = vmul.f32 %v527_v18, %v527_v18 }
  0xac   : > { %v533_v22 = vsel %vm489_vm0, %v529_v20, 0.0 }
  0xad   : > { %534 = vadd.xlane.f32.xlu0 %v533_v22  ;;  %498 = vadd.xlane.f32.xlu1 %v497_v21  ;;  %v1517_v22 = vld [vmem:[%s2032_s8] ss:$0 sm:$0xff] }
  0xb1   : > { %549 = vadd.xlane.f32.xlu0 %v548_v31  ;;  %552 = vadd.xlane.f32.xlu1 %v551_v32 }
 0x136   : > { %v532_v33 = vpop.xlane.xlu1 %531 }
 0x137   : > { %v536_v34 = vmul.f32 0.03125, %v532_v33 }
 0x139   : > { %v538_v35 = vadd.f32 1e-05, %v536_v34 }
 0x13a   : > { %v535_v36 = vpop.xlane.xlu0 %534  ;;  %v499_v37 = vpop.xlane.xlu1 %498 }
 0x13b   : > { %1711 = vrsqrt.f32 %v538_v35  ;;  %v537_v38 = vmul.f32 0.03125, %v535_v36  ;;  %v500_v39 = vmul.f32 0.03125, %v499_v37 }
 0x13d   : > { %v539_v40 = vadd.f32 1e-05, %v537_v38  ;;  %v501_v41 = vadd.f32 1e-05, %v500_v39 }
 0x13e   : > { %v550_v58 = vpop.xlane.xlu0 %549  ;;  %v553_v59 = vpop.xlane.xlu1 %552 }
 0x13f   : > { %1713 = vrsqrt.f32 %v539_v40  ;;  %v554_v60 = vmul.f32 0.03125, %v550_v58  ;;  %v555_v61 = vmul.f32 0.03125, %v553_v59  ;;  %v1521_v40 = vld [vmem:[%s2034_s10] ss:$0 sm:$0xff] }
 0x140   : > { %1715 = vrsqrt.f32 %v501_v41 }
 0x141   : > { %v556_v62 = vsub.f32 %v1548_v29, %v554_v60  ;;  %v557_v63 = vsub.f32 %v1549_v30, %v555_v61 }
 0x143   : > { %v558_v0 = vmul.f32 %v556_v62, %v556_v62  ;;  %v559_v1 = vmul.f32 %v557_v63, %v557_v63 }
 0x145   : > { %v1712_v42 = vpop.eup %1711  ;;  %v560_v2 = vsel %vm489_vm0, %v558_v0, 0.0  ;;  %v563_v3 = vsel %vm489_vm0, %v559_v1, 0.0 }
 0x146   : > { %v542_v43 = vmul.f32 %v1712_v42, %v526_v12  ;;  %561 = vadd.xlane.f32.xlu0 %v560_v2  ;;  %564 = vadd.xlane.f32.xlu1 %v563_v3 }
 0x148   : > { %v544_v48 = vmul.f32 %v1511_v44, %v542_v43 }
 0x149   : > { %v1714_v45 = vpop.eup %1713 }
 0x14a   : > { %v1716_v46 = vpop.eup %1715  ;;  %v543_v47 = vmul.f32 %v1714_v45, %v527_v18  ;;  %v546_v53 = vadd.f32 %v1512_v49, %v544_v48 }
 0x14b   : > { %v503_v50 = vmul.f32 %v1716_v46, %v495_v13 }
 0x14c   : > { %v545_v51 = vmul.f32 %v1511_v44, %v543_v47 }
 0x14d   : > { %v510_v52 = vmul.f32 %v1511_v44, %v503_v50 }
 0x14e   : > { %v547_v54 = vadd.f32 %v1512_v49, %v545_v51 }
 0x14f   : > { %v517_v55 = vadd.f32 %v1512_v49, %v510_v52 }
 0x150   : > { %v646_v56 = vpack.c.bf16 %v547_v54, %v546_v53 }
 0x151   : > { %v578_v57 = vpack.c.bf16 %v517_v55, %v517_v55 }
 0x152   : > { %1596 = vmatmul.mubr.msk.bf16.vlgmr.msra.gmra.mrb[0].mxu1 %vm489_vm0, %v646_v56 }
 0x153   : > { %1588 = vmatmul.mubr.msk.bf16.vlgmr.msra.gmra.mrb[0].mxu0 %vm489_vm0, %v578_v57  ;;  %1609 = vmatprep.mubr.msk.bf16.mxu1 %vm1746_vm1, %v1745_v25 }
 0x154   : > { %1603 = vmatprep.mubr.msk.bf16.mxu0 %vm1746_vm1, %v1745_v25  ;;  %1600 = vmatpush3.bf16.msra.mxu0 %v1709_v5  ;;  %v897_v5 = vld [vmem:[%s2035_s11] sm:$0xf] }
 0x155   : > { %1601 = vmatprep.subr.bf16.mxu0 %v1745_v25 }
 0x158   : > { %1602 = vmatpush3.bf16.msra.mxu0 %v1710_v6  ;;  %v903_v6 = vsel %vm901_vm4, %v897_v5, 0 }
 0x159   : > { %1613 = vmatprep.subr.bf16.mxu0 %v1745_v25 }
 0x1d3   : > { %v562_v7 = vpop.xlane.xlu0 %561  ;;  %v565_v8 = vpop.xlane.xlu1 %564 }
 0x1d4   : > { %v566_v9 = vmul.f32 0.03125, %v562_v7  ;;  %v567_v10 = vmul.f32 0.03125, %v565_v8 }
 0x1d6   : > { %v568_v11 = vadd.f32 1e-05, %v566_v9  ;;  %v569_v12 = vadd.f32 1e-05, %v567_v10 }
 0x1d8   : > { %1717 = vrsqrt.f32 %v568_v11 }
 0x1d9   : > { %1719 = vrsqrt.f32 %v569_v12 }
 0x1e2   : > { %v1718_v13 = vpop.eup %1717 }
 0x1e3   : > { %v1720_v14 = vpop.eup %1719  ;;  %v572_v15 = vmul.f32 %v1718_v13, %v556_v62 }
 0x1e4   : > { %v573_v16 = vmul.f32 %v1720_v14, %v557_v63 }
 0x1e5   : > { %v574_v17 = vmul.f32 %v1511_v44, %v572_v15 }
 0x1e6   : > { %v575_v18 = vmul.f32 %v1511_v44, %v573_v16 }
 0x1e7   : > { %v576_v19 = vadd.f32 %v1512_v49, %v574_v17 }
 0x1e8   : > { %v577_v20 = vadd.f32 %v1512_v49, %v575_v18 }
 0x1ea   : > { %v714_v21 = vpack.c.bf16 %v577_v20, %v576_v19 }
 0x1ec   : > { %1604 = vmatmul.mubr.msk.bf16.vlgmr.msra.gmra.mrb[4].mxu0 %vm489_vm0, %v714_v21 }
 0x1ed   : > { %1615 = vmatprep.mubr.msk.bf16.mxu0 %vm1746_vm1, %v1745_v25 }
 0x225   : > { %v707_v23 = vpop.f32.mrb[0].mxu1 }
 0x226   : > { %v639_v24 = vpop.f32.mrb[0].mxu0  ;;  %v1597_v26 = vpop.f32.mrb[1].mxu1  ;;  %v708_v30 = vadd.f32 %v1517_v22, %v707_v23 }
 0x227   : > { %v1589_v28 = vpop.f32.mrb[1].mxu0  ;;  %v710_v29 = vpop.f32.mrb[2].mxu1  ;;  %v640_v35 = vadd.f32 %v1513_v27, %v639_v24 }
 0x228   : > { %v642_v31 = vpop.f32.mrb[2].mxu0  ;;  %v711_v32 = vadd.f32 %v1517_v22, %v710_v29  ;;  %v1598_v33 = vpop.f32.mrb[3].mxu1 }
 0x229   : > { %v1590_v34 = vpop.f32.mrb[3].mxu0  ;;  %v645_v38 = vmul.f32 0.35355338, %v640_v35 }
 0x22a   : > { %v1912_v36 = vpack.c.bf16 %v711_v32, %v708_v30 }
 0x22b   : > { %v1917_v39 = vpack.c.bf16 %v645_v38, %v645_v38 }
 0x22c   : > { %v798_v37 = vsel %vm793_vm2, %v1912_v36, 0 }
 0x22d   : > { %1608 = vmatpush3.bf16.xpose.msra.mxu1 %v798_v37 }
 0x22e   : > { %1619 = vmatprep.subr.bf16.mxu1 %v1745_v25 }
 0x234   : > { %1610 = vmatmul.mubr.msk.bf16.vlgmr.msra.gmra.mrb[4].mxu1 %vm793_vm2, %v1917_v39 }
 0x235   : > { %1621 = vmatprep.mubr.msk.bf16.mxu1 %vm1746_vm1, %v1745_v25  ;;  %1620 = vmatpush3.bf16.msra.mxu1 %v903_v6 }
 0x236   : > { %1631 = vmatprep.subr.bf16.mxu1 %v1745_v25 }
 0x2bf   : > { %v775_v41 = vpop.f32.mrb[4].mxu0 }
 0x2c0   : > { %v776_v42 = vadd.f32 %v1521_v40, %v775_v41  ;;  %v1605_v43 = vpop.f32.mrb[5].mxu0 }
 0x2c1   : > { %v778_v44 = vpop.f32.mrb[6].mxu0 }
 0x2c2   : > { %v779_v45 = vadd.f32 %v1521_v40, %v778_v44  ;;  %v1606_v46 = vpop.f32.mrb[7].mxu0 }
 0x2c4   : > { %v1926_v47 = vpack.c.bf16 %v779_v45, %v776_v42 }
 0x2c6   : > { %1614 = vmatpush3.bf16.msra.mxu0 %v1926_v47 }
 0x2c7   : > { %1625 = vmatprep.subr.bf16.mxu0 %v1745_v25 }
 0x307   : > { %v834_v48 = vpop.f32.mrb[4].mxu1 }
 0x308   : > { %v1611_v49 = vpop.f32.mrb[5].mxu1  ;;  %v841_v50 = vsel %vm840_vm3, %v834_v48, -inf }
 0x309   : > { %842 = vmax.xlane.f32.xlu0 %v841_v50  ;;  %v837_v51 = vpop.f32.mrb[6].mxu1 }
 0x30a   : > { %v1612_v52 = vpop.f32.mrb[7].mxu1 }
 0x31f   : > { %950 = vrot.lane.b32.xlu0 %v1912_v36, %s1747_s27 }
 0x396   : > { %v843_v53 = vpop.xlane.xlu0 %842 }
 0x397   : > { %v844_v54 = vsub.f32 %v834_v48, %v843_v53 }
 0x399   : > { %v845_v55 = vmul.f32 1.442695, %v844_v54 }
 0x39a   : > { %v951_v61 = vpop.permute.xlu0 %950 }
 0x39b   : > { %1721 = vpow2.f32 %v845_v55  ;;  %v956_v0 = vsel %vm793_vm2, %v951_v61, 0 }
 0x3a5   : > { %v1722_v56 = vpop.eup %1721 }
 0x3a6   : > { %v847_v57 = vsel %vm840_vm3, %v1722_v56, 0.0 }
 0x3a7   : > { %848 = vadd.xlane.f32.xlu1 %v847_v57 }
 0x3b8   : > { %947 = vrot.lane.b32.xlu1 %v1917_v39, %s1747_s27 }
 0x3bc   : > { %1108 = vrot.lane.b32.xlu1 %v1912_v36, %s1748_s16 }
 0x3c0   : > { %1106 = vrot.lane.b32.xlu1 %v1917_v39, %s1748_s16 }
 0x434   : > { %v849_v58 = vpop.xlane.xlu1 %848 }
 0x435   : > { %1723 = vrcp.f32 %v849_v58 }
 0x438   : > { %v948_v63 = vpop.permute.xlu1 %947 }
 0x43c   : > { %v1109_v1 = vpop.permute.xlu1 %1108 }
 0x43d   : > { %v1114_v2 = vsel %vm793_vm2, %v1109_v1, 0 }
 0x43f   : > { %v1724_v59 = vpop.eup %1723 }
 0x440   : > { %v851_v60 = vmul.f32 %v1724_v59, %v1722_v56  ;;  %v1107_v3 = vpop.permute.xlu1 %1106  ;;  %v1058_v56 = vld [vmem:[%s2035_s11 + $0x4] sm:$0xf] }
 0x441   : > { %v1063_v57 = vsel %vm901_vm4, %v1058_v56, 0 }
 0x442   : > { %v852_v62 = vpack.c.bf16 %v851_v60, %v851_v60 }
 0x444   : > { %1616 = vmatmul.mubr.msk.bf16.vlgmr.msra.gmra.mrb[8].mxu0 %vm840_vm3, %v852_v62 }
 0x445   : > { %1626 = vmatpush3.bf16.xpose.msra.mxu0 %v956_v0  ;;  %1627 = vmatprep.mubr.msk.bf16.mxu0 %vm1746_vm1, %v1745_v25 }
 0x446   : > { %1643 = vmatprep.subr.bf16.mxu0 %v1745_v25 }
 0x44c   : > { %1628 = vmatmul.mubr.msk.bf16.vlgmr.msra.gmra.mrb[12].mxu0 %vm793_vm2, %v948_v63  ;;  %v1215_v63 = vld [vmem:[%s2035_s11 + $0x8] sm:$0xf] }
 0x44d   : > { %1644 = vmatpush3.bf16.xpose.msra.mxu0 %v1114_v2  ;;  %1645 = vmatprep.mubr.msk.bf16.mxu0 %vm1746_vm1, %v1745_v25 }
 0x44e   : > { %1649 = vmatprep.subr.bf16.mxu0 %v1745_v25 }
 0x454   : > { %1646 = vmatmul.mubr.msk.bf16.vlgmr.msra.gmra.mrb[16].mxu0 %vm793_vm2, %v1107_v3  ;;  %v1220_v3 = vsel %vm901_vm4, %v1215_v63, 0 }
 0x455   : > { %1651 = vmatprep.mubr.msk.bf16.mxu0 %vm1746_vm1, %v1745_v25 }
 0x517   : > { %v890_v7 = vpop.f32.mrb[8].mxu0 }
 0x518   : > { %v896_v8 = vpack.c.bf16 %v890_v7, %v890_v7  ;;  %v1617_v9 = vpop.f32.mrb[9].mxu0 }
 0x519   : > { %v893_v10 = vpop.f32.mrb[10].mxu0 }
 0x51a   : > { %v1618_v11 = vpop.f32.mrb[11].mxu0  ;;  %1622 = vmatmul.mubr.msk.bf16.vlgmr.msra.gmra.mrb[8].mxu1 %vm793_vm2, %v896_v8  ;;  %v1372_v10 = vld [vmem:[%s2035_s11 + $0xc] sm:$0xf] }
 0x51b   : > { %1633 = vmatprep.mubr.msk.bf16.mxu1 %vm1746_vm1, %v1745_v25 }
 0x51f   : > { %v992_v12 = vpop.f32.mrb[12].mxu0 }
 0x520   : > { %v1629_v13 = vpop.f32.mrb[13].mxu0  ;;  %v998_v28 = vsel %vm840_vm3, %v992_v12, -inf }
 0x521   : > { %v995_v14 = vpop.f32.mrb[14].mxu0  ;;  %v1377_v13 = vsel %vm901_vm4, %v1372_v10, 0 }
 0x522   : > { %v1630_v15 = vpop.f32.mrb[15].mxu0 }
 0x527   : > { %v1150_v16 = vpop.f32.mrb[16].mxu0 }
 0x528   : > { %v1647_v17 = vpop.f32.mrb[17].mxu0  ;;  %v1156_v18 = vsel %vm840_vm3, %v1150_v16, -inf }
 0x529   : > { %1157 = vmax.xlane.f32.xlu0 %v1156_v18  ;;  %v1153_v19 = vpop.f32.mrb[18].mxu0 }
 0x52a   : > { %v1648_v20 = vpop.f32.mrb[19].mxu0  ;;  %v1525_v19 = vld [vmem:[%s2036_s12] ss:$0 sm:$0xff] }
 0x52b   : > { %v789_v20 = vadd.f32 %v1525_v19, %v1842_v4 }
 0x53f   : > { %1168 = vrot.lane.b32.xlu0 %v1926_v47, %s1748_s16  ;;  %s475_s16 = scalar_lea.vmem %s2037_s13, %s1505_s28 }
 0x543   : > { %1263 = vrot.lane.b32.xlu0 %v1917_v39, %s1749_s19 }
 0x5b6   : > { %v1158_v21 = vpop.xlane.xlu0 %1157 }
 0x5b7   : > { %v1159_v22 = vsub.f32 %v1150_v16, %v1158_v21 }
 0x5b9   : > { %v1160_v23 = vmul.f32 1.442695, %v1159_v22 }
 0x5ba   : > { %v1169_v24 = vpop.permute.xlu0 %1168 }
 0x5bb   : > { %1725 = vpow2.f32 %v1160_v23  ;;  %1650 = vmatpush3.bf16.msra.mxu0 %v1169_v24 }
 0x5bc   : > { %1661 = vmatprep.subr.bf16.mxu0 %v1745_v25 }
 0x5be   : > { %v1264_v35 = vpop.permute.xlu0 %1263 }
 0x5c5   : > { %v1726_v26 = vpop.eup %1725 }
 0x5c6   : > { %v1162_v27 = vsel %vm840_vm3, %v1726_v26, 0.0 }
 0x5c7   : > { %1163 = vadd.xlane.f32.xlu1 %v1162_v27 }
 0x5d8   : > { %1265 = vrot.lane.b32.xlu1 %v1912_v36, %s1749_s19 }
 0x5fc   : > { %999 = vmax.xlane.f32.xlu1 %v998_v28 }
 0x654   : > { %v1164_v29 = vpop.xlane.xlu1 %1163 }
 0x655   : > { %1727 = vrcp.f32 %v1164_v29 }
 0x658   : > { %v1266_v32 = vpop.permute.xlu1 %1265 }
 0x659   : > { %v1271_v34 = vsel %vm793_vm2, %v1266_v32, 0 }
 0x65f   : > { %v1728_v30 = vpop.eup %1727 }
 0x660   : > { %v1166_v31 = vmul.f32 %v1728_v30, %v1726_v26 }
 0x662   : > { %v1167_v33 = vpack.c.bf16 %v1166_v31, %v1166_v31 }
 0x664   : > { %1652 = vmatmul.mubr.msk.bf16.vlgmr.msra.gmra.mrb[20].mxu0 %vm840_vm3, %v1167_v33 }
 0x665   : > { %1662 = vmatpush3.bf16.xpose.msra.mxu0 %v1271_v34  ;;  %1663 = vmatprep.mubr.msk.bf16.mxu0 %vm1746_vm1, %v1745_v25 }
 0x66c   : > { %1664 = vmatmul.mubr.msk.bf16.vlgmr.msra.gmra.mrb[24].mxu0 %vm793_vm2, %v1264_v35 }
 0x689   : > { %v1000_v36 = vpop.xlane.xlu1 %999 }
 0x68a   : > { %v1001_v37 = vsub.f32 %v992_v12, %v1000_v36 }
 0x68c   : > { %v1002_v38 = vmul.f32 1.442695, %v1001_v37 }
 0x68e   : > { %1729 = vpow2.f32 %v1002_v38 }
 0x698   : > { %v1730_v39 = vpop.eup %1729 }
 0x699   : > { %v1004_v40 = vsel %vm840_vm3, %v1730_v39, 0.0 }
 0x69a   : > { %1005 = vadd.xlane.f32.xlu0 %v1004_v40 }
 0x6b0   : > { %1011 = vrot.lane.b32.xlu0 %v1926_v47, %s1747_s27 }
 0x727   : > { %v1006_v41 = vpop.xlane.xlu0 %1005 }
 0x728   : > { %1731 = vrcp.f32 %v1006_v41 }
 0x72b   : > { %v1012_v42 = vpop.permute.xlu0 %1011 }
 0x72c   : > { %1632 = vmatpush3.bf16.msra.mxu1 %v1012_v42 }
 0x72d   : > { %1637 = vmatprep.subr.bf16.mxu1 %v1745_v25 }
 0x732   : > { %v1732_v43 = vpop.eup %1731 }
 0x733   : > { %v1008_v44 = vmul.f32 %v1732_v43, %v1730_v39 }
 0x735   : > { %v1009_v45 = vpack.c.bf16 %v1008_v44, %v1008_v44 }
 0x737   : > { %1634 = vmatmul.mubr.msk.bf16.vlgmr.msra.gmra.mrb[12].mxu1 %vm840_vm3, %v1009_v45  ;;  %v1208_v46 = vpop.f32.mrb[20].mxu0 }
 0x738   : > { %v1653_v48 = vpop.f32.mrb[21].mxu0  ;;  %1639 = vmatprep.mubr.msk.bf16.mxu1 %vm1746_vm1, %v1745_v25  ;;  %1638 = vmatpush3.bf16.msra.mxu1 %v1063_v57 }
 0x739   : > { %v1211_v49 = vpop.f32.mrb[22].mxu0  ;;  %1655 = vmatprep.subr.bf16.mxu1 %v1745_v25 }
 0x73a   : > { %v1654_v50 = vpop.f32.mrb[23].mxu0 }
 0x73f   : > { %v1307_v51 = vpop.f32.mrb[24].mxu0 }
 0x740   : > { %v1665_v52 = vpop.f32.mrb[25].mxu0  ;;  %v1313_v53 = vsel %vm840_vm3, %v1307_v51, -inf }
 0x741   : > { %1314 = vmax.xlane.f32.xlu1 %v1313_v53  ;;  %v1310_v54 = vpop.f32.mrb[26].mxu0 }
 0x742   : > { %v1666_v55 = vpop.f32.mrb[27].mxu0 }
 0x7ce   : > { %v1315_v58 = vpop.xlane.xlu1 %1314 }
 0x7cf   : > { %v1316_v59 = vsub.f32 %v1307_v51, %v1315_v58 }
 0x7d1   : > { %v1317_v60 = vmul.f32 1.442695, %v1316_v59 }
 0x7d3   : > { %1733 = vpow2.f32 %v1317_v60 }
 0x7dd   : > { %v1734_v61 = vpop.eup %1733 }
 0x7de   : > { %v1319_v62 = vsel %vm840_vm3, %v1734_v61, 0.0 }
 0x7df   : > { %1320 = vadd.xlane.f32.xlu1 %v1319_v62 }
 0x7f0   : > { %1325 = vrot.lane.b32.xlu1 %v1926_v47, %s1749_s19  ;;  %v1214_v47 = vpack.c.bf16 %v1208_v46, %v1208_v46 }
 0x80a   : > { %v1051_v0 = vpop.f32.mrb[12].mxu1 }
 0x80b   : > { %v1057_v1 = vpack.c.bf16 %v1051_v0, %v1051_v0  ;;  %v1635_v2 = vpop.f32.mrb[13].mxu1 }
 0x80c   : > { %v1054_v5 = vpop.f32.mrb[14].mxu1 }
 0x80d   : > { %v1636_v6 = vpop.f32.mrb[15].mxu1  ;;  %1640 = vmatmul.mubr.msk.bf16.vlgmr.msra.gmra.mrb[8].mxu1 %vm793_vm2, %v1057_v1 }
 0x80e   : > { %1656 = vmatpush3.bf16.msra.mxu1 %v1220_v3  ;;  %1657 = vmatprep.mubr.msk.bf16.mxu1 %vm1746_vm1, %v1745_v25 }
 0x80f   : > { %1667 = vmatprep.subr.bf16.mxu1 %v1745_v25 }
 0x819   : > { %1658 = vmatmul.mubr.msk.bf16.vlgmr.msra.gmra.mrb[8].mxu1 %vm793_vm2, %v1214_v47 }
 0x81a   : > { %1669 = vmatprep.mubr.msk.bf16.mxu1 %vm1746_vm1, %v1745_v25 }
 0x86c   : > { %v1321_v7 = vpop.xlane.xlu1 %1320 }
 0x86d   : > { %1735 = vrcp.f32 %v1321_v7 }
 0x870   : > { %v1326_v8 = vpop.permute.xlu1 %1325 }
 0x871   : > { %1668 = vmatpush3.bf16.msra.mxu1 %v1326_v8 }
 0x872   : > { %1673 = vmatprep.subr.bf16.mxu1 %v1745_v25 }
 0x877   : > { %v1736_v9 = vpop.eup %1735 }
 0x878   : > { %v1323_v11 = vmul.f32 %v1736_v9, %v1734_v61 }
 0x87a   : > { %v1324_v12 = vpack.c.bf16 %v1323_v11, %v1323_v11 }
 0x87c   : > { %1670 = vmatmul.mubr.msk.bf16.vlgmr.msra.gmra.mrb[16].mxu1 %vm840_vm3, %v1324_v12 }
 0x87d   : > { %1674 = vmatpush3.bf16.msra.mxu1 %v1377_v13  ;;  %1675 = vmatprep.mubr.msk.bf16.mxu1 %vm1746_vm1, %v1745_v25 }
 0x94f   : > { %v1365_v14 = vpop.f32.mrb[16].mxu1 }
 0x950   : > { %v1371_v15 = vpack.c.bf16 %v1365_v14, %v1365_v14  ;;  %v1671_v16 = vpop.f32.mrb[17].mxu1 }
 0x951   : > { %v1368_v17 = vpop.f32.mrb[18].mxu1 }
 0x952   : > { %v1672_v18 = vpop.f32.mrb[19].mxu1  ;;  %1676 = vmatmul.mubr.msk.bf16.vlgmr.msra.gmra.mrb[8].mxu1 %vm793_vm2, %v1371_v15 }
 0xa25   : > { %v1413_v21 = vpop.f32.mrb[8].mxu1 }
 0xa26   : > { %v1679_v22 = vadd.f32 %v1413_v21, %v789_v20  ;;  %v1677_v23 = vpop.f32.mrb[9].mxu1 }
 0xa27   : > { %v1416_v25 = vpop.f32.mrb[10].mxu1 }
 0xa28   : > { %v1420_v24 = vpack.c.bf16 %v1679_v22, %v1679_v22  ;;  %v1678_v26 = vpop.f32.mrb[11].mxu1 }
 0xa2a   : > { %1422 = vst.msk [vmem:[%s475_s16] sm:$0xf] %vm1421_vm5, %v1420_v24 }
 0xa2b PF: > { %s23_s25 = sadd.s32 1, %s1743_s25  }
 0xa2c   : > { %p20_p4 = scmp.ge.s32.totalorder %s23_s25, 4  }
 0xa2e   :  { %22 = sbr.rel (!%p20_p4) target bundleno = 1 (0x1), region = 108 }

// kernel: _lambda_.16
= control target key start
LH: loop header
LB: loop body
LE: loop exit
PB: predicated region body
PF: predicated region fallthrough
CT: control target
= control target key end

     0   :  { %vm37_vm0 = vcmask 261120   ;;  %v400_v15 = vmov 0.0   ;;  %vm401_vm1 = vmmov 0   ;;  %vm306_vm2 = vcmask 257024   ;;  %s514_s0 = inlined_call_operand.vmem [shape: bf16[16,32], index: 0, kind: input, shape index: {}]   ;;  %s515_s3 = inlined_call_operand.vmem [shape: bf16[32,128], index: 3, kind: input, shape index: {}]   ;;  %s516_s5 = inlined_call_operand.vmem [shape: bf16[128,32], index: 5, kind: input, shape index: {}]   ;;  %s517_s1 = inlined_call_operand.vmem [shape: f32[1,32], index: 1, kind: input, shape index: {}]   ;;  %s518_s2 = inlined_call_operand.vmem [shape: f32[1,32], index: 2, kind: input, shape index: {}]   ;;  %s519_s4 = inlined_call_operand.vmem [shape: f32[1,128], index: 4, kind: input, shape index: {}]   ;;  %s520_s6 = inlined_call_operand.vmem [shape: f32[1,32], index: 6, kind: input, shape index: {}]   ;;  %s521_s7 = inlined_call_operand.vmem [shape: bf16[16,32], index: 7, kind: output, shape index: {}]  }
   0x1   :  { %v333_v0 = vld [vmem:[%s514_s0] sm:$0xff]   ;;  %352 = vmatprep.subr.bf16.mxu0 %v400_v15  ;;  %83 = vst.msk [vmem:[#allocation3] sm:$0xff] %vm37_vm0, %v400_v15  ;;  %84 = vst.msk [vmem:[#allocation3 + $0x8] sm:$0xff] %vm37_vm0, %v400_v15  ;;  %356 = vmatprep.mubr.msk.bf16.mxu0 %vm401_vm1, %v400_v15  ;;  %v383_v17 = vld [vmem:[%s515_s3 + $0x8] sm:$0xff]  }
   0x2   :  { %v445_v1 = vunpack.c.l.bf16 %v333_v0  ;;  %v447_v2 = vunpack.c.h.bf16 %v333_v0  ;;  %v382_v16 = vld [vmem:[%s515_s3] sm:$0xff]   ;;  %360 = vmatprep.subr.bf16.mxu1 %v400_v15  ;;  %376 = vmatprep.mubr.msk.bf16.mxu1 %vm401_vm1, %v400_v15  ;;  %v385_v19 = vld [vmem:[%s516_s5 + $0x8] sm:$0xff]   ;;  %v386_v39 = vld [vmem:[%s516_s5 + $0x10] sm:$0xff]  }
   0x3   :  { %353 = vmatpush3.bf16.msra.mxu0 %v382_v16  ;;  %v384_v18 = vld [vmem:[%s516_s5] sm:$0xff]   ;;  %v387_v40 = vld [vmem:[%s516_s5 + $0x18] sm:$0xff]   ;;  %v389_v42 = vld [vmem:[%s516_s5 + $0x28] sm:$0xff]  }
   0x4   :  { %v38_v3 = vsel %vm37_vm0, %v445_v1, 0.0  ;;  %v41_v4 = vsel %vm37_vm0, %v447_v2, 0.0  ;;  %354 = vmatprep.subr.bf16.mxu0 %v400_v15  ;;  %361 = vmatpush3.bf16.msra.mxu1 %v384_v18  ;;  %v313_v27 = vld [vmem:[%s517_s1] ss:$0 sm:$0xff]  ;;  %v390_v43 = vld [vmem:[%s516_s5 + $0x30] sm:$0xff]   ;;  %v391_v44 = vld [vmem:[%s516_s5 + $0x38] sm:$0xff]  }
   0x5   :  { %39 = vadd.xlane.f32.xlu0 %v38_v3  ;;  %362 = vmatprep.subr.bf16.mxu1 %v400_v15  ;;  %v314_v29 = vld [vmem:[%s518_s2] ss:$0 sm:$0xff] }
   0x6   :  { %v388_v41 = vld [vmem:[%s516_s5 + $0x20] sm:$0xff]  }
   0x7   :  { %355 = vmatpush3.bf16.msra.mxu0 %v383_v17  ;;  %v315_v45 = vld [vmem:[%s519_s4] ss:$0 sm:$0xff] }
   0x8   :  { %363 = vmatpush3.bf16.msra.mxu1 %v385_v19  ;;  %v166_v63 = vld [vmem:[#allocation3] sm:$0xff]  ;;  %v167_v3 = vld [vmem:[#allocation3 + $0x8] sm:$0xff] }
   0x9   :  { %42 = vadd.xlane.f32.xlu0 %v41_v4  ;;  %364 = vmatprep.subr.bf16.mxu1 %v400_v15 }
   0xc   :  { %365 = vmatpush3.bf16.msra.mxu1 %v386_v39 }
   0xd   :  { %366 = vmatprep.subr.bf16.mxu1 %v400_v15 }
  0x10   :  { %367 = vmatpush3.bf16.msra.mxu1 %v387_v40 }
  0x11   :  { %368 = vmatprep.subr.bf16.mxu1 %v400_v15 }
  0x14   :  { %369 = vmatpush3.bf16.msra.mxu1 %v388_v41 }
  0x15   :  { %370 = vmatprep.subr.bf16.mxu1 %v400_v15 }
  0x18   :  { %371 = vmatpush3.bf16.msra.mxu1 %v389_v42 }
  0x19   :  { %372 = vmatprep.subr.bf16.mxu1 %v400_v15 }
  0x1c   :  { %373 = vmatpush3.bf16.msra.mxu1 %v390_v43 }
  0x1d   :  { %374 = vmatprep.subr.bf16.mxu1 %v400_v15 }
  0x20   :  { %375 = vmatpush3.bf16.msra.mxu1 %v391_v44 }
  0x92   :  { %v40_v5 = vpop.xlane.xlu0 %39 }
  0x93   :  { %v45_v6 = vmul.f32 0.03125, %v40_v5 }
  0x95   :  { %v47_v7 = vsub.f32 %v445_v1, %v45_v6 }
  0x96   :  { %v43_v8 = vpop.xlane.xlu0 %42 }
  0x97   :  { %v46_v9 = vmul.f32 0.03125, %v43_v8  ;;  %v49_v10 = vmul.f32 %v47_v7, %v47_v7 }
  0x99   :  { %v48_v11 = vsub.f32 %v447_v2, %v46_v9  ;;  %v51_v12 = vsel %vm37_vm0, %v49_v10, 0.0  ;;  %v327_v9 = vld [vmem:[%s520_s6] ss:$0 sm:$0xff] }
  0x9a   :  { %52 = vadd.xlane.f32.xlu1 %v51_v12 }
  0x9b   :  { %v50_v13 = vmul.f32 %v48_v11, %v48_v11 }
  0x9d   :  { %v54_v14 = vsel %vm37_vm0, %v50_v13, 0.0 }
  0x9e   :  { %55 = vadd.xlane.f32.xlu1 %v54_v14 }
 0x127   :  { %v53_v20 = vpop.xlane.xlu1 %52 }
 0x128   :  { %v57_v21 = vmul.f32 0.03125, %v53_v20 }
 0x12a   :  { %v59_v22 = vadd.f32 1e-05, %v57_v21 }
 0x12b   :  { %v56_v23 = vpop.xlane.xlu1 %55 }
 0x12c   :  { %392 = vrsqrt.f32 %v59_v22  ;;  %v58_v24 = vmul.f32 0.03125, %v56_v23 }
 0x12e   :  { %v60_v25 = vadd.f32 1e-05, %v58_v24 }
 0x130   :  { %394 = vrsqrt.f32 %v60_v25 }
 0x136   :  { %v393_v26 = vpop.eup %392 }
 0x137   :  { %v63_v28 = vmul.f32 %v393_v26, %v47_v7 }
 0x139   :  { %v71_v30 = vmul.f32 %v313_v27, %v63_v28 }
 0x13a   :  { %v395_v31 = vpop.eup %394 }
 0x13b   :  { %v79_v32 = vadd.f32 %v314_v29, %v71_v30  ;;  %v64_v33 = vmul.f32 %v395_v31, %v48_v11 }
 0x13d   :  { %81 = vst.msk [vmem:[#allocation2] sm:$0xff] %vm37_vm0, %v79_v32  ;;  %v72_v34 = vmul.f32 %v313_v27, %v64_v33 }
 0x13f   :  { %v80_v35 = vadd.f32 %v314_v29, %v72_v34 }
 0x141   :  { %82 = vst.msk [vmem:[#allocation2 + $0x8] sm:$0xff] %vm37_vm0, %v80_v35 }
 0x144   :  { %v85_v36 = vld [vmem:[#allocation2] sm:$0xff] }
 0x148   :  { %v86_v37 = vld [vmem:[#allocation2 + $0x8] sm:$0xff] }
 0x149   :  { %v87_v38 = vpack.c.bf16 %v86_v37, %v85_v36 }
 0x14b   :  { %357 = vmatmul.mubr.msk.bf16.vlgmr.msra.gmra.mrb[0].mxu0 %vm37_vm0, %v87_v38 }
 0x21e   :  { %v149_v46 = vpop.f32.mrb[0].mxu0 }
 0x21f   :  { %v150_v47 = vadd.f32 %v315_v45, %v149_v46  ;;  %v358_v48 = vpop.f32.mrb[1].mxu0 }
 0x220   :  { %v152_v49 = vpop.f32.mrb[2].mxu0 }
 0x221   :  { %v158_v50 = vmul.f32 0.70710677, %v150_v47  ;;  %v153_v51 = vadd.f32 %v315_v45, %v152_v49  ;;  %v359_v52 = vpop.f32.mrb[3].mxu0  ;;  %v156_v57 = vmul.f32 0.5, %v150_v47 }
 0x223   :  { %396 = verf.f32 %v158_v50  ;;  %v159_v53 = vmul.f32 0.70710677, %v153_v51  ;;  %v157_v58 = vmul.f32 0.5, %v153_v51 }
 0x225   :  { %398 = verf.f32 %v159_v53 }
 0x22d   :  { %v397_v54 = vpop.eup %396 }
 0x22e   :  { %v162_v55 = vadd.f32 1.0, %v397_v54 }
 0x22f   :  { %v399_v56 = vpop.eup %398 }
 0x230   :  { %v163_v59 = vadd.f32 1.0, %v399_v56  ;;  %v164_v60 = vmul.f32 %v162_v55, %v156_v57 }
 0x232   :  { %v165_v61 = vmul.f32 %v163_v59, %v157_v58 }
 0x234   :  { %v168_v62 = vpack.c.bf16 %v165_v61, %v164_v60 }
 0x236   :  { %377 = vmatmul.mubr.bf16.vlgmr.msra.gmra.mrb[0].mxu1 %v168_v62 }
 0x309   :  { %v267_v0 = vpop.f32.mrb[0].mxu1 }
 0x30a   :  { %v274_v4 = vadd.f32 %v267_v0, %v166_v63  ;;  %v378_v5 = vpop.f32.mrb[1].mxu1 }
 0x30b   :  { %v270_v6 = vpop.f32.mrb[2].mxu1 }
 0x30c   :  { %276 = vst.msk [vmem:[#allocation3] sm:$0xff] %vm37_vm0, %v274_v4  ;;  %v275_v7 = vadd.f32 %v270_v6, %v167_v3  ;;  %v379_v8 = vpop.f32.mrb[3].mxu1 }
 0x30e   :  { %277 = vst.msk [vmem:[#allocation3 + $0x8] sm:$0xff] %vm37_vm0, %v275_v7 }
 0x313   :  { %v281_v10 = vld [vmem:[#allocation3] sm:$0xff] }
 0x314   :  { %v290_v11 = vadd.f32 %v327_v9, %v281_v10 }
 0x315   :  { %v282_v12 = vld [vmem:[#allocation3 + $0x8] sm:$0xff] }
 0x316   :  { %v296_v13 = vadd.f32 %v445_v1, %v290_v11  ;;  %v291_v14 = vadd.f32 %v327_v9, %v282_v12 }
 0x318   :  { %v330_v15 = vpack.c.bf16 %v296_v13, %v296_v13  ;;  %v297_v16 = vadd.f32 %v447_v2, %v291_v14 }
 0x31a   :  { %307 = vst.msk [vmem:[%s521_s7] sm:$0xf] %vm306_vm2, %v330_v15  ;;  %v331_v17 = vpack.c.bf16 %v297_v16, %v297_v16 }
 0x31c   :  { %308 = vst.msk [vmem:[%s521_s7 + $0x4] sm:$0xf] %vm306_vm2, %v331_v17 }

</bundles_post_ra>
